<compile_context>
chip_gen: v6e
topology: v6e:2x2x1
jax: 0.10.0
libtpu: 0.0.40
codegen_flags: <defaults>
</compile_context>

<pallas_src>
import math

import jax
import jax.numpy as jnp
from jax.experimental import pallas as pl
from jax.experimental.pallas import tpu as pltpu

# ---------------- small synthetic BERT config ----------------
BATCH = 2
SEQ = 16
HIDDEN = 128
NUM_HEADS = 4
HEAD_DIM = HIDDEN // NUM_HEADS
INTERMEDIATE = 256
NUM_LAYERS = 2
VOCAB = 64
TYPE_VOCAB = 2
MAX_POS = 64
LN_EPS = 1e-12
POOLER_TYPE = "cls"   # ESimCSE 'cls' path: last_hidden[:, 0] -> MLPLayer(dense+tanh)


# ---------------- in-kernel helpers (f32 math) ----------------
def _layer_norm(x, gamma, beta):
    mu = jnp.mean(x, axis=-1, keepdims=True)
    var = jnp.mean((x - mu) ** 2, axis=-1, keepdims=True)
    return (x - mu) * jax.lax.rsqrt(var + LN_EPS) * gamma + beta


def _gelu(x):
    # TODO(synk): HF BERT uses exact erf-GELU; tanh approximation used here
    # (EUP-friendly, ~1e-3 close) since erf lowering inside Mosaic is not guaranteed.
    c = math.sqrt(2.0 / math.pi)
    return 0.5 * x * (1.0 + jnp.tanh(c * (x + 0.044715 * x * x * x)))


def _to_heads(z):
    """(B*S, H) heads-in-lanes -> (NH*B, S, D) heads-in-batch (leading order (h, b))."""
    parts = [z[:, h * HEAD_DIM:(h + 1) * HEAD_DIM] for h in range(NUM_HEADS)]
    return jnp.stack(parts, axis=0).reshape(NUM_HEADS * BATCH, SEQ, HEAD_DIM)


def _from_heads(ctx):
    """(NH*B, S, D) -> (B*S, H) heads-in-lanes (matches Wo row layout)."""
    ctx3 = ctx.reshape(NUM_HEADS, BATCH * SEQ, HEAD_DIM)
    return jnp.concatenate([ctx3[h] for h in range(NUM_HEADS)], axis=-1)


# ------------- fused encoder + pooler('cls') + MLP head kernel -------------
def fused_encoder_kernel(x_ref, bias_ref,
                         wqkv_ref, bqkv_ref, wo_ref, bo_ref, ln1g_ref, ln1b_ref,
                         w1_ref, b1_ref, w2_ref, b2_ref, ln2g_ref, ln2b_ref,
                         mlp_w_ref, mlp_b_ref,
                         out_ref):
    x = x_ref[...]                       # (B*S, H) f32 embeddings
    bias = bias_ref[...]                 # (NH*B, 1, S) additive mask bias, f32
    scale = 1.0 / math.sqrt(HEAD_DIM)

    for l in range(NUM_LAYERS):          # static unroll over layers (no grid)
        x_bf = x.astype(jnp.bfloat16)

        # ---- fused QKV projection: one (B*S, H) x (H, 3H) MXU op ----
        qkv = jnp.dot(x_bf, wqkv_ref[l],
                      preferred_element_type=jnp.float32) + bqkv_ref[l]   # (B*S, 3H)

        q = _to_heads(qkv[:, 0:HIDDEN]).astype(jnp.bfloat16)              # (NH*B, S, D)
        k = _to_heads(qkv[:, HIDDEN:2 * HIDDEN]).astype(jnp.bfloat16)
        v = _to_heads(qkv[:, 2 * HIDDEN:3 * HIDDEN]).astype(jnp.bfloat16)

        # ---- batched attention over all heads & batches at once ----
        s = jnp.einsum('bqd,bkd->bqk', q, k,
                       preferred_element_type=jnp.float32) * scale + bias  # (NH*B, S, S)
        s = s - jnp.max(s, axis=-1, keepdims=True)          # stable softmax (f32)
        p = jnp.exp(s)
        # approx reciprocal (EUP slot); fine for inference similarity scores
        p = p * pl.reciprocal(jnp.sum(p, axis=-1, keepdims=True), approx=True)

        ctx = jnp.einsum('bqk,bkd->bqd', p.astype(jnp.bfloat16), v,
                         preferred_element_type=jnp.float32)               # (NH*B, S, D)

        # ---- single K=128 output projection (heads re-packed into lanes) ----
        ctx_flat = _from_heads(ctx)                                        # (B*S, H)
        attn = jnp.dot(ctx_flat.astype(jnp.bfloat16), wo_ref[l],
                       preferred_element_type=jnp.float32) + bo_ref[l]

        h1 = _layer_norm(x + attn, ln1g_ref[l], ln1b_ref[l])

        # ---- feed-forward ----
        ff = jnp.dot(h1.astype(jnp.bfloat16), w1_ref[l],
                     preferred_element_type=jnp.float32) + b1_ref[l]
        ff = _gelu(ff)
        ff = jnp.dot(ff.astype(jnp.bfloat16), w2_ref[l],
                     preferred_element_type=jnp.float32) + b2_ref[l]

        x = _layer_norm(h1 + ff, ln2g_ref[l], ln2b_ref[l])

    # ---- Pooler('cls') + ESimCSE MLPLayer head (dense + tanh) ----
    cls = x.reshape(BATCH, SEQ, HIDDEN)[:, 0, :]                          # (B, H)
    y = jnp.dot(cls.astype(jnp.bfloat16), mlp_w_ref[...],
                preferred_element_type=jnp.float32) + mlp_b_ref[...]
    out_ref[...] = jnp.tanh(y)


def fused_encoder(x_flat, bias, layer_arrays, mlp_w, mlp_b):
    # Grid-less call: every operand resident in VMEM (total << 1 MiB).
    return pl.pallas_call(
        fused_encoder_kernel,
        out_shape=jax.ShapeDtypeStruct((BATCH, HIDDEN), jnp.float32),
    )(x_flat, bias, *layer_arrays, mlp_w, mlp_b)


# ---------------- deterministic parameter init ----------------
LAYER_PARAM_KEYS = ("wqkv", "bqkv", "wo", "bo", "ln1g", "ln1b",
                    "w1", "b1", "w2", "b2", "ln2g", "ln2b")


def init_params(key):
    keys = iter(jax.random.split(key, 32))

    def normal(shape):
        return 0.02 * jax.random.normal(next(keys), shape, dtype=jnp.float32)

    L, H, I = NUM_LAYERS, HIDDEN, INTERMEDIATE
    params = {
        "word_emb": normal((VOCAB, H)),
        "pos_emb": normal((MAX_POS, H)),
        "type_emb": normal((TYPE_VOCAB, H)),
        "emb_ln_g": jnp.ones((H,), jnp.float32),
        "emb_ln_b": jnp.zeros((H,), jnp.float32),
        # stacked per-layer encoder params (bf16 matmul weights, f32 biases/LN)
        "wqkv": normal((L, H, 3 * H)).astype(jnp.bfloat16),     # [Wq | Wk | Wv]
        "bqkv": jnp.zeros((L, 1, 3 * H), jnp.float32),
        "wo": normal((L, H, H)).astype(jnp.bfloat16),
        "bo": jnp.zeros((L, 1, H), jnp.float32),
        "ln1g": jnp.ones((L, 1, H), jnp.float32),
        "ln1b": jnp.zeros((L, 1, H), jnp.float32),
        "w1": normal((L, H, I)).astype(jnp.bfloat16),
        "b1": jnp.zeros((L, 1, I), jnp.float32),
        "w2": normal((L, I, H)).astype(jnp.bfloat16),
        "b2": jnp.zeros((L, 1, H), jnp.float32),
        "ln2g": jnp.ones((L, 1, H), jnp.float32),
        "ln2b": jnp.zeros((L, 1, H), jnp.float32),
        # ESimCSE MLPLayer head (dense + tanh over the CLS token)
        "mlp_w": normal((H, H)).astype(jnp.bfloat16),
        "mlp_b": jnp.zeros((1, H), jnp.float32),
    }
    return params


# ---------------- full ESimCSE forward (jitted) ----------------
@jax.jit
def esimcse_forward(params, input_ids, attention_mask, token_type_ids):
    B, S = input_ids.shape
    positions = jnp.arange(S)

    # --- embeddings (gather + LayerNorm): plain-JAX glue, fused under jit ---
    emb = (params["word_emb"][input_ids]
           + params["pos_emb"][positions][None, :, :]
           + params["type_emb"][token_type_ids])
    mu = jnp.mean(emb, axis=-1, keepdims=True)
    var = jnp.mean((emb - mu) ** 2, axis=-1, keepdims=True)
    x = ((emb - mu) * jax.lax.rsqrt(var + LN_EPS)
         * params["emb_ln_g"] + params["emb_ln_b"]).astype(jnp.float32)
    x_flat = x.reshape(B * S, HIDDEN)

    # additive attention-mask bias, pre-broadcast to the fused score layout
    # (NH*B, 1, S) with leading order (head, batch) to match _to_heads()
    neg = (1.0 - attention_mask.astype(jnp.float32)) * -1e9          # (B, S)
    bias = jnp.broadcast_to(neg[None, :, None, :],
                            (NUM_HEADS, B, 1, S)).reshape(NUM_HEADS * B, 1, S)

    # --- encoder layers + CLS pooler + MLP head: single Pallas kernel ---
    # (dropout from the PyTorch module is inference-disabled / identity)
    layer_arrays = [params[k] for k in LAYER_PARAM_KEYS]
    pooled = fused_encoder(x_flat, bias, layer_arrays,
                           params["mlp_w"], params["mlp_b"])
    return pooled


if __name__ == "__main__":
    key = jax.random.PRNGKey(0)
    pkey, ikey = jax.random.split(key)

    params = init_params(pkey)

    input_ids = jax.random.randint(ikey, (BATCH, SEQ), 0, VOCAB, dtype=jnp.int32)
    # batch 0 fully attended; batch 1 has its last 5 tokens padded out
    attention_mask = jnp.stack([
        jnp.ones((SEQ,), jnp.int32),
        jnp.concatenate([jnp.ones((SEQ - 5,), jnp.int32), jnp.zeros((5,), jnp.int32)]),
    ])
    token_type_ids = jnp.zeros((BATCH, SEQ), jnp.int32)

    out = esimcse_forward(params, input_ids, attention_mask, token_type_ids)
    out = jax.block_until_ready(out)
    assert out.shape == (BATCH, HIDDEN) and out.dtype == jnp.float32
    assert bool(jnp.all(jnp.isfinite(out)))
    print("KERNEL_OK")
</pallas_src>

<mosaic_0001>
module attributes {stable_mosaic.version = 11 : i64} {
  func.func @fused_encoder_kernel(%arg0: memref<32x128xf32, #tpu.memory_space<vmem>>, %arg1: memref<8x1x16xf32, #tpu.memory_space<vmem>>, %arg2: memref<2x128x384xbf16, #tpu.memory_space<vmem>>, %arg3: memref<2x1x384xf32, #tpu.memory_space<vmem>>, %arg4: memref<2x128x128xbf16, #tpu.memory_space<vmem>>, %arg5: memref<2x1x128xf32, #tpu.memory_space<vmem>>, %arg6: memref<2x1x128xf32, #tpu.memory_space<vmem>>, %arg7: memref<2x1x128xf32, #tpu.memory_space<vmem>>, %arg8: memref<2x128x256xbf16, #tpu.memory_space<vmem>>, %arg9: memref<2x1x256xf32, #tpu.memory_space<vmem>>, %arg10: memref<2x256x128xbf16, #tpu.memory_space<vmem>>, %arg11: memref<2x1x128xf32, #tpu.memory_space<vmem>>, %arg12: memref<2x1x128xf32, #tpu.memory_space<vmem>>, %arg13: memref<2x1x128xf32, #tpu.memory_space<vmem>>, %arg14: memref<128x128xbf16, #tpu.memory_space<vmem>>, %arg15: memref<1x128xf32, #tpu.memory_space<vmem>>, %arg16: memref<2x128xf32, #tpu.memory_space<vmem>>) attributes {dimension_semantics = [], scalar_prefetch = 0 : i64, scratch_operands = 0 : i64, tpu.core_type = #tpu.core_type<tc>} {
    %c0 = arith.constant 0 : index
    %c0_0 = arith.constant 0 : index
    %0 = vector.load %arg0[%c0, %c0_0] : memref<32x128xf32, #tpu.memory_space<vmem>>, vector<32x128xf32>
    %c0_1 = arith.constant 0 : index
    %c0_2 = arith.constant 0 : index
    %c0_3 = arith.constant 0 : index
    %1 = vector.load %arg1[%c0_1, %c0_2, %c0_3] : memref<8x1x16xf32, #tpu.memory_space<vmem>>, vector<8x1x16xf32>
    %2 = arith.truncf %0 : vector<32x128xf32> to vector<32x128xbf16>
    %c0_4 = arith.constant 0 : index
    %c0_5 = arith.constant 0 : index
    %c0_6 = arith.constant 0 : index
    %3 = vector.load %arg2[%c0_4, %c0_5, %c0_6] : memref<2x128x384xbf16, #tpu.memory_space<vmem>>, vector<1x128x384xbf16>
    %4 = vector.shape_cast %3 : vector<1x128x384xbf16> to vector<128x384xbf16>
    %cst = arith.constant dense<0.000000e+00> : vector<32x384xf32>
    %5 = tpu.matmul %2, %4, %cst {dimension_numbers = #tpu.dot_dimension_numbers<[1], [0], [0], [1], [0, 0, 1, 1], [], []>} : vector<32x128xbf16>, vector<128x384xbf16>, vector<32x384xf32> -> vector<32x384xf32>
    %c0_7 = arith.constant 0 : index
    %c0_8 = arith.constant 0 : index
    %c0_9 = arith.constant 0 : index
    %6 = vector.load %arg3[%c0_7, %c0_8, %c0_9] : memref<2x1x384xf32, #tpu.memory_space<vmem>>, vector<1x1x384xf32>
    %7 = vector.shape_cast %6 : vector<1x1x384xf32> to vector<1x384xf32>
    %8 = vector.broadcast %7 : vector<1x384xf32> to vector<32x384xf32>
    %9 = arith.addf %5, %8 : vector<32x384xf32>
    %10 = vector.extract_strided_slice %9 {offsets = [0, 0], sizes = [32, 128], strides = [1, 1]} : vector<32x384xf32> to vector<32x128xf32>
    %11 = vector.extract_strided_slice %10 {offsets = [0, 0], sizes = [32, 32], strides = [1, 1]} : vector<32x128xf32> to vector<32x32xf32>
    %12 = vector.extract_strided_slice %10 {offsets = [0, 32], sizes = [32, 32], strides = [1, 1]} : vector<32x128xf32> to vector<32x32xf32>
    %13 = vector.extract_strided_slice %10 {offsets = [0, 64], sizes = [32, 32], strides = [1, 1]} : vector<32x128xf32> to vector<32x32xf32>
    %14 = vector.extract_strided_slice %10 {offsets = [0, 96], sizes = [32, 32], strides = [1, 1]} : vector<32x128xf32> to vector<32x32xf32>
    %15 = vector.shape_cast %11 : vector<32x32xf32> to vector<1x32x32xf32>
    %16 = vector.shape_cast %12 : vector<32x32xf32> to vector<1x32x32xf32>
    %17 = vector.shape_cast %13 : vector<32x32xf32> to vector<1x32x32xf32>
    %18 = vector.shape_cast %14 : vector<32x32xf32> to vector<1x32x32xf32>
    %19 = tpu.concatenate %15, %16, %17, %18 in 0 : vector<1x32x32xf32>, vector<1x32x32xf32>, vector<1x32x32xf32>, vector<1x32x32xf32> -> vector<4x32x32xf32>
    %20 = vector.shape_cast %19 : vector<4x32x32xf32> to vector<8x16x32xf32>
    %21 = arith.truncf %20 : vector<8x16x32xf32> to vector<8x16x32xbf16>
    %22 = vector.extract_strided_slice %9 {offsets = [0, 128], sizes = [32, 128], strides = [1, 1]} : vector<32x384xf32> to vector<32x128xf32>
    %23 = vector.extract_strided_slice %22 {offsets = [0, 0], sizes = [32, 32], strides = [1, 1]} : vector<32x128xf32> to vector<32x32xf32>
    %24 = vector.extract_strided_slice %22 {offsets = [0, 32], sizes = [32, 32], strides = [1, 1]} : vector<32x128xf32> to vector<32x32xf32>
    %25 = vector.extract_strided_slice %22 {offsets = [0, 64], sizes = [32, 32], strides = [1, 1]} : vector<32x128xf32> to vector<32x32xf32>
    %26 = vector.extract_strided_slice %22 {offsets = [0, 96], sizes = [32, 32], strides = [1, 1]} : vector<32x128xf32> to vector<32x32xf32>
    %27 = vector.shape_cast %23 : vector<32x32xf32> to vector<1x32x32xf32>
    %28 = vector.shape_cast %24 : vector<32x32xf32> to vector<1x32x32xf32>
    %29 = vector.shape_cast %25 : vector<32x32xf32> to vector<1x32x32xf32>
    %30 = vector.shape_cast %26 : vector<32x32xf32> to vector<1x32x32xf32>
    %31 = tpu.concatenate %27, %28, %29, %30 in 0 : vector<1x32x32xf32>, vector<1x32x32xf32>, vector<1x32x32xf32>, vector<1x32x32xf32> -> vector<4x32x32xf32>
    %32 = vector.shape_cast %31 : vector<4x32x32xf32> to vector<8x16x32xf32>
    %33 = arith.truncf %32 : vector<8x16x32xf32> to vector<8x16x32xbf16>
    %34 = vector.extract_strided_slice %9 {offsets = [0, 256], sizes = [32, 128], strides = [1, 1]} : vector<32x384xf32> to vector<32x128xf32>
    %35 = vector.extract_strided_slice %34 {offsets = [0, 0], sizes = [32, 32], strides = [1, 1]} : vector<32x128xf32> to vector<32x32xf32>
    %36 = vector.extract_strided_slice %34 {offsets = [0, 32], sizes = [32, 32], strides = [1, 1]} : vector<32x128xf32> to vector<32x32xf32>
    %37 = vector.extract_strided_slice %34 {offsets = [0, 64], sizes = [32, 32], strides = [1, 1]} : vector<32x128xf32> to vector<32x32xf32>
    %38 = vector.extract_strided_slice %34 {offsets = [0, 96], sizes = [32, 32], strides = [1, 1]} : vector<32x128xf32> to vector<32x32xf32>
    %39 = vector.shape_cast %35 : vector<32x32xf32> to vector<1x32x32xf32>
    %40 = vector.shape_cast %36 : vector<32x32xf32> to vector<1x32x32xf32>
    %41 = vector.shape_cast %37 : vector<32x32xf32> to vector<1x32x32xf32>
    %42 = vector.shape_cast %38 : vector<32x32xf32> to vector<1x32x32xf32>
    %43 = tpu.concatenate %39, %40, %41, %42 in 0 : vector<1x32x32xf32>, vector<1x32x32xf32>, vector<1x32x32xf32>, vector<1x32x32xf32> -> vector<4x32x32xf32>
    %44 = vector.shape_cast %43 : vector<4x32x32xf32> to vector<8x16x32xf32>
    %45 = arith.truncf %44 : vector<8x16x32xf32> to vector<8x16x32xbf16>
    "tpu.trace_start"() <{level = 10 : i32, message = "bqd,bkd->bqk"}> : () -> ()
    %cst_10 = arith.constant dense<0.000000e+00> : vector<8x16x16xf32>
    %46 = tpu.matmul %21, %33, %cst_10 {dimension_numbers = #tpu.dot_dimension_numbers<[2], [2], [1], [1], [0, 0, 0, 1, 1, 1], [0], [0]>} : vector<8x16x32xbf16>, vector<8x16x32xbf16>, vector<8x16x16xf32> -> vector<8x16x16xf32>
    "tpu.trace_stop"() : () -> ()
    %cst_11 = arith.constant 0.176776692 : f32
    %47 = vector.broadcast %cst_11 : f32 to vector<8x16x16xf32>
    %48 = arith.mulf %46, %47 : vector<8x16x16xf32>
    %49 = vector.broadcast %1 : vector<8x1x16xf32> to vector<8x16x16xf32>
    %50 = arith.addf %48, %49 : vector<8x16x16xf32>
    %cst_12 = arith.constant dense<0xFF800000> : vector<8x16xf32>
    %51 = vector.multi_reduction <maximumf>, %50, %cst_12 [2] : vector<8x16x16xf32> to vector<8x16xf32>
    %52 = vector.shape_cast %51 : vector<8x16xf32> to vector<8x16x1xf32>
    %53 = vector.broadcast %52 : vector<8x16x1xf32> to vector<8x16x16xf32>
    %54 = arith.subf %50, %53 : vector<8x16x16xf32>
    %55 = math.exp %54 : vector<8x16x16xf32>
    %cst_13 = arith.constant dense<0.000000e+00> : vector<8x16xf32>
    %56 = vector.multi_reduction <add>, %55, %cst_13 [2] : vector<8x16x16xf32> to vector<8x16xf32>
    %57 = vector.shape_cast %56 : vector<8x16xf32> to vector<8x16x1xf32>
    %58 = tpu.reciprocal %57 {approx = true} : vector<8x16x1xf32> -> vector<8x16x1xf32>
    %59 = vector.broadcast %58 : vector<8x16x1xf32> to vector<8x16x16xf32>
    %60 = arith.mulf %55, %59 : vector<8x16x16xf32>
    %61 = arith.truncf %60 : vector<8x16x16xf32> to vector<8x16x16xbf16>
    "tpu.trace_start"() <{level = 10 : i32, message = "bqk,bkd->bqd"}> : () -> ()
    %cst_14 = arith.constant dense<0.000000e+00> : vector<8x16x32xf32>
    %62 = tpu.matmul %61, %45, %cst_14 {dimension_numbers = #tpu.dot_dimension_numbers<[2], [1], [1], [2], [0, 0, 0, 1, 1, 2], [0], [0]>} : vector<8x16x16xbf16>, vector<8x16x32xbf16>, vector<8x16x32xf32> -> vector<8x16x32xf32>
    "tpu.trace_stop"() : () -> ()
    %63 = vector.shape_cast %62 : vector<8x16x32xf32> to vector<4x32x32xf32>
    %64 = vector.extract_strided_slice %63 {offsets = [0, 0, 0], sizes = [1, 32, 32], strides = [1, 1, 1]} : vector<4x32x32xf32> to vector<1x32x32xf32>
    %65 = vector.shape_cast %64 : vector<1x32x32xf32> to vector<32x32xf32>
    %66 = vector.extract_strided_slice %63 {offsets = [1, 0, 0], sizes = [1, 32, 32], strides = [1, 1, 1]} : vector<4x32x32xf32> to vector<1x32x32xf32>
    %67 = vector.shape_cast %66 : vector<1x32x32xf32> to vector<32x32xf32>
    %68 = vector.extract_strided_slice %63 {offsets = [2, 0, 0], sizes = [1, 32, 32], strides = [1, 1, 1]} : vector<4x32x32xf32> to vector<1x32x32xf32>
    %69 = vector.shape_cast %68 : vector<1x32x32xf32> to vector<32x32xf32>
    %70 = vector.extract_strided_slice %63 {offsets = [3, 0, 0], sizes = [1, 32, 32], strides = [1, 1, 1]} : vector<4x32x32xf32> to vector<1x32x32xf32>
    %71 = vector.shape_cast %70 : vector<1x32x32xf32> to vector<32x32xf32>
    %72 = tpu.concatenate %65, %67, %69, %71 in 1 : vector<32x32xf32>, vector<32x32xf32>, vector<32x32xf32>, vector<32x32xf32> -> vector<32x128xf32>
    %73 = arith.truncf %72 : vector<32x128xf32> to vector<32x128xbf16>
    %c0_15 = arith.constant 0 : index
    %c0_16 = arith.constant 0 : index
    %c0_17 = arith.constant 0 : index
    %74 = vector.load %arg4[%c0_15, %c0_16, %c0_17] : memref<2x128x128xbf16, #tpu.memory_space<vmem>>, vector<1x128x128xbf16>
    %75 = vector.shape_cast %74 : vector<1x128x128xbf16> to vector<128x128xbf16>
    %cst_18 = arith.constant dense<0.000000e+00> : vector<32x128xf32>
    %76 = tpu.matmul %73, %75, %cst_18 {dimension_numbers = #tpu.dot_dimension_numbers<[1], [0], [0], [1], [0, 0, 1, 1], [], []>} : vector<32x128xbf16>, vector<128x128xbf16>, vector<32x128xf32> -> vector<32x128xf32>
    %c0_19 = arith.constant 0 : index
    %c0_20 = arith.constant 0 : index
    %c0_21 = arith.constant 0 : index
    %77 = vector.load %arg5[%c0_19, %c0_20, %c0_21] : memref<2x1x128xf32, #tpu.memory_space<vmem>>, vector<1x1x128xf32>
    %78 = vector.shape_cast %77 : vector<1x1x128xf32> to vector<1x128xf32>
    %79 = vector.broadcast %78 : vector<1x128xf32> to vector<32x128xf32>
    %80 = arith.addf %76, %79 : vector<32x128xf32>
    %81 = arith.addf %0, %80 : vector<32x128xf32>
    %c0_22 = arith.constant 0 : index
    %c0_23 = arith.constant 0 : index
    %c0_24 = arith.constant 0 : index
    %82 = vector.load %arg6[%c0_22, %c0_23, %c0_24] : memref<2x1x128xf32, #tpu.memory_space<vmem>>, vector<1x1x128xf32>
    %83 = vector.shape_cast %82 : vector<1x1x128xf32> to vector<1x128xf32>
    %c0_25 = arith.constant 0 : index
    %c0_26 = arith.constant 0 : index
    %c0_27 = arith.constant 0 : index
    %84 = vector.load %arg7[%c0_25, %c0_26, %c0_27] : memref<2x1x128xf32, #tpu.memory_space<vmem>>, vector<1x1x128xf32>
    %85 = vector.shape_cast %84 : vector<1x1x128xf32> to vector<1x128xf32>
    %cst_28 = arith.constant dense<0.000000e+00> : vector<32xf32>
    %86 = vector.multi_reduction <add>, %81, %cst_28 [1] : vector<32x128xf32> to vector<32xf32>
    %87 = vector.shape_cast %86 : vector<32xf32> to vector<32x1xf32>
    %cst_29 = arith.constant 1.280000e+02 : f32
    %88 = vector.broadcast %cst_29 : f32 to vector<32x1xf32>
    %89 = arith.divf %87, %88 : vector<32x1xf32>
    %90 = vector.broadcast %89 : vector<32x1xf32> to vector<32x128xf32>
    %91 = arith.subf %81, %90 : vector<32x128xf32>
    %92 = arith.mulf %91, %91 : vector<32x128xf32>
    %cst_30 = arith.constant dense<0.000000e+00> : vector<32xf32>
    %93 = vector.multi_reduction <add>, %92, %cst_30 [1] : vector<32x128xf32> to vector<32xf32>
    %94 = vector.shape_cast %93 : vector<32xf32> to vector<32x1xf32>
    %cst_31 = arith.constant 1.280000e+02 : f32
    %95 = vector.broadcast %cst_31 : f32 to vector<32x1xf32>
    %96 = arith.divf %94, %95 : vector<32x1xf32>
    %97 = vector.broadcast %89 : vector<32x1xf32> to vector<32x128xf32>
    %98 = arith.subf %81, %97 : vector<32x128xf32>
    %cst_32 = arith.constant 9.99999996E-13 : f32
    %99 = vector.broadcast %cst_32 : f32 to vector<32x1xf32>
    %100 = arith.addf %96, %99 : vector<32x1xf32>
    %101 = math.rsqrt %100 : vector<32x1xf32>
    %102 = vector.broadcast %101 : vector<32x1xf32> to vector<32x128xf32>
    %103 = arith.mulf %98, %102 : vector<32x128xf32>
    %104 = vector.broadcast %83 : vector<1x128xf32> to vector<32x128xf32>
    %105 = arith.mulf %103, %104 : vector<32x128xf32>
    %106 = vector.broadcast %85 : vector<1x128xf32> to vector<32x128xf32>
    %107 = arith.addf %105, %106 : vector<32x128xf32>
    %108 = arith.truncf %107 : vector<32x128xf32> to vector<32x128xbf16>
    %c0_33 = arith.constant 0 : index
    %c0_34 = arith.constant 0 : index
    %c0_35 = arith.constant 0 : index
    %109 = vector.load %arg8[%c0_33, %c0_34, %c0_35] : memref<2x128x256xbf16, #tpu.memory_space<vmem>>, vector<1x128x256xbf16>
    %110 = vector.shape_cast %109 : vector<1x128x256xbf16> to vector<128x256xbf16>
    %cst_36 = arith.constant dense<0.000000e+00> : vector<32x256xf32>
    %111 = tpu.matmul %108, %110, %cst_36 {dimension_numbers = #tpu.dot_dimension_numbers<[1], [0], [0], [1], [0, 0, 1, 1], [], []>} : vector<32x128xbf16>, vector<128x256xbf16>, vector<32x256xf32> -> vector<32x256xf32>
    %c0_37 = arith.constant 0 : index
    %c0_38 = arith.constant 0 : index
    %c0_39 = arith.constant 0 : index
    %112 = vector.load %arg9[%c0_37, %c0_38, %c0_39] : memref<2x1x256xf32, #tpu.memory_space<vmem>>, vector<1x1x256xf32>
    %113 = vector.shape_cast %112 : vector<1x1x256xf32> to vector<1x256xf32>
    %114 = vector.broadcast %113 : vector<1x256xf32> to vector<32x256xf32>
    %115 = arith.addf %111, %114 : vector<32x256xf32>
    %cst_40 = arith.constant 5.000000e-01 : f32
    %116 = vector.broadcast %cst_40 : f32 to vector<32x256xf32>
    %117 = arith.mulf %116, %115 : vector<32x256xf32>
    %cst_41 = arith.constant 4.471500e-02 : f32
    %118 = vector.broadcast %cst_41 : f32 to vector<32x256xf32>
    %119 = arith.mulf %118, %115 : vector<32x256xf32>
    %120 = arith.mulf %119, %115 : vector<32x256xf32>
    %121 = arith.mulf %120, %115 : vector<32x256xf32>
    %122 = arith.addf %115, %121 : vector<32x256xf32>
    %cst_42 = arith.constant 0.797884583 : f32
    %123 = vector.broadcast %cst_42 : f32 to vector<32x256xf32>
    %124 = arith.mulf %123, %122 : vector<32x256xf32>
    %125 = math.tanh %124 : vector<32x256xf32>
    %cst_43 = arith.constant 1.000000e+00 : f32
    %126 = vector.broadcast %cst_43 : f32 to vector<32x256xf32>
    %127 = arith.addf %126, %125 : vector<32x256xf32>
    %128 = arith.mulf %117, %127 : vector<32x256xf32>
    %129 = arith.truncf %128 : vector<32x256xf32> to vector<32x256xbf16>
    %c0_44 = arith.constant 0 : index
    %c0_45 = arith.constant 0 : index
    %c0_46 = arith.constant 0 : index
    %130 = vector.load %arg10[%c0_44, %c0_45, %c0_46] : memref<2x256x128xbf16, #tpu.memory_space<vmem>>, vector<1x256x128xbf16>
    %131 = vector.shape_cast %130 : vector<1x256x128xbf16> to vector<256x128xbf16>
    %cst_47 = arith.constant dense<0.000000e+00> : vector<32x128xf32>
    %132 = tpu.matmul %129, %131, %cst_47 {dimension_numbers = #tpu.dot_dimension_numbers<[1], [0], [0], [1], [0, 0, 1, 1], [], []>} : vector<32x256xbf16>, vector<256x128xbf16>, vector<32x128xf32> -> vector<32x128xf32>
    %c0_48 = arith.constant 0 : index
    %c0_49 = arith.constant 0 : index
    %c0_50 = arith.constant 0 : index
    %133 = vector.load %arg11[%c0_48, %c0_49, %c0_50] : memref<2x1x128xf32, #tpu.memory_space<vmem>>, vector<1x1x128xf32>
    %134 = vector.shape_cast %133 : vector<1x1x128xf32> to vector<1x128xf32>
    %135 = vector.broadcast %134 : vector<1x128xf32> to vector<32x128xf32>
    %136 = arith.addf %132, %135 : vector<32x128xf32>
    %137 = arith.addf %107, %136 : vector<32x128xf32>
    %c0_51 = arith.constant 0 : index
    %c0_52 = arith.constant 0 : index
    %c0_53 = arith.constant 0 : index
    %138 = vector.load %arg12[%c0_51, %c0_52, %c0_53] : memref<2x1x128xf32, #tpu.memory_space<vmem>>, vector<1x1x128xf32>
    %139 = vector.shape_cast %138 : vector<1x1x128xf32> to vector<1x128xf32>
    %c0_54 = arith.constant 0 : index
    %c0_55 = arith.constant 0 : index
    %c0_56 = arith.constant 0 : index
    %140 = vector.load %arg13[%c0_54, %c0_55, %c0_56] : memref<2x1x128xf32, #tpu.memory_space<vmem>>, vector<1x1x128xf32>
    %141 = vector.shape_cast %140 : vector<1x1x128xf32> to vector<1x128xf32>
    %cst_57 = arith.constant dense<0.000000e+00> : vector<32xf32>
    %142 = vector.multi_reduction <add>, %137, %cst_57 [1] : vector<32x128xf32> to vector<32xf32>
    %143 = vector.shape_cast %142 : vector<32xf32> to vector<32x1xf32>
    %cst_58 = arith.constant 1.280000e+02 : f32
    %144 = vector.broadcast %cst_58 : f32 to vector<32x1xf32>
    %145 = arith.divf %143, %144 : vector<32x1xf32>
    %146 = vector.broadcast %145 : vector<32x1xf32> to vector<32x128xf32>
    %147 = arith.subf %137, %146 : vector<32x128xf32>
    %148 = arith.mulf %147, %147 : vector<32x128xf32>
    %cst_59 = arith.constant dense<0.000000e+00> : vector<32xf32>
    %149 = vector.multi_reduction <add>, %148, %cst_59 [1] : vector<32x128xf32> to vector<32xf32>
    %150 = vector.shape_cast %149 : vector<32xf32> to vector<32x1xf32>
    %cst_60 = arith.constant 1.280000e+02 : f32
    %151 = vector.broadcast %cst_60 : f32 to vector<32x1xf32>
    %152 = arith.divf %150, %151 : vector<32x1xf32>
    %153 = vector.broadcast %145 : vector<32x1xf32> to vector<32x128xf32>
    %154 = arith.subf %137, %153 : vector<32x128xf32>
    %cst_61 = arith.constant 9.99999996E-13 : f32
    %155 = vector.broadcast %cst_61 : f32 to vector<32x1xf32>
    %156 = arith.addf %152, %155 : vector<32x1xf32>
    %157 = math.rsqrt %156 : vector<32x1xf32>
    %158 = vector.broadcast %157 : vector<32x1xf32> to vector<32x128xf32>
    %159 = arith.mulf %154, %158 : vector<32x128xf32>
    %160 = vector.broadcast %139 : vector<1x128xf32> to vector<32x128xf32>
    %161 = arith.mulf %159, %160 : vector<32x128xf32>
    %162 = vector.broadcast %141 : vector<1x128xf32> to vector<32x128xf32>
    %163 = arith.addf %161, %162 : vector<32x128xf32>
    %164 = arith.truncf %163 : vector<32x128xf32> to vector<32x128xbf16>
    %c1 = arith.constant 1 : index
    %c0_62 = arith.constant 0 : index
    %c0_63 = arith.constant 0 : index
    %165 = vector.load %arg2[%c1, %c0_62, %c0_63] : memref<2x128x384xbf16, #tpu.memory_space<vmem>>, vector<1x128x384xbf16>
    %166 = vector.shape_cast %165 : vector<1x128x384xbf16> to vector<128x384xbf16>
    %cst_64 = arith.constant dense<0.000000e+00> : vector<32x384xf32>
    %167 = tpu.matmul %164, %166, %cst_64 {dimension_numbers = #tpu.dot_dimension_numbers<[1], [0], [0], [1], [0, 0, 1, 1], [], []>} : vector<32x128xbf16>, vector<128x384xbf16>, vector<32x384xf32> -> vector<32x384xf32>
    %c1_65 = arith.constant 1 : index
    %c0_66 = arith.constant 0 : index
    %c0_67 = arith.constant 0 : index
    %168 = vector.load %arg3[%c1_65, %c0_66, %c0_67] : memref<2x1x384xf32, #tpu.memory_space<vmem>>, vector<1x1x384xf32>
    %169 = vector.shape_cast %168 : vector<1x1x384xf32> to vector<1x384xf32>
    %170 = vector.broadcast %169 : vector<1x384xf32> to vector<32x384xf32>
    %171 = arith.addf %167, %170 : vector<32x384xf32>
    %172 = vector.extract_strided_slice %171 {offsets = [0, 0], sizes = [32, 128], strides = [1, 1]} : vector<32x384xf32> to vector<32x128xf32>
    %173 = vector.extract_strided_slice %172 {offsets = [0, 0], sizes = [32, 32], strides = [1, 1]} : vector<32x128xf32> to vector<32x32xf32>
    %174 = vector.extract_strided_slice %172 {offsets = [0, 32], sizes = [32, 32], strides = [1, 1]} : vector<32x128xf32> to vector<32x32xf32>
    %175 = vector.extract_strided_slice %172 {offsets = [0, 64], sizes = [32, 32], strides = [1, 1]} : vector<32x128xf32> to vector<32x32xf32>
    %176 = vector.extract_strided_slice %172 {offsets = [0, 96], sizes = [32, 32], strides = [1, 1]} : vector<32x128xf32> to vector<32x32xf32>
    %177 = vector.shape_cast %173 : vector<32x32xf32> to vector<1x32x32xf32>
    %178 = vector.shape_cast %174 : vector<32x32xf32> to vector<1x32x32xf32>
    %179 = vector.shape_cast %175 : vector<32x32xf32> to vector<1x32x32xf32>
    %180 = vector.shape_cast %176 : vector<32x32xf32> to vector<1x32x32xf32>
    %181 = tpu.concatenate %177, %178, %179, %180 in 0 : vector<1x32x32xf32>, vector<1x32x32xf32>, vector<1x32x32xf32>, vector<1x32x32xf32> -> vector<4x32x32xf32>
    %182 = vector.shape_cast %181 : vector<4x32x32xf32> to vector<8x16x32xf32>
    %183 = arith.truncf %182 : vector<8x16x32xf32> to vector<8x16x32xbf16>
    %184 = vector.extract_strided_slice %171 {offsets = [0, 128], sizes = [32, 128], strides = [1, 1]} : vector<32x384xf32> to vector<32x128xf32>
    %185 = vector.extract_strided_slice %184 {offsets = [0, 0], sizes = [32, 32], strides = [1, 1]} : vector<32x128xf32> to vector<32x32xf32>
    %186 = vector.extract_strided_slice %184 {offsets = [0, 32], sizes = [32, 32], strides = [1, 1]} : vector<32x128xf32> to vector<32x32xf32>
    %187 = vector.extract_strided_slice %184 {offsets = [0, 64], sizes = [32, 32], strides = [1, 1]} : vector<32x128xf32> to vector<32x32xf32>
    %188 = vector.extract_strided_slice %184 {offsets = [0, 96], sizes = [32, 32], strides = [1, 1]} : vector<32x128xf32> to vector<32x32xf32>
    %189 = vector.shape_cast %185 : vector<32x32xf32> to vector<1x32x32xf32>
    %190 = vector.shape_cast %186 : vector<32x32xf32> to vector<1x32x32xf32>
    %191 = vector.shape_cast %187 : vector<32x32xf32> to vector<1x32x32xf32>
    %192 = vector.shape_cast %188 : vector<32x32xf32> to vector<1x32x32xf32>
    %193 = tpu.concatenate %189, %190, %191, %192 in 0 : vector<1x32x32xf32>, vector<1x32x32xf32>, vector<1x32x32xf32>, vector<1x32x32xf32> -> vector<4x32x32xf32>
    %194 = vector.shape_cast %193 : vector<4x32x32xf32> to vector<8x16x32xf32>
    %195 = arith.truncf %194 : vector<8x16x32xf32> to vector<8x16x32xbf16>
    %196 = vector.extract_strided_slice %171 {offsets = [0, 256], sizes = [32, 128], strides = [1, 1]} : vector<32x384xf32> to vector<32x128xf32>
    %197 = vector.extract_strided_slice %196 {offsets = [0, 0], sizes = [32, 32], strides = [1, 1]} : vector<32x128xf32> to vector<32x32xf32>
    %198 = vector.extract_strided_slice %196 {offsets = [0, 32], sizes = [32, 32], strides = [1, 1]} : vector<32x128xf32> to vector<32x32xf32>
    %199 = vector.extract_strided_slice %196 {offsets = [0, 64], sizes = [32, 32], strides = [1, 1]} : vector<32x128xf32> to vector<32x32xf32>
    %200 = vector.extract_strided_slice %196 {offsets = [0, 96], sizes = [32, 32], strides = [1, 1]} : vector<32x128xf32> to vector<32x32xf32>
    %201 = vector.shape_cast %197 : vector<32x32xf32> to vector<1x32x32xf32>
    %202 = vector.shape_cast %198 : vector<32x32xf32> to vector<1x32x32xf32>
    %203 = vector.shape_cast %199 : vector<32x32xf32> to vector<1x32x32xf32>
    %204 = vector.shape_cast %200 : vector<32x32xf32> to vector<1x32x32xf32>
    %205 = tpu.concatenate %201, %202, %203, %204 in 0 : vector<1x32x32xf32>, vector<1x32x32xf32>, vector<1x32x32xf32>, vector<1x32x32xf32> -> vector<4x32x32xf32>
    %206 = vector.shape_cast %205 : vector<4x32x32xf32> to vector<8x16x32xf32>
    %207 = arith.truncf %206 : vector<8x16x32xf32> to vector<8x16x32xbf16>
    "tpu.trace_start"() <{level = 10 : i32, message = "bqd,bkd->bqk"}> : () -> ()
    %cst_68 = arith.constant dense<0.000000e+00> : vector<8x16x16xf32>
    %208 = tpu.matmul %183, %195, %cst_68 {dimension_numbers = #tpu.dot_dimension_numbers<[2], [2], [1], [1], [0, 0, 0, 1, 1, 1], [0], [0]>} : vector<8x16x32xbf16>, vector<8x16x32xbf16>, vector<8x16x16xf32> -> vector<8x16x16xf32>
    "tpu.trace_stop"() : () -> ()
    %cst_69 = arith.constant 0.176776692 : f32
    %209 = vector.broadcast %cst_69 : f32 to vector<8x16x16xf32>
    %210 = arith.mulf %208, %209 : vector<8x16x16xf32>
    %211 = vector.broadcast %1 : vector<8x1x16xf32> to vector<8x16x16xf32>
    %212 = arith.addf %210, %211 : vector<8x16x16xf32>
    %cst_70 = arith.constant dense<0xFF800000> : vector<8x16xf32>
    %213 = vector.multi_reduction <maximumf>, %212, %cst_70 [2] : vector<8x16x16xf32> to vector<8x16xf32>
    %214 = vector.shape_cast %213 : vector<8x16xf32> to vector<8x16x1xf32>
    %215 = vector.broadcast %214 : vector<8x16x1xf32> to vector<8x16x16xf32>
    %216 = arith.subf %212, %215 : vector<8x16x16xf32>
    %217 = math.exp %216 : vector<8x16x16xf32>
    %cst_71 = arith.constant dense<0.000000e+00> : vector<8x16xf32>
    %218 = vector.multi_reduction <add>, %217, %cst_71 [2] : vector<8x16x16xf32> to vector<8x16xf32>
    %219 = vector.shape_cast %218 : vector<8x16xf32> to vector<8x16x1xf32>
    %220 = tpu.reciprocal %219 {approx = true} : vector<8x16x1xf32> -> vector<8x16x1xf32>
    %221 = vector.broadcast %220 : vector<8x16x1xf32> to vector<8x16x16xf32>
    %222 = arith.mulf %217, %221 : vector<8x16x16xf32>
    %223 = arith.truncf %222 : vector<8x16x16xf32> to vector<8x16x16xbf16>
    "tpu.trace_start"() <{level = 10 : i32, message = "bqk,bkd->bqd"}> : () -> ()
    %cst_72 = arith.constant dense<0.000000e+00> : vector<8x16x32xf32>
    %224 = tpu.matmul %223, %207, %cst_72 {dimension_numbers = #tpu.dot_dimension_numbers<[2], [1], [1], [2], [0, 0, 0, 1, 1, 2], [0], [0]>} : vector<8x16x16xbf16>, vector<8x16x32xbf16>, vector<8x16x32xf32> -> vector<8x16x32xf32>
    "tpu.trace_stop"() : () -> ()
    %225 = vector.shape_cast %224 : vector<8x16x32xf32> to vector<4x32x32xf32>
    %226 = vector.extract_strided_slice %225 {offsets = [0, 0, 0], sizes = [1, 32, 32], strides = [1, 1, 1]} : vector<4x32x32xf32> to vector<1x32x32xf32>
    %227 = vector.shape_cast %226 : vector<1x32x32xf32> to vector<32x32xf32>
    %228 = vector.extract_strided_slice %225 {offsets = [1, 0, 0], sizes = [1, 32, 32], strides = [1, 1, 1]} : vector<4x32x32xf32> to vector<1x32x32xf32>
    %229 = vector.shape_cast %228 : vector<1x32x32xf32> to vector<32x32xf32>
    %230 = vector.extract_strided_slice %225 {offsets = [2, 0, 0], sizes = [1, 32, 32], strides = [1, 1, 1]} : vector<4x32x32xf32> to vector<1x32x32xf32>
    %231 = vector.shape_cast %230 : vector<1x32x32xf32> to vector<32x32xf32>
    %232 = vector.extract_strided_slice %225 {offsets = [3, 0, 0], sizes = [1, 32, 32], strides = [1, 1, 1]} : vector<4x32x32xf32> to vector<1x32x32xf32>
    %233 = vector.shape_cast %232 : vector<1x32x32xf32> to vector<32x32xf32>
    %234 = tpu.concatenate %227, %229, %231, %233 in 1 : vector<32x32xf32>, vector<32x32xf32>, vector<32x32xf32>, vector<32x32xf32> -> vector<32x128xf32>
    %235 = arith.truncf %234 : vector<32x128xf32> to vector<32x128xbf16>
    %c1_73 = arith.constant 1 : index
    %c0_74 = arith.constant 0 : index
    %c0_75 = arith.constant 0 : index
    %236 = vector.load %arg4[%c1_73, %c0_74, %c0_75] : memref<2x128x128xbf16, #tpu.memory_space<vmem>>, vector<1x128x128xbf16>
    %237 = vector.shape_cast %236 : vector<1x128x128xbf16> to vector<128x128xbf16>
    %cst_76 = arith.constant dense<0.000000e+00> : vector<32x128xf32>
    %238 = tpu.matmul %235, %237, %cst_76 {dimension_numbers = #tpu.dot_dimension_numbers<[1], [0], [0], [1], [0, 0, 1, 1], [], []>} : vector<32x128xbf16>, vector<128x128xbf16>, vector<32x128xf32> -> vector<32x128xf32>
    %c1_77 = arith.constant 1 : index
    %c0_78 = arith.constant 0 : index
    %c0_79 = arith.constant 0 : index
    %239 = vector.load %arg5[%c1_77, %c0_78, %c0_79] : memref<2x1x128xf32, #tpu.memory_space<vmem>>, vector<1x1x128xf32>
    %240 = vector.shape_cast %239 : vector<1x1x128xf32> to vector<1x128xf32>
    %241 = vector.broadcast %240 : vector<1x128xf32> to vector<32x128xf32>
    %242 = arith.addf %238, %241 : vector<32x128xf32>
    %243 = arith.addf %163, %242 : vector<32x128xf32>
    %c1_80 = arith.constant 1 : index
    %c0_81 = arith.constant 0 : index
    %c0_82 = arith.constant 0 : index
    %244 = vector.load %arg6[%c1_80, %c0_81, %c0_82] : memref<2x1x128xf32, #tpu.memory_space<vmem>>, vector<1x1x128xf32>
    %245 = vector.shape_cast %244 : vector<1x1x128xf32> to vector<1x128xf32>
    %c1_83 = arith.constant 1 : index
    %c0_84 = arith.constant 0 : index
    %c0_85 = arith.constant 0 : index
    %246 = vector.load %arg7[%c1_83, %c0_84, %c0_85] : memref<2x1x128xf32, #tpu.memory_space<vmem>>, vector<1x1x128xf32>
    %247 = vector.shape_cast %246 : vector<1x1x128xf32> to vector<1x128xf32>
    %cst_86 = arith.constant dense<0.000000e+00> : vector<32xf32>
    %248 = vector.multi_reduction <add>, %243, %cst_86 [1] : vector<32x128xf32> to vector<32xf32>
    %249 = vector.shape_cast %248 : vector<32xf32> to vector<32x1xf32>
    %cst_87 = arith.constant 1.280000e+02 : f32
    %250 = vector.broadcast %cst_87 : f32 to vector<32x1xf32>
    %251 = arith.divf %249, %250 : vector<32x1xf32>
    %252 = vector.broadcast %251 : vector<32x1xf32> to vector<32x128xf32>
    %253 = arith.subf %243, %252 : vector<32x128xf32>
    %254 = arith.mulf %253, %253 : vector<32x128xf32>
    %cst_88 = arith.constant dense<0.000000e+00> : vector<32xf32>
    %255 = vector.multi_reduction <add>, %254, %cst_88 [1] : vector<32x128xf32> to vector<32xf32>
    %256 = vector.shape_cast %255 : vector<32xf32> to vector<32x1xf32>
    %cst_89 = arith.constant 1.280000e+02 : f32
    %257 = vector.broadcast %cst_89 : f32 to vector<32x1xf32>
    %258 = arith.divf %256, %257 : vector<32x1xf32>
    %259 = vector.broadcast %251 : vector<32x1xf32> to vector<32x128xf32>
    %260 = arith.subf %243, %259 : vector<32x128xf32>
    %cst_90 = arith.constant 9.99999996E-13 : f32
    %261 = vector.broadcast %cst_90 : f32 to vector<32x1xf32>
    %262 = arith.addf %258, %261 : vector<32x1xf32>
    %263 = math.rsqrt %262 : vector<32x1xf32>
    %264 = vector.broadcast %263 : vector<32x1xf32> to vector<32x128xf32>
    %265 = arith.mulf %260, %264 : vector<32x128xf32>
    %266 = vector.broadcast %245 : vector<1x128xf32> to vector<32x128xf32>
    %267 = arith.mulf %265, %266 : vector<32x128xf32>
    %268 = vector.broadcast %247 : vector<1x128xf32> to vector<32x128xf32>
    %269 = arith.addf %267, %268 : vector<32x128xf32>
    %270 = arith.truncf %269 : vector<32x128xf32> to vector<32x128xbf16>
    %c1_91 = arith.constant 1 : index
    %c0_92 = arith.constant 0 : index
    %c0_93 = arith.constant 0 : index
    %271 = vector.load %arg8[%c1_91, %c0_92, %c0_93] : memref<2x128x256xbf16, #tpu.memory_space<vmem>>, vector<1x128x256xbf16>
    %272 = vector.shape_cast %271 : vector<1x128x256xbf16> to vector<128x256xbf16>
    %cst_94 = arith.constant dense<0.000000e+00> : vector<32x256xf32>
    %273 = tpu.matmul %270, %272, %cst_94 {dimension_numbers = #tpu.dot_dimension_numbers<[1], [0], [0], [1], [0, 0, 1, 1], [], []>} : vector<32x128xbf16>, vector<128x256xbf16>, vector<32x256xf32> -> vector<32x256xf32>
    %c1_95 = arith.constant 1 : index
    %c0_96 = arith.constant 0 : index
    %c0_97 = arith.constant 0 : index
    %274 = vector.load %arg9[%c1_95, %c0_96, %c0_97] : memref<2x1x256xf32, #tpu.memory_space<vmem>>, vector<1x1x256xf32>
    %275 = vector.shape_cast %274 : vector<1x1x256xf32> to vector<1x256xf32>
    %276 = vector.broadcast %275 : vector<1x256xf32> to vector<32x256xf32>
    %277 = arith.addf %273, %276 : vector<32x256xf32>
    %cst_98 = arith.constant 5.000000e-01 : f32
    %278 = vector.broadcast %cst_98 : f32 to vector<32x256xf32>
    %279 = arith.mulf %278, %277 : vector<32x256xf32>
    %cst_99 = arith.constant 4.471500e-02 : f32
    %280 = vector.broadcast %cst_99 : f32 to vector<32x256xf32>
    %281 = arith.mulf %280, %277 : vector<32x256xf32>
    %282 = arith.mulf %281, %277 : vector<32x256xf32>
    %283 = arith.mulf %282, %277 : vector<32x256xf32>
    %284 = arith.addf %277, %283 : vector<32x256xf32>
    %cst_100 = arith.constant 0.797884583 : f32
    %285 = vector.broadcast %cst_100 : f32 to vector<32x256xf32>
    %286 = arith.mulf %285, %284 : vector<32x256xf32>
    %287 = math.tanh %286 : vector<32x256xf32>
    %cst_101 = arith.constant 1.000000e+00 : f32
    %288 = vector.broadcast %cst_101 : f32 to vector<32x256xf32>
    %289 = arith.addf %288, %287 : vector<32x256xf32>
    %290 = arith.mulf %279, %289 : vector<32x256xf32>
    %291 = arith.truncf %290 : vector<32x256xf32> to vector<32x256xbf16>
    %c1_102 = arith.constant 1 : index
    %c0_103 = arith.constant 0 : index
    %c0_104 = arith.constant 0 : index
    %292 = vector.load %arg10[%c1_102, %c0_103, %c0_104] : memref<2x256x128xbf16, #tpu.memory_space<vmem>>, vector<1x256x128xbf16>
    %293 = vector.shape_cast %292 : vector<1x256x128xbf16> to vector<256x128xbf16>
    %cst_105 = arith.constant dense<0.000000e+00> : vector<32x128xf32>
    %294 = tpu.matmul %291, %293, %cst_105 {dimension_numbers = #tpu.dot_dimension_numbers<[1], [0], [0], [1], [0, 0, 1, 1], [], []>} : vector<32x256xbf16>, vector<256x128xbf16>, vector<32x128xf32> -> vector<32x128xf32>
    %c1_106 = arith.constant 1 : index
    %c0_107 = arith.constant 0 : index
    %c0_108 = arith.constant 0 : index
    %295 = vector.load %arg11[%c1_106, %c0_107, %c0_108] : memref<2x1x128xf32, #tpu.memory_space<vmem>>, vector<1x1x128xf32>
    %296 = vector.shape_cast %295 : vector<1x1x128xf32> to vector<1x128xf32>
    %297 = vector.broadcast %296 : vector<1x128xf32> to vector<32x128xf32>
    %298 = arith.addf %294, %297 : vector<32x128xf32>
    %299 = arith.addf %269, %298 : vector<32x128xf32>
    %c1_109 = arith.constant 1 : index
    %c0_110 = arith.constant 0 : index
    %c0_111 = arith.constant 0 : index
    %300 = vector.load %arg12[%c1_109, %c0_110, %c0_111] : memref<2x1x128xf32, #tpu.memory_space<vmem>>, vector<1x1x128xf32>
    %301 = vector.shape_cast %300 : vector<1x1x128xf32> to vector<1x128xf32>
    %c1_112 = arith.constant 1 : index
    %c0_113 = arith.constant 0 : index
    %c0_114 = arith.constant 0 : index
    %302 = vector.load %arg13[%c1_112, %c0_113, %c0_114] : memref<2x1x128xf32, #tpu.memory_space<vmem>>, vector<1x1x128xf32>
    %303 = vector.shape_cast %302 : vector<1x1x128xf32> to vector<1x128xf32>
    %cst_115 = arith.constant dense<0.000000e+00> : vector<32xf32>
    %304 = vector.multi_reduction <add>, %299, %cst_115 [1] : vector<32x128xf32> to vector<32xf32>
    %305 = vector.shape_cast %304 : vector<32xf32> to vector<32x1xf32>
    %cst_116 = arith.constant 1.280000e+02 : f32
    %306 = vector.broadcast %cst_116 : f32 to vector<32x1xf32>
    %307 = arith.divf %305, %306 : vector<32x1xf32>
    %308 = vector.broadcast %307 : vector<32x1xf32> to vector<32x128xf32>
    %309 = arith.subf %299, %308 : vector<32x128xf32>
    %310 = arith.mulf %309, %309 : vector<32x128xf32>
    %cst_117 = arith.constant dense<0.000000e+00> : vector<32xf32>
    %311 = vector.multi_reduction <add>, %310, %cst_117 [1] : vector<32x128xf32> to vector<32xf32>
    %312 = vector.shape_cast %311 : vector<32xf32> to vector<32x1xf32>
    %cst_118 = arith.constant 1.280000e+02 : f32
    %313 = vector.broadcast %cst_118 : f32 to vector<32x1xf32>
    %314 = arith.divf %312, %313 : vector<32x1xf32>
    %315 = vector.broadcast %307 : vector<32x1xf32> to vector<32x128xf32>
    %316 = arith.subf %299, %315 : vector<32x128xf32>
    %cst_119 = arith.constant 9.99999996E-13 : f32
    %317 = vector.broadcast %cst_119 : f32 to vector<32x1xf32>
    %318 = arith.addf %314, %317 : vector<32x1xf32>
    %319 = math.rsqrt %318 : vector<32x1xf32>
    %320 = vector.broadcast %319 : vector<32x1xf32> to vector<32x128xf32>
    %321 = arith.mulf %316, %320 : vector<32x128xf32>
    %322 = vector.broadcast %301 : vector<1x128xf32> to vector<32x128xf32>
    %323 = arith.mulf %321, %322 : vector<32x128xf32>
    %324 = vector.broadcast %303 : vector<1x128xf32> to vector<32x128xf32>
    %325 = arith.addf %323, %324 : vector<32x128xf32>
    %326 = vector.shape_cast %325 : vector<32x128xf32> to vector<2x16x128xf32>
    %327 = vector.extract_strided_slice %326 {offsets = [0, 0, 0], sizes = [2, 1, 128], strides = [1, 1, 1]} : vector<2x16x128xf32> to vector<2x1x128xf32>
    %328 = vector.shape_cast %327 : vector<2x1x128xf32> to vector<2x128xf32>
    %329 = arith.truncf %328 : vector<2x128xf32> to vector<2x128xbf16>
    %c0_120 = arith.constant 0 : index
    %c0_121 = arith.constant 0 : index
    %330 = vector.load %arg14[%c0_120, %c0_121] : memref<128x128xbf16, #tpu.memory_space<vmem>>, vector<128x128xbf16>
    %cst_122 = arith.constant dense<0.000000e+00> : vector<2x128xf32>
    %331 = tpu.matmul %329, %330, %cst_122 {dimension_numbers = #tpu.dot_dimension_numbers<[1], [0], [0], [1], [0, 0, 1, 1], [], []>} : vector<2x128xbf16>, vector<128x128xbf16>, vector<2x128xf32> -> vector<2x128xf32>
    %c0_123 = arith.constant 0 : index
    %c0_124 = arith.constant 0 : index
    %332 = vector.load %arg15[%c0_123, %c0_124] : memref<1x128xf32, #tpu.memory_space<vmem>>, vector<1x128xf32>
    %333 = vector.broadcast %332 : vector<1x128xf32> to vector<2x128xf32>
    %334 = arith.addf %331, %333 : vector<2x128xf32>
    %335 = math.tanh %334 : vector<2x128xf32>
    %c0_125 = arith.constant 0 : index
    %c0_126 = arith.constant 0 : index
    %336 = vector.load %arg16[%c0_125, %c0_126] : memref<2x128xf32, #tpu.memory_space<vmem>>, vector<2x128xf32>
    tpu.vector_store %arg16[%c0_125, %c0_126], %335 {strides = array<i32>} : memref<2x128xf32, #tpu.memory_space<vmem>>, vector<2x128xf32>,
    return
  }
}

</mosaic_0001>

<bundles_post_ra>
// kernel: esimcse_forward.1
= control target key start
LH: loop header
LB: loop body
LE: loop exit
PB: predicated region body
PF: predicated region fallthrough
CT: control target
= control target key end

     0   :  { %s7292_s0 = inlined_call_operand.vmem [shape: f32[32,128], index: 0, kind: input, shape index: {}]   ;;  %s7293_s1 = inlined_call_operand.vmem [shape: f32[8,1,16], index: 1, kind: input, shape index: {}]   ;;  %s7294_s2 = inlined_call_operand.vmem [shape: bf16[2,128,384], index: 2, kind: input, shape index: {}]   ;;  %s7295_s3 = inlined_call_operand.vmem [shape: f32[2,1,384], index: 3, kind: input, shape index: {}]   ;;  %s7296_s4 = inlined_call_operand.hbm [shape: bf16[2,128,128], index: 4, kind: input, shape index: {}]   ;;  %s7297_s5 = inlined_call_operand.vmem [shape: f32[2,1,128], index: 5, kind: input, shape index: {}]   ;;  %s7298_s6 = inlined_call_operand.vmem [shape: f32[2,1,128], index: 6, kind: input, shape index: {}]   ;;  %s7299_s7 = inlined_call_operand.vmem [shape: f32[2,1,128], index: 7, kind: input, shape index: {}]   ;;  %s7300_s8 = inlined_call_operand.vmem [shape: bf16[2,128,256], index: 8, kind: input, shape index: {}]   ;;  %s7301_s9 = inlined_call_operand.vmem [shape: f32[2,1,256], index: 9, kind: input, shape index: {}]   ;;  %s7302_s10 = inlined_call_operand.vmem [shape: bf16[2,256,128], index: 10, kind: input, shape index: {}]   ;;  %s7303_s11 = inlined_call_operand.vmem [shape: f32[2,1,128], index: 11, kind: input, shape index: {}]   ;;  %s7304_s12 = inlined_call_operand.vmem [shape: f32[2,1,128], index: 12, kind: input, shape index: {}]   ;;  %s7305_s13 = inlined_call_operand.vmem [shape: f32[2,1,128], index: 13, kind: input, shape index: {}]   ;;  %s7306_s14 = inlined_call_operand.hbm [shape: bf16[128,128], index: 14, kind: input, shape index: {}]   ;;  %s7307_s15 = inlined_call_operand.vmem [shape: f32[1,128], index: 15, kind: input, shape index: {}]   ;;  %s7308_s16 = inlined_call_operand.hbm [shape: f32[2,128], index: 16, kind: output, shape index: {}]  }
   0x1   :  { %7310 = sst [smem:[#allocation11_spill]] %s7292_s0 }
   0x2   :  { %21 = vsyncpa [#allocation3], 0 }
   0x3   :  { %22 = vsyncpa [#allocation6], 0 }
   0x4   :  { %23 = vsyncpa [#allocation4], 0  ;;  %s5922_s21 = smov [#allocation2]  }
   0x5   :  { %s37_s22 = sshll.u32 %s5922_s21, 4  ;;  %s38_s22 = int_to_ptr.vmem [resolvable:$true] %s37_s22 }
   0x6   :  { %s5864_s23 = scalar_lea.vmem %s38_s22, 2048  ;;  %p5869_p1 = scmp.lt.s32.totalorder %s38_s22, %s38_s22 }
   0x7   :  { %p5865_p0 = scmp.ne.s32.totalorder %s38_s22, %s5864_s23  ;;  %p5870_p2 = scmp.lt.s32.totalorder %s5864_s23, %s5864_s23 }
   0x9   :  { %p5871_p3 = por %p5870_p2, %p5869_p1 }
   0xb   :  { %p5872_p4 = pnand %p5871_p3, %p5865_p0 }
   0xd   :  { %5875 = shalt.err (!%p5872_p4)
}
   0xe   :  { %s5923_s24 = smov 64   ;;  %s5924_s25 = smov 4  }
   0xf   :  { %43 = dma.hbm_to_vmem [thread:$0]  %s7296_s4, 2048, %s38_s22, [#allocation3], %s5923_s24, %s5923_s24, %s5924_s25  }
  0x10   :  { %s5925_s28 = smov [#allocation5]  }
  0x11   :  { %s67_s29 = sshll.u32 %s5925_s28, 4  ;;  %s68_s29 = int_to_ptr.vmem [resolvable:$true] %s67_s29 }
  0x12   :  { %s5884_s30 = scalar_lea.vmem %s68_s29, 1024  ;;  %p5889_p6 = scmp.lt.s32.totalorder %s68_s29, %s68_s29 }
  0x13   :  { %p5885_p5 = scmp.ne.s32.totalorder %s68_s29, %s5884_s30  ;;  %p5890_p7 = scmp.lt.s32.totalorder %s5884_s30, %s5884_s30 }
  0x15   :  { %p5891_p8 = por %p5890_p7, %p5889_p6 }
  0x17   :  { %p5892_p9 = pnand %p5891_p8, %p5885_p5 }
  0x19   :  { %5895 = shalt.err (!%p5892_p9)
}
  0x1a   :  { %73 = dma.hbm_to_vmem [thread:$0]  %s7306_s14, 1024, %s68_s29, [#allocation6], %s5923_s24, %s5923_s24, %s5924_s25  }
  0x1b   :  { %5916 = dma.done.wait [#allocation3], 2048  }
  0x1c   :  { %5917 = vsyncadd [#allocation3], 4294965248 }
  0x1d   :  { %5918 = dma.done.wait [#allocation6], 1024  }
  0x1e   :  { %5919 = vsyncadd [#allocation6], 4294966272  ;;  %v5926_v0 = vmov 0   ;;  %v5486_v1 = vld [vmem:[%s7294_s2 + $0xac] ss:$12 sps:$4 sm:$0xff]   ;;  %s7311_s4 = sld [smem:[#allocation11_spill]]  ;;  %v131_v32 = vlaneseq }
  0x1f   :  { %306 = vmatprep.mubr.bf16.mxu0 %v5926_v0  ;;  %v5488_v2 = vld [vmem:[%s7294_s2 + $0xa8] ss:$12 sps:$4 sm:$0xff]   ;;  %274 = vmatprep.subr.bf16.mxu0 %v5486_v1  ;;  %v5491_v4 = vld [vmem:[%s7294_s2 + $0x90] ss:$12 sps:$4 sm:$0xff]   ;;  %v5494_v6 = vld [vmem:[%s7294_s2 + $0x78] ss:$12 sps:$4 sm:$0xff]  }
  0x20   :  { %v5489_v3 = vld [vmem:[%s7294_s2 + $0x94] ss:$12 sps:$4 sm:$0xff]   ;;  %275 = vmatpush1.bf16.msra.mxu0 %v5488_v2  ;;  %v5492_v5 = vld [vmem:[%s7294_s2 + $0x7c] ss:$12 sps:$4 sm:$0xff]   ;;  %v5495_v7 = vld [vmem:[%s7294_s2 + $0x64] ss:$12 sps:$4 sm:$0xff]  }
  0x21   :  { %276 = vmatprep.subr.bf16.mxu0 %v5489_v3  ;;  %v5497_v9 = vld [vmem:[%s7294_s2 + $0x60] ss:$12 sps:$4 sm:$0xff]   ;;  %v5510_v13 = vld [vmem:[%s7294_s2 + $0xb0] ss:$12 sps:$4 sm:$0xff]   ;;  %v5511_v14 = vld [vmem:[%s7294_s2 + $0x98] ss:$12 sps:$4 sm:$0xff]  }
  0x22   :  { %v5498_v10 = vld [vmem:[%s7294_s2 + $0x4c] ss:$12 sps:$4 sm:$0xff]   ;;  %v5500_v15 = vld [vmem:[%s7294_s2 + $0x48] ss:$12 sps:$4 sm:$0xff]   ;;  %4944 = vmatprep.subr.bf16.mxu1 %v5510_v13  ;;  %v5503_v18 = vld [vmem:[%s7294_s2 + $0x30] ss:$12 sps:$4 sm:$0xff]  }
  0x23   :  { %v5501_v16 = vld [vmem:[%s7294_s2 + $0x34] ss:$12 sps:$4 sm:$0xff]   ;;  %4945 = vmatpush3.bf16.msra.mxu1 %v5510_v13  ;;  %v5504_v19 = vld [vmem:[%s7294_s2 + $0x1c] ss:$12 sps:$4 sm:$0xff]   ;;  %v5506_v21 = vld [vmem:[%s7294_s2 + $0x18] ss:$12 sps:$4 sm:$0xff]  }
  0x24   :  { %277 = vmatpush1.bf16.msra.mxu0 %v5491_v4  ;;  %v83_v8 = vld [vmem:[%s7311_s4] sm:$0xff]  ;;  %v84_v11 = vld [vmem:[%s7311_s4 + $0x8] sm:$0xff]  ;;  %4946 = vmatprep.subr.bf16.mxu1 %v5511_v14  ;;  %v5514_v23 = vld [vmem:[%s7294_s2 + $0x50] ss:$12 sps:$4 sm:$0xff]   ;;  %v5927_v31 = vmov 0.0   ;;  %vm5928_vm0 = vmmov 0  }
  0x25   :  { %278 = vmatprep.subr.bf16.mxu0 %v5492_v5  ;;  %v95_v12 = vpack.c.bf16 %v84_v11, %v83_v8  ;;  %v5512_v17 = vld [vmem:[%s7294_s2 + $0x80] ss:$12 sps:$4 sm:$0xff]   ;;  %v5513_v20 = vld [vmem:[%s7294_s2 + $0x68] ss:$12 sps:$4 sm:$0xff]   ;;  %v5507_v22 = vld [vmem:[%s7294_s2 + $0x4] ss:$12 sps:$4 sm:$0xff]  }
  0x26   :  { %v5509_v24 = vld [vmem:[%s7294_s2] ss:$12 sps:$4 sm:$0xff]   ;;  %v5515_v25 = vld [vmem:[%s7294_s2 + $0x38] ss:$12 sps:$4 sm:$0xff]   ;;  %v85_v26 = vld [vmem:[%s7311_s4 + $0x10] sm:$0xff]  ;;  %v6119_v33 = vshrl.u32 %v131_v32, 7 }
  0x27   :  { %4960 = vmatprep.mubr.bf16.mxu1 %v95_v12  ;;  %4947 = vmatpush3.bf16.msra.mxu1 %v5511_v14  ;;  %v86_v27 = vld [vmem:[%s7311_s4 + $0x18] sm:$0xff]  ;;  %v5516_v29 = vld [vmem:[%s7294_s2 + $0x20] ss:$12 sps:$4 sm:$0xff]   ;;  %v5517_v30 = vld [vmem:[%s7294_s2 + $0x8] ss:$12 sps:$4 sm:$0xff]   ;;  %vm520_vm1 = vcmask 261120  }
  0x28   :  { %279 = vmatpush1.bf16.msra.mxu0 %v5494_v6  ;;  %4948 = vmatprep.subr.bf16.mxu1 %v5512_v17  ;;  %v96_v28 = vpack.c.bf16 %v86_v27, %v85_v26  ;;  %v6122_v34 = vsub.s32 0, %v6119_v33  ;;  %v6127_v35 = vld [vmem:[%s7295_s3] sm:$0x7]  ;;  %v6130_v36 = vsub.s32 1, %v6119_v33  ;;  %s5929_s30 = smov 96   ;;  %s5930_s0 = smov 32  }
  0x29   :  { %280 = vmatprep.subr.bf16.mxu0 %v5495_v7  ;;  %v141_v26 = vsub.s32 2, %v6119_v33  ;;  %vm977_vm2 = vcmask 130048   ;;  %vm1566_vm3 = vcmask 523264   ;;  %vm1571_vm4 = vcmask 785408  }
  0x2a   :  { %v134_v38 = vrot.slane %v6127_v35, %v6122_v34  ;;  %v138_v40 = vrot.slane %v6127_v35, %v6130_v36  ;;  %vm4388_vm5 = vcmask 1041409  }
  0x2b   :  { %4949 = vmatpush3.bf16.msra.mxu1 %v5512_v17 }
  0x2c   :  { %281 = vmatpush1.bf16.msra.mxu0 %v5497_v9  ;;  %4950 = vmatprep.subr.bf16.mxu1 %v5513_v20 }
  0x2d   :  { %282 = vmatprep.subr.bf16.mxu0 %v5498_v10 }
  0x2f   :  { %4951 = vmatpush3.bf16.msra.mxu1 %v5513_v20 }
  0x30   :  { %283 = vmatpush1.bf16.msra.mxu0 %v5500_v15  ;;  %4952 = vmatprep.subr.bf16.mxu1 %v5514_v23 }
  0x31   :  { %284 = vmatprep.subr.bf16.mxu0 %v5501_v16 }
  0x33   :  { %4953 = vmatpush3.bf16.msra.mxu1 %v5514_v23 }
  0x34   :  { %285 = vmatpush1.bf16.msra.mxu0 %v5503_v18  ;;  %4954 = vmatprep.subr.bf16.mxu1 %v5515_v25 }
  0x35   :  { %286 = vmatprep.subr.bf16.mxu0 %v5504_v19 }
  0x37   :  { %4955 = vmatpush3.bf16.msra.mxu1 %v5515_v25 }
  0x38   :  { %287 = vmatpush1.bf16.msra.mxu0 %v5506_v21  ;;  %4956 = vmatprep.subr.bf16.mxu1 %v5516_v29 }
  0x39   :  { %288 = vmatprep.subr.bf16.mxu0 %v5507_v22 }
  0x3b   :  { %4957 = vmatpush3.bf16.msra.mxu1 %v5516_v29 }
  0x3c   :  { %289 = vmatpush1.bf16.msra.mxu0 %v5509_v24  ;;  %4958 = vmatprep.subr.bf16.mxu1 %v5517_v30 }
  0x3d   :  { %4970 = vmatprep.subr.bf16.mxu0 %v5927_v31 }
  0x3f   :  { %307 = vmatmul.mubr.bf16.vlgmr.msra.gmra.mxu0 %v95_v12  ;;  %4959 = vmatpush3.bf16.msra.mxu1 %v5517_v30 }
  0x40   :  { %316 = vmatprep.mubr.bf16.mxu0 %v5926_v0  ;;  %4964 = vmatprep.subr.bf16.mxu1 %v5927_v31 }
  0x42   :  { %4961 = vmatmul.mubr.bf16.vlgmr.msra.gmra.mxu1 %v96_v28 }
  0x43   :  { %4966 = vmatprep.mubr.msk.bf16.mxu1 %vm5928_vm0, %v5927_v31 }
  0x47   :  { %317 = vmatmul.mubr.bf16.gmra.mxu0 %v96_v28 }
  0x48   :  { %4972 = vmatprep.mubr.msk.bf16.mxu0 %vm5928_vm0, %v5927_v31 }
  0xff   :  { %v308_v37 = vpop.f32.mrf.mxu0 }
 0x100   :  { %v309_v42 = vadd.f32 %v308_v37, %v134_v38 }
 0x101   :  { %v310_v39 = vpop.f32.mrf.mxu0 }
 0x102   :  { %v311_v45 = vadd.f32 %v310_v39, %v138_v40  ;;  %v6160_v18 = vpop.f32.mrf.mxu1 }
 0x103   :  { %v312_v41 = vpop.f32.mrf.mxu0 }
 0x104   :  { %v313_v43 = vadd.f32 %v312_v41, %v134_v38  ;;  %v361_v27 = vpop.f32.mrf.mxu1 }
 0x105   :  { %v314_v44 = vpop.f32.mrf.mxu0 }
 0x106   :  { %v315_v46 = vadd.f32 %v314_v44, %v138_v40  ;;  %v5256_v47 = vpack.i.bf16 %v313_v43, %v309_v42  ;;  %v416_v60 = vpack.c.bf16 %v313_v43, %v309_v42  ;;  %v142_v42 = vrot.slane %v6127_v35, %v141_v26  ;;  %v4963_v43 = vpop.f32.mrf.mxu1 }
 0x107   :  { %v318_v48 = vpop.f32.mrf.mxu0 }
 0x108   :  { %5257 = vrot.lane.b32.xlu1 %v5256_v47, %s5929_s30  ;;  %v5246_v49 = vpack.i.bf16 %v315_v46, %v311_v45  ;;  %v464_v50 = vpack.c.bf16 %v315_v46, %v311_v45  ;;  %v319_v61 = vadd.f32 %v318_v48, %v134_v38 }
 0x109   :  { %v320_v51 = vpop.f32.mrf.mxu0 }
 0x10a   :  { %5247 = vrot.lane.b32.xlu0 %v5246_v49, %s5929_s30  ;;  %v525_v52 = vsel %vm520_vm1, %v464_v50, 0  ;;  %v321_v55 = vadd.f32 %v320_v51, %v138_v40  ;;  %v6175_v50 = vadd.f32 %v361_v27, %v142_v42  ;;  %v364_v51 = vpop.f32.mrf.mxu1 }
 0x10b   :  { %v322_v53 = vpop.f32.mrf.mxu0  ;;  %4965 = vmatpush3.bf16.xpose.msra.mxu1 %v525_v52  ;;  %v6179_v35 = vadd.f32 %v364_v51, %v142_v42  ;;  %v4533_v51 = vld [vmem:[%s7293_s1 + $0x3] ss:$0 sm:$0xff] }
 0x10c   :  { %5262 = vrot.lane.b32.xlu1 %v5246_v49, %s5923_s24  ;;  %4976 = vmatprep.subr.bf16.mxu1 %v5927_v31  ;;  %v323_v57 = vadd.f32 %v322_v53, %v134_v38 }
 0x10d   :  { %v324_v54 = vpop.f32.mrf.mxu0 }
 0x10e   :  { %v325_v56 = vadd.f32 %v324_v54, %v138_v40  ;;  %v5266_v63 = vpack.i.bf16 %v323_v57, %v319_v61  ;;  %v417_v1 = vpack.c.bf16 %v323_v57, %v319_v61  ;;  %v512_v61 = vpack.c.bf16 %v6179_v35, %v6175_v50 }
 0x110   :  { %v5251_v58 = vpack.i.bf16 %v325_v56, %v321_v55  ;;  %v465_v59 = vpack.c.bf16 %v325_v56, %v321_v55 }
 0x112   :  { %5252 = vrot.lane.b32.xlu0 %v5251_v58, %s5929_s30  ;;  %5277 = vrot.lane.b32.xlu1 %v5251_v58, %s5923_s24  ;;  %v572_v62 = vsel %vm520_vm1, %v465_v59, 0 }
 0x113   :  { %4967 = vmatmul.mubr.msk.bf16.vlgmr.msra.gmra.mxu1 %vm520_vm1, %v416_v60  ;;  %4971 = vmatpush3.bf16.xpose.msra.mxu0 %v572_v62 }
 0x114   :  { %4978 = vmatprep.mubr.msk.bf16.mxu1 %vm5928_vm0, %v5927_v31  ;;  %4982 = vmatprep.subr.bf16.mxu0 %v5927_v31 }
 0x116   :  { %5267 = vrot.lane.b32.xlu0 %v5266_v63, %s5929_s30  ;;  %5282 = vrot.lane.b32.xlu1 %v5246_v49, %s5930_s0 }
 0x11a   :  { %4973 = vmatmul.mubr.msk.bf16.vlgmr.msra.gmra.mxu0 %vm520_vm1, %v417_v1  ;;  %5272 = vrot.lane.b32.xlu0 %v5256_v47, %s5923_s24 }
 0x11b   :  { %5292 = vrot.lane.b32.xlu1 %v5251_v58, %s5930_s0  ;;  %4984 = vmatprep.mubr.msk.bf16.mxu0 %vm5928_vm0, %v5927_v31 }
 0x11e   :  { %5287 = vrot.lane.b32.xlu0 %v5266_v63, %s5923_s24 }
 0x11f   :  { %5302 = vrot.lane.b32.xlu1 %v5266_v63, %s5930_s0 }
 0x122   :  { %5297 = vrot.lane.b32.xlu0 %v5256_v47, %s5930_s0 }
 0x17a   :  { %v5258_v2 = vpop.permute.xlu1 %5257 }
 0x17b   :  { %v5260_v11 = vunpack.i.h.bf16 %v5258_v2  ;;  %v5259_v12 = vunpack.i.l.bf16 %v5258_v2 }
 0x17c   :  { %v5248_v3 = vpop.permute.xlu0 %5247 }
 0x17d   :  { %v5250_v4 = vunpack.i.h.bf16 %v5248_v3  ;;  %v5249_v5 = vunpack.i.l.bf16 %v5248_v3  ;;  %v418_v19 = vpack.c.bf16 %v5260_v11, %v5259_v12  ;;  %v6195_v3 = vadd.f32 %v6160_v18, %v142_v42 }
 0x17e   :  { %v5263_v6 = vpop.permute.xlu1 %5262 }
 0x17f   :  { %v466_v7 = vpack.c.bf16 %v5250_v4, %v5249_v5  ;;  %v5265_v8 = vunpack.i.h.bf16 %v5263_v6  ;;  %v5264_v9 = vunpack.i.l.bf16 %v5263_v6  ;;  %v6197_v4 = vadd.f32 %v4963_v43, %v142_v42 }
 0x181   :  { %v619_v10 = vsel %vm520_vm1, %v466_v7, 0  ;;  %v468_v17 = vpack.c.bf16 %v5265_v8, %v5264_v9  ;;  %v513_v7 = vpack.c.bf16 %v6197_v4, %v6195_v3 }
 0x182   :  { %4977 = vmatpush3.bf16.xpose.msra.mxu1 %v619_v10  ;;  %v4530_v10 = vld [vmem:[%s7293_s1] ss:$0 sm:$0xff] }
 0x183   :  { %4988 = vmatprep.subr.bf16.mxu1 %v5927_v31  ;;  %v713_v25 = vsel %vm520_vm1, %v468_v17, 0 }
 0x184   :  { %v5253_v13 = vpop.permute.xlu0 %5252  ;;  %v5278_v14 = vpop.permute.xlu1 %5277 }
 0x185   :  { %v5255_v15 = vunpack.i.h.bf16 %v5253_v13  ;;  %v5254_v16 = vunpack.i.l.bf16 %v5253_v13  ;;  %v5280_v28 = vunpack.i.h.bf16 %v5278_v14  ;;  %v5279_v29 = vunpack.i.l.bf16 %v5278_v14 }
 0x187   :  { %v467_v20 = vpack.c.bf16 %v5255_v15, %v5254_v16  ;;  %v469_v44 = vpack.c.bf16 %v5280_v28, %v5279_v29 }
 0x188   :  { %v5268_v21 = vpop.permute.xlu0 %5267  ;;  %v5283_v22 = vpop.permute.xlu1 %5282 }
 0x189   :  { %v5285_v23 = vunpack.i.h.bf16 %v5283_v22  ;;  %v5284_v24 = vunpack.i.l.bf16 %v5283_v22  ;;  %4979 = vmatmul.mubr.msk.bf16.vlgmr.msra.gmra.mxu1 %vm520_vm1, %v418_v19  ;;  %v666_v30 = vsel %vm520_vm1, %v467_v20, 0  ;;  %v5270_v32 = vunpack.i.h.bf16 %v5268_v21  ;;  %v4531_v20 = vld [vmem:[%s7293_s1 + $0x1] ss:$0 sm:$0xff] }
 0x18a   :  { %4989 = vmatpush3.bf16.xpose.msra.mxu1 %v713_v25  ;;  %4990 = vmatprep.mubr.msk.bf16.mxu1 %vm5928_vm0, %v5927_v31  ;;  %v5269_v37 = vunpack.i.l.bf16 %v5268_v21  ;;  %v760_v54 = vsel %vm520_vm1, %v469_v44, 0 }
 0x18b   :  { %4983 = vmatpush3.bf16.xpose.msra.mxu0 %v666_v30  ;;  %5000 = vmatprep.subr.bf16.mxu1 %v5927_v31  ;;  %v470_v41 = vpack.c.bf16 %v5285_v23, %v5284_v24 }
 0x18c   :  { %v5273_v38 = vpop.permute.xlu0 %5272  ;;  %4994 = vmatprep.subr.bf16.mxu0 %v5927_v31  ;;  %v419_v47 = vpack.c.bf16 %v5270_v32, %v5269_v37 }
 0x18d   :  { %v5275_v39 = vunpack.i.h.bf16 %v5273_v38  ;;  %v5274_v40 = vunpack.i.l.bf16 %v5273_v38  ;;  %v5293_v46 = vpop.permute.xlu1 %5292  ;;  %v807_v49 = vsel %vm520_vm1, %v470_v41, 0  ;;  %v4532_v38 = vld [vmem:[%s7293_s1 + $0x2] ss:$0 sm:$0xff] }
 0x18e   :  { %v5295_v52 = vunpack.i.h.bf16 %v5293_v46  ;;  %v5294_v53 = vunpack.i.l.bf16 %v5293_v46 }
 0x18f   :  { %v420_v45 = vpack.c.bf16 %v5275_v39, %v5274_v40 }
 0x190   :  { %v5288_v48 = vpop.permute.xlu0 %5287  ;;  %v471_v60 = vpack.c.bf16 %v5295_v52, %v5294_v53 }
 0x191   :  { %4991 = vmatmul.mubr.msk.bf16.vlgmr.msra.gmra.mxu1 %vm520_vm1, %v420_v45  ;;  %v5290_v55 = vunpack.i.h.bf16 %v5288_v48  ;;  %v5289_v56 = vunpack.i.l.bf16 %v5288_v48  ;;  %v5303_v1 = vpop.permute.xlu1 %5302 }
 0x192   :  { %4985 = vmatmul.mubr.msk.bf16.vlgmr.msra.gmra.mxu0 %vm520_vm1, %v419_v47  ;;  %5001 = vmatpush3.bf16.xpose.msra.mxu1 %v807_v49  ;;  %v854_v2 = vsel %vm520_vm1, %v471_v60, 0  ;;  %v5305_v5 = vunpack.i.h.bf16 %v5303_v1  ;;  %v5304_v6 = vunpack.i.l.bf16 %v5303_v1 }
 0x193   :  { %4995 = vmatpush3.bf16.xpose.msra.mxu0 %v760_v54  ;;  %4996 = vmatprep.mubr.msk.bf16.mxu0 %vm5928_vm0, %v5927_v31  ;;  %v421_v63 = vpack.c.bf16 %v5290_v55, %v5289_v56  ;;  %v4534_v56 = vld [vmem:[%s7293_s1 + $0x4] ss:$0 sm:$0xff] }
 0x194   :  { %v5298_v57 = vpop.permute.xlu0 %5297  ;;  %5002 = vmatprep.mubr.msk.bf16.mxu1 %vm5928_vm0, %v5927_v31  ;;  %5006 = vmatprep.subr.bf16.mxu0 %v5927_v31  ;;  %v423_v8 = vpack.c.bf16 %v5305_v5, %v5304_v6 }
 0x195   :  { %v5300_v58 = vunpack.i.h.bf16 %v5298_v57  ;;  %v5299_v59 = vunpack.i.l.bf16 %v5298_v57  ;;  %5012 = vmatprep.subr.bf16.mxu1 %v5927_v31 }
 0x197   :  { %v422_v62 = vpack.c.bf16 %v5300_v58, %v5299_v59 }
 0x199   :  { %5003 = vmatmul.mubr.msk.bf16.vlgmr.msra.gmra.mxu1 %vm520_vm1, %v422_v62 }
 0x19a   :  { %4997 = vmatmul.mubr.msk.bf16.vlgmr.msra.gmra.mxu0 %vm520_vm1, %v421_v63  ;;  %5013 = vmatpush3.bf16.msra.mxu1 %v512_v61 }
 0x19b   :  { %5007 = vmatpush3.bf16.xpose.msra.mxu0 %v854_v2  ;;  %5008 = vmatprep.mubr.msk.bf16.mxu0 %vm5928_vm0, %v5927_v31 }
 0x19c   :  { %5018 = vmatprep.subr.bf16.mxu0 %v5927_v31  ;;  %5014 = vmatprep.mubr.msk.bf16.mxu1 %vm5928_vm0, %v5927_v31 }
 0x19d   :  { %5024 = vmatprep.subr.bf16.mxu1 %v5927_v31 }
 0x1a2   :  { %5009 = vmatmul.mubr.msk.bf16.vlgmr.msra.gmra.mxu0 %vm520_vm1, %v423_v8  ;;  %v4535_v8 = vld [vmem:[%s7293_s1 + $0x5] ss:$0 sm:$0xff] }
 0x1a3   :  { %5019 = vmatpush3.bf16.msra.mxu0 %v513_v7  ;;  %5020 = vmatprep.mubr.msk.bf16.mxu0 %vm5928_vm0, %v5927_v31 }
 0x1a4   :  { %5030 = vmatprep.subr.bf16.mxu0 %v5927_v31 }
 0x1d3   :  { %v561_v9 = vpop.f32.mrf.mxu1 }
 0x1d4   :  { %v897_v11 = vmul.f32 0.17677669, %v561_v9 }
 0x1d5   :  { %v4968_v12 = vpop.f32.mrf.mxu1 }
 0x1d6   :  { %v6212_v13 = vadd.f32 %v4530_v10, %v897_v11 }
 0x1d7   :  { %v564_v14 = vpop.f32.mrf.mxu1 }
 0x1d8   :  { %v898_v15 = vmul.f32 0.17677669, %v564_v14  ;;  %v978_v16 = vsel %vm977_vm2, %v6212_v13, -inf }
 0x1d9   :  { %979 = vmax.xlane.f32.xlu0 %v978_v16  ;;  %v4969_v17 = vpop.f32.mrf.mxu1 }
 0x1da   :  { %v608_v18 = vpop.f32.mrf.mxu0  ;;  %v6216_v19 = vadd.f32 %v4530_v10, %v898_v15  ;;  %v4536_v17 = vld [vmem:[%s7293_s1 + $0x6] ss:$0 sm:$0xff] }
 0x1db   :  { %v899_v21 = vmul.f32 0.17677669, %v608_v18 }
 0x1dc   :  { %v4974_v22 = vpop.f32.mrf.mxu0  ;;  %v981_v23 = vsel %vm977_vm2, %v6216_v19, -inf }
 0x1dd   :  { %982 = vmax.xlane.f32.xlu1 %v981_v23  ;;  %v6223_v24 = vadd.f32 %v4531_v20, %v899_v21 }
 0x1de   :  { %v611_v25 = vpop.f32.mrf.mxu0 }
 0x1df   :  { %v900_v27 = vmul.f32 0.17677669, %v611_v25  ;;  %v984_v28 = vsel %vm977_vm2, %v6223_v24, -inf }
 0x1e0   :  { %v4975_v29 = vpop.f32.mrf.mxu0  ;;  %985 = vmax.xlane.f32.xlu0 %v984_v28 }
 0x1e1   :  { %v6227_v30 = vadd.f32 %v4531_v20, %v900_v27 }
 0x1e3   :  { %v987_v32 = vsel %vm977_vm2, %v6227_v30, -inf }
 0x1e4   :  { %988 = vmax.xlane.f32.xlu0 %v987_v32 }
 0x249   :  { %v655_v37 = vpop.f32.mrf.mxu1 }
 0x24a   :  { %v901_v39 = vmul.f32 0.17677669, %v655_v37 }
 0x24b   :  { %v4980_v40 = vpop.f32.mrf.mxu1 }
 0x24c   :  { %v6234_v41 = vadd.f32 %v4532_v38, %v901_v39  ;;  %v4537_v39 = vld [vmem:[%s7293_s1 + $0x7] ss:$0 sm:$0xff] }
 0x24d   :  { %v658_v42 = vpop.f32.mrf.mxu1 }
 0x24e   :  { %v902_v43 = vmul.f32 0.17677669, %v658_v42  ;;  %v990_v44 = vsel %vm977_vm2, %v6234_v41, -inf }
 0x24f   :  { %991 = vmax.xlane.f32.xlu1 %v990_v44  ;;  %v4981_v45 = vpop.f32.mrf.mxu1 }
 0x250   :  { %v6238_v46 = vadd.f32 %v4532_v38, %v902_v43 }
 0x251   :  { %v749_v47 = vpop.f32.mrf.mxu1 }
 0x252   :  { %v702_v48 = vpop.f32.mrf.mxu0  ;;  %v993_v49 = vsel %vm977_vm2, %v6238_v46, -inf  ;;  %v905_v53 = vmul.f32 0.17677669, %v749_v47 }
 0x253   :  { %v903_v52 = vmul.f32 0.17677669, %v702_v48  ;;  %994 = vmax.xlane.f32.xlu0 %v993_v49  ;;  %v4992_v54 = vpop.f32.mrf.mxu1 }
 0x254   :  { %v4986_v55 = vpop.f32.mrf.mxu0  ;;  %v6252_v1 = vadd.f32 %v4534_v56, %v905_v53 }
 0x255   :  { %v752_v57 = vpop.f32.mrf.mxu1  ;;  %v6248_v58 = vadd.f32 %v4533_v51, %v903_v52 }
 0x256   :  { %v705_v59 = vpop.f32.mrf.mxu0  ;;  %v906_v60 = vmul.f32 0.17677669, %v752_v57  ;;  %v1002_v14 = vsel %vm977_vm2, %v6252_v1, -inf }
 0x257   :  { %v904_v61 = vmul.f32 0.17677669, %v705_v59  ;;  %v996_v62 = vsel %vm977_vm2, %v6248_v58, -inf  ;;  %v4993_v63 = vpop.f32.mrf.mxu1  ;;  %v6307_v59 = vpack.i.bf16 %v6197_v4, %v6195_v3 }
 0x258   :  { %v4987_v2 = vpop.f32.mrf.mxu0  ;;  %997 = vmax.xlane.f32.xlu1 %v996_v62  ;;  %v6259_v9 = vadd.f32 %v4534_v56, %v906_v60  ;;  %v6299_v56 = vpack.i.bf16 %v6179_v35, %v6175_v50 }
 0x259   :  { %v843_v5 = vpop.f32.mrf.mxu1  ;;  %v6254_v6 = vadd.f32 %v4533_v51, %v904_v61 }
 0x25a   :  { %v796_v7 = vpop.f32.mrf.mxu0  ;;  %v909_v11 = vmul.f32 0.17677669, %v843_v5  ;;  %v1005_v22 = vsel %vm977_vm2, %v6259_v9, -inf }
 0x25b   :  { %v907_v10 = vmul.f32 0.17677669, %v796_v7  ;;  %v999_v12 = vsel %vm977_vm2, %v6254_v6, -inf  ;;  %v5004_v15 = vpop.f32.mrf.mxu1 }
 0x25c   :  { %v4998_v16 = vpop.f32.mrf.mxu0  ;;  %1000 = vmax.xlane.f32.xlu0 %v999_v12  ;;  %1003 = vmax.xlane.f32.xlu1 %v1002_v14  ;;  %v6274_v29 = vadd.f32 %v4536_v17, %v909_v11 }
 0x25d   :  { %v846_v18 = vpop.f32.mrf.mxu1  ;;  %v6268_v20 = vadd.f32 %v4535_v8, %v907_v10 }
 0x25e   :  { %v799_v21 = vpop.f32.mrf.mxu0  ;;  %v910_v25 = vmul.f32 0.17677669, %v846_v18  ;;  %v1014_v43 = vsel %vm977_vm2, %v6274_v29, -inf }
 0x25f   :  { %v908_v23 = vmul.f32 0.17677669, %v799_v21  ;;  %v1008_v27 = vsel %vm977_vm2, %v6268_v20, -inf  ;;  %v5005_v28 = vpop.f32.mrf.mxu1 }
 0x260   :  { %v4999_v32 = vpop.f32.mrf.mxu0  ;;  %1009 = vmax.xlane.f32.xlu1 %v1008_v27  ;;  %1006 = vmax.xlane.f32.xlu0 %v1005_v22  ;;  %v6285_v44 = vadd.f32 %v4536_v17, %v910_v25 }
 0x261   :  { %v6276_v37 = vadd.f32 %v4535_v8, %v908_v23 }
 0x262   :  { %v890_v38 = vpop.f32.mrf.mxu0  ;;  %v1017_v52 = vsel %vm977_vm2, %v6285_v44, -inf  ;;  %v980_v57 = vpop.xlane.xlu0 %979 }
 0x263   :  { %v911_v40 = vmul.f32 0.17677669, %v890_v38  ;;  %v1011_v42 = vsel %vm977_vm2, %v6276_v37, -inf  ;;  %v1026_v62 = vsub.f32 %v6212_v13, %v980_v57 }
 0x264   :  { %v5010_v45 = vpop.f32.mrf.mxu0  ;;  %1012 = vmax.xlane.f32.xlu0 %v1011_v42  ;;  %1015 = vmax.xlane.f32.xlu1 %v1014_v43 }
 0x265   :  { %v6287_v47 = vadd.f32 %v4537_v39, %v911_v40  ;;  %v1042_v5 = vmul.f32 1.442695, %v1026_v62 }
 0x266   :  { %v893_v48 = vpop.f32.mrf.mxu0  ;;  %v983_v50 = vpop.xlane.xlu1 %982 }
 0x267   :  { %v912_v49 = vmul.f32 0.17677669, %v893_v48  ;;  %v1020_v51 = vsel %vm977_vm2, %v6287_v47, -inf  ;;  %v1027_v35 = vsub.f32 %v6216_v19, %v983_v50 }
 0x268   :  { %v5011_v53 = vpop.f32.mrf.mxu0  ;;  %1021 = vmax.xlane.f32.xlu1 %v1020_v51  ;;  %1018 = vmax.xlane.f32.xlu0 %v1017_v52 }
 0x269   :  { %v6293_v54 = vadd.f32 %v4537_v39, %v912_v49  ;;  %v986_v60 = vpop.xlane.xlu0 %985  ;;  %v1044_v63 = vmul.f32 1.442695, %v1027_v35 }
 0x26a   :  { %v1028_v3 = vsub.f32 %v6223_v24, %v986_v60 }
 0x26b   :  { %v1023_v55 = vsel %vm977_vm2, %v6293_v54, -inf  ;;  %5654 = vpow2.f32 %v1044_v63 }
 0x26c   :  { %1024 = vmax.xlane.f32.xlu0 %v1023_v55  ;;  %5656 = vpow2.f32 %v1042_v5  ;;  %v1046_v7 = vmul.f32 1.442695, %v1028_v3 }
 0x26d   :  { %v989_v61 = vpop.xlane.xlu0 %988 }
 0x26e   :  { %v1029_v2 = vsub.f32 %v6227_v30, %v989_v61 }
 0x270   :  { %v1048_v4 = vmul.f32 1.442695, %v1029_v2 }
 0x272   :  { %5658 = vpow2.f32 %v1048_v4 }
 0x273   :  { %5660 = vpow2.f32 %v1046_v7 }
 0x278   :  { %v6317_v8 = vpop.eup %5654 }
 0x279   :  { %5307 = vrot.lane.b32.xlu1 %v6299_v56, %s5929_s30  ;;  %v6319_v10 = vpop.eup %5656  ;;  %v1077_v19 = vsel %vm977_vm2, %v6317_v8, 0.0 }
 0x27a   :  { %v1074_v30 = vsel %vm977_vm2, %v6319_v10, 0.0 }
 0x27d   :  { %5317 = vrot.lane.b32.xlu1 %v6299_v56, %s5923_s24 }
 0x27f   :  { %v6323_v13 = vpop.eup %5658 }
 0x280   :  { %v1083_v24 = vsel %vm977_vm2, %v6323_v13, 0.0  ;;  %v6329_v11 = vpop.eup %5660 }
 0x281   :  { %5322 = vrot.lane.b32.xlu1 %v6307_v59, %s5923_s24  ;;  %v1080_v12 = vsel %vm977_vm2, %v6329_v11, 0.0 }
 0x282   :  { %5312 = vrot.lane.b32.xlu0 %v6307_v59, %s5929_s30 }
 0x2a1   :  { %1078 = vadd.xlane.f32.xlu0 %v1077_v19 }
 0x2a5   :  { %1075 = vadd.xlane.f32.xlu1 %v1074_v30  ;;  %1084 = vadd.xlane.f32.xlu0 %v1083_v24 }
 0x2a9   :  { %1081 = vadd.xlane.f32.xlu1 %v1080_v12 }
 0x2d8   :  { %v992_v14 = vpop.xlane.xlu1 %991 }
 0x2d9   :  { %v1030_v15 = vsub.f32 %v6234_v41, %v992_v14 }
 0x2db   :  { %v1050_v16 = vmul.f32 1.442695, %v1030_v15 }
 0x2dc   :  { %v995_v17 = vpop.xlane.xlu0 %994 }
 0x2dd   :  { %5662 = vpow2.f32 %v1050_v16  ;;  %v1031_v18 = vsub.f32 %v6238_v46, %v995_v17 }
 0x2df   :  { %v1052_v21 = vmul.f32 1.442695, %v1031_v18 }
 0x2e1   :  { %5664 = vpow2.f32 %v1052_v21  ;;  %v998_v22 = vpop.xlane.xlu1 %997 }
 0x2e2   :  { %v1032_v23 = vsub.f32 %v6248_v58, %v998_v22 }
 0x2e4   :  { %v1054_v25 = vmul.f32 1.442695, %v1032_v23 }
 0x2e5   :  { %v1001_v27 = vpop.xlane.xlu0 %1000  ;;  %v1004_v28 = vpop.xlane.xlu1 %1003 }
 0x2e6   :  { %5666 = vpow2.f32 %v1054_v25  ;;  %v1033_v32 = vsub.f32 %v6254_v6, %v1001_v27  ;;  %v1034_v38 = vsub.f32 %v6252_v1, %v1004_v28 }
 0x2e8   :  { %v1056_v39 = vmul.f32 1.442695, %v1033_v32  ;;  %v1058_v41 = vmul.f32 1.442695, %v1034_v38 }
 0x2e9   :  { %v1010_v40 = vpop.xlane.xlu1 %1009  ;;  %v1007_v42 = vpop.xlane.xlu0 %1006 }
 0x2ea   :  { %v6338_v43 = vpop.eup %5662  ;;  %5668 = vpow2.f32 %v1056_v39  ;;  %v1036_v46 = vsub.f32 %v6268_v20, %v1010_v40  ;;  %v1035_v45 = vsub.f32 %v6259_v9, %v1007_v42 }
 0x2eb   :  { %5670 = vpow2.f32 %v1058_v41  ;;  %v1086_v58 = vsel %vm977_vm2, %v6338_v43, 0.0 }
 0x2ec   :  { %v1062_v48 = vmul.f32 1.442695, %v1036_v46  ;;  %v1060_v49 = vmul.f32 1.442695, %v1035_v45  ;;  %1087 = vadd.xlane.f32.xlu1 %v1086_v58 }
 0x2ed   :  { %v1013_v6 = vpop.xlane.xlu0 %1012  ;;  %v1016_v1 = vpop.xlane.xlu1 %1015 }
 0x2ee   :  { %v6344_v51 = vpop.eup %5664  ;;  %5672 = vpow2.f32 %v1062_v48  ;;  %v1037_v52 = vsub.f32 %v6276_v37, %v1013_v6  ;;  %v1038_v53 = vsub.f32 %v6274_v29, %v1016_v1 }
 0x2ef   :  { %5674 = vpow2.f32 %v1060_v49  ;;  %v1089_v9 = vsel %vm977_vm2, %v6344_v51, 0.0 }
 0x2f0   :  { %v1064_v20 = vmul.f32 1.442695, %v1037_v52  ;;  %v1066_v55 = vmul.f32 1.442695, %v1038_v53  ;;  %1090 = vadd.xlane.f32.xlu0 %v1089_v9 }
 0x2f1   :  { %v1022_v57 = vpop.xlane.xlu1 %1021  ;;  %v1019_v60 = vpop.xlane.xlu0 %1018 }
 0x2f2   :  { %5676 = vpow2.f32 %v1064_v20  ;;  %v1040_v50 = vsub.f32 %v6287_v47, %v1022_v57  ;;  %v1039_v35 = vsub.f32 %v6285_v44, %v1019_v60 }
 0x2f3   :  { %v6352_v61 = vpop.eup %5666  ;;  %5678 = vpow2.f32 %v1066_v55 }
 0x2f4   :  { %v1070_v37 = vmul.f32 1.442695, %v1040_v50  ;;  %v1068_v62 = vmul.f32 1.442695, %v1039_v35  ;;  %v1092_v29 = vsel %vm977_vm2, %v6352_v61, 0.0 }
 0x2f5   :  { %1093 = vadd.xlane.f32.xlu1 %v1092_v29  ;;  %v1025_v63 = vpop.xlane.xlu0 %1024  ;;  %v5308_v25 = vpop.permute.xlu1 %5307 }
 0x2f6   :  { %5680 = vpow2.f32 %v1070_v37  ;;  %v1041_v2 = vsub.f32 %v6293_v54, %v1025_v63  ;;  %v5310_v45 = vunpack.i.h.bf16 %v5308_v25 }
 0x2f7   :  { %v6357_v5 = vpop.eup %5668  ;;  %5682 = vpow2.f32 %v1068_v62 }
 0x2f8   :  { %v6359_v3 = vpop.eup %5670  ;;  %v1072_v47 = vmul.f32 1.442695, %v1041_v2  ;;  %v1095_v44 = vsel %vm977_vm2, %v6357_v5, 0.0 }
 0x2f9   :  { %v1098_v4 = vsel %vm977_vm2, %v6359_v3, 0.0  ;;  %1096 = vadd.xlane.f32.xlu0 %v1095_v44  ;;  %v5318_v27 = vpop.permute.xlu1 %5317  ;;  %v5313_v28 = vpop.permute.xlu0 %5312 }
 0x2fa   :  { %5684 = vpow2.f32 %v1072_v47  ;;  %1099 = vadd.xlane.f32.xlu1 %v1098_v4  ;;  %v5315_v52 = vunpack.i.h.bf16 %v5313_v28  ;;  %v5314_v53 = vunpack.i.l.bf16 %v5313_v28  ;;  %v5320_v37 = vunpack.i.h.bf16 %v5318_v27 }
 0x2fb   :  { %v6365_v7 = vpop.eup %5672  ;;  %v5319_v62 = vunpack.i.l.bf16 %v5318_v27 }
 0x2fc   :  { %v6367_v19 = vpop.eup %5674  ;;  %v1104_v54 = vsel %vm977_vm2, %v6365_v7, 0.0 }
 0x2fd   :  { %v1101_v30 = vsel %vm977_vm2, %v6367_v19, 0.0  ;;  %v6397_v32 = vpop.permute.xlu1 %5322  ;;  %v516_v4 = vpack.c.bf16 %v5320_v37, %v5319_v62  ;;  %v5519_v37 = vld [vmem:[#allocation2 + $0x30] sm:$0xff]   ;;  %v5520_v62 = vld [vmem:[#allocation2 + $0x28] sm:$0xff]  }
 0x2fe   :  { %1105 = vadd.xlane.f32.xlu1 %v1104_v54  ;;  %1102 = vadd.xlane.f32.xlu0 %v1101_v30 }
 0x2ff   :  { %v6373_v24 = vpop.eup %5676 }
 0x300   :  { %v6375_v12 = vpop.eup %5678  ;;  %v1107_v14 = vsel %vm977_vm2, %v6373_v24, 0.0 }
 0x301   :  { %v1110_v15 = vsel %vm977_vm2, %v6375_v12, 0.0 }
 0x302   :  { %1111 = vadd.xlane.f32.xlu1 %v1110_v15  ;;  %1108 = vadd.xlane.f32.xlu0 %v1107_v14 }
 0x303   :  { %v6381_v16 = vpop.eup %5680 }
 0x304   :  { %v6383_v17 = vpop.eup %5682  ;;  %v1116_v18 = vsel %vm977_vm2, %v6381_v16, 0.0 }
 0x305   :  { %v1113_v21 = vsel %vm977_vm2, %v6383_v17, 0.0 }
 0x306   :  { %1117 = vadd.xlane.f32.xlu1 %v1116_v18  ;;  %1114 = vadd.xlane.f32.xlu0 %v1113_v21  ;;  %v5325_v18 = vunpack.i.h.bf16 %v6397_v32  ;;  %v5324_v21 = vunpack.i.l.bf16 %v6397_v32 }
 0x307   :  { %v6389_v22 = vpop.eup %5684 }
 0x308   :  { %v1119_v23 = vsel %vm977_vm2, %v6389_v22, 0.0 }
 0x30a   :  { %1120 = vadd.xlane.f32.xlu0 %v1119_v23 }
 0x317   :  { %5332 = vrot.lane.b32.xlu1 %v6307_v59, %s5930_s0  ;;  %v5309_v59 = vunpack.i.l.bf16 %v5308_v25 }
 0x319   :  { %v514_v1 = vpack.c.bf16 %v5310_v45, %v5309_v59 }
 0x320   :  { %5327 = vrot.lane.b32.xlu0 %v6299_v56, %s5930_s0 }
 0x32a   :  { %v1079_v38 = vpop.xlane.xlu0 %1078 }
 0x32b   :  { %5686 = vrcp.f32 %v1079_v38 }
 0x32e   :  { %v1076_v39 = vpop.xlane.xlu1 %1075  ;;  %v1085_v41 = vpop.xlane.xlu0 %1084 }
 0x32f   :  { %5688 = vrcp.f32 %v1076_v39  ;;  %v517_v39 = vpack.c.bf16 %v5325_v18, %v5324_v21 }
 0x330   :  { %5690 = vrcp.f32 %v1085_v41 }
 0x332   :  { %v1082_v40 = vpop.xlane.xlu1 %1081 }
 0x333   :  { %5692 = vrcp.f32 %v1082_v40 }
 0x338   :  { %v5687_v42 = vpop.eup %5686 }
 0x339   :  { %v1139_v56 = vmul.f32 %v5687_v42, %v6317_v8  ;;  %v515_v8 = vpack.c.bf16 %v5315_v52, %v5314_v53 }
 0x33c   :  { %v5689_v46 = vpop.eup %5688 }
 0x33d   :  { %v1138_v58 = vmul.f32 %v5689_v46, %v6319_v10  ;;  %v5691_v48 = vpop.eup %5690 }
 0x33e   :  { %v1141_v20 = vmul.f32 %v5691_v48, %v6323_v13 }
 0x33f   :  { %v1154_v49 = vpack.c.bf16 %v1139_v56, %v1138_v58 }
 0x340   :  { %v5693_v6 = vpop.eup %5692 }
 0x341   :  { %5015 = vmatmul.mubr.msk.bf16.vlgmr.msra.gmra.mxu1 %vm977_vm2, %v1154_v49  ;;  %v1140_v9 = vmul.f32 %v5693_v6, %v6329_v11 }
 0x342   :  { %5025 = vmatpush3.bf16.msra.mxu1 %v514_v1  ;;  %5026 = vmatprep.mubr.msk.bf16.mxu1 %vm5928_vm0, %v5927_v31 }
 0x343   :  { %v1155_v55 = vpack.c.bf16 %v1141_v20, %v1140_v9  ;;  %5036 = vmatprep.subr.bf16.mxu1 %v5927_v31 }
 0x345   :  { %5021 = vmatmul.mubr.msk.bf16.vlgmr.msra.gmra.mxu0 %vm977_vm2, %v1155_v55 }
 0x346   :  { %5031 = vmatpush3.bf16.msra.mxu0 %v515_v8  ;;  %5032 = vmatprep.mubr.msk.bf16.mxu0 %vm5928_vm0, %v5927_v31 }
 0x347   :  { %5042 = vmatprep.subr.bf16.mxu0 %v5927_v31 }
 0x375   :  { %v1088_v10 = vpop.xlane.xlu1 %1087 }
 0x376   :  { %5694 = vrcp.f32 %v1088_v10 }
 0x379   :  { %v1091_v11 = vpop.xlane.xlu0 %1090 }
 0x37a   :  { %5696 = vrcp.f32 %v1091_v11 }
 0x37e   :  { %v1094_v13 = vpop.xlane.xlu1 %1093 }
 0x37f   :  { %5698 = vrcp.f32 %v1094_v13 }
 0x382   :  { %v1097_v57 = vpop.xlane.xlu0 %1096 }
 0x383   :  { %v1100_v60 = vpop.xlane.xlu1 %1099  ;;  %5700 = vrcp.f32 %v1097_v57  ;;  %v5695_v50 = vpop.eup %5694 }
 0x384   :  { %5702 = vrcp.f32 %v1100_v60  ;;  %v1142_v2 = vmul.f32 %v5695_v50, %v6338_v43 }
 0x387   :  { %v5697_v35 = vpop.eup %5696  ;;  %v1106_v29 = vpop.xlane.xlu1 %1105 }
 0x388   :  { %v1103_v63 = vpop.xlane.xlu0 %1102  ;;  %v1143_v47 = vmul.f32 %v5697_v35, %v6344_v51 }
 0x389   :  { %5704 = vrcp.f32 %v1103_v63 }
 0x38a   :  { %v1156_v44 = vpack.c.bf16 %v1143_v47, %v1142_v2  ;;  %5706 = vrcp.f32 %v1106_v29 }
 0x38b   :  { %v1112_v54 = vpop.xlane.xlu1 %1111 }
 0x38c   :  { %v1109_v30 = vpop.xlane.xlu0 %1108  ;;  %5027 = vmatmul.mubr.msk.bf16.vlgmr.msra.gmra.mxu1 %vm977_vm2, %v1156_v44  ;;  %v5699_v14 = vpop.eup %5698  ;;  %v5521_v44 = vld [vmem:[#allocation2 + $0x20] sm:$0xff]  }
 0x38d   :  { %5708 = vrcp.f32 %v1109_v30  ;;  %5037 = vmatpush3.bf16.msra.mxu1 %v516_v4  ;;  %5038 = vmatprep.mubr.msk.bf16.mxu1 %vm5928_vm0, %v5927_v31  ;;  %v1144_v23 = vmul.f32 %v5699_v14, %v6352_v61  ;;  %v5522_v30 = vld [vmem:[#allocation2 + $0x18] sm:$0xff]  }
 0x38e   :  { %5048 = vmatprep.subr.bf16.mxu1 %v5927_v31  ;;  %5710 = vrcp.f32 %v1112_v54 }
 0x38f   :  { %v1118_v43 = vpop.xlane.xlu1 %1117 }
 0x390   :  { %v1115_v15 = vpop.xlane.xlu0 %1114  ;;  %v5701_v51 = vpop.eup %5700 }
 0x391   :  { %5712 = vrcp.f32 %v1115_v15  ;;  %v1145_v25 = vmul.f32 %v5701_v51, %v6357_v5  ;;  %v5703_v38 = vpop.eup %5702  ;;  %v5523_v15 = vld [vmem:[#allocation2 + $0x10] sm:$0xff]  }
 0x392   :  { %5714 = vrcp.f32 %v1118_v43  ;;  %v1146_v42 = vmul.f32 %v5703_v38, %v6359_v3 }
 0x393   :  { %v1157_v28 = vpack.c.bf16 %v1145_v25, %v1144_v23  ;;  %v5333_v40 = vpop.permute.xlu1 %5332  ;;  %v5524_v25 = vld [vmem:[#allocation2 + $0x8] sm:$0xff]  }
 0x394   :  { %v1121_v27 = vpop.xlane.xlu0 %1120  ;;  %v5335_v56 = vunpack.i.h.bf16 %v5333_v40  ;;  %v5334_v48 = vunpack.i.l.bf16 %v5333_v40  ;;  %v5525_v40 = vld [vmem:[#allocation2] sm:$0xff]  }
 0x395   :  { %5716 = vrcp.f32 %v1121_v27  ;;  %5033 = vmatmul.mubr.msk.bf16.vlgmr.msra.gmra.mxu0 %vm977_vm2, %v1157_v28 }
 0x396   :  { %v5705_v41 = vpop.eup %5704  ;;  %5043 = vmatpush3.bf16.msra.mxu0 %v517_v39  ;;  %5044 = vmatprep.mubr.msk.bf16.mxu0 %vm5928_vm0, %v5927_v31  ;;  %v519_v53 = vpack.c.bf16 %v5335_v56, %v5334_v48 }
 0x397   :  { %v1147_v61 = vmul.f32 %v5705_v41, %v6367_v19  ;;  %5054 = vmatprep.subr.bf16.mxu0 %v5927_v31  ;;  %v5707_v5 = vpop.eup %5706 }
 0x398   :  { %v5328_v32 = vpop.permute.xlu0 %5327  ;;  %v1148_v6 = vmul.f32 %v5707_v5, %v6365_v7 }
 0x399   :  { %v5330_v46 = vunpack.i.h.bf16 %v5328_v32  ;;  %v5329_v45 = vunpack.i.l.bf16 %v5328_v32  ;;  %v1158_v59 = vpack.c.bf16 %v1147_v61, %v1146_v42 }
 0x39a   :  { %v5709_v58 = vpop.eup %5708 }
 0x39b   :  { %v518_v49 = vpack.c.bf16 %v5330_v46, %v5329_v45  ;;  %5039 = vmatmul.mubr.msk.bf16.vlgmr.msra.gmra.mxu1 %vm977_vm2, %v1158_v59  ;;  %v1149_v1 = vmul.f32 %v5709_v58, %v6373_v24  ;;  %v5711_v52 = vpop.eup %5710 }
 0x39c   :  { %5050 = vmatprep.mubr.msk.bf16.mxu1 %vm5928_vm0, %v5927_v31  ;;  %v1150_v20 = vmul.f32 %v5711_v52, %v6375_v12  ;;  %v5518_v12 = vld [vmem:[#allocation2 + $0x38] sm:$0xff]  }
 0x39d   :  { %5049 = vmatpush3.bf16.msra.mxu1 %v518_v49  ;;  %v1159_v3 = vpack.c.bf16 %v1149_v1, %v1148_v6 }
 0x39e   :  { %v5713_v19 = vpop.eup %5712  ;;  %5060 = vmatprep.subr.bf16.mxu1 %v5518_v12 }
 0x39f   :  { %v5715_v9 = vpop.eup %5714  ;;  %5045 = vmatmul.mubr.msk.bf16.vlgmr.msra.gmra.mxu0 %vm977_vm2, %v1159_v3  ;;  %v1151_v55 = vmul.f32 %v5713_v19, %v6383_v17 }
 0x3a0   :  { %5055 = vmatpush3.bf16.msra.mxu0 %v519_v53  ;;  %5056 = vmatprep.mubr.msk.bf16.mxu0 %vm5928_vm0, %v5927_v31  ;;  %v1152_v8 = vmul.f32 %v5715_v9, %v6381_v16 }
 0x3a1   :  { %v1160_v24 = vpack.c.bf16 %v1151_v55, %v1150_v20 }
 0x3a2   :  { %v5717_v7 = vpop.eup %5716 }
 0x3a3   :  { %v1153_v10 = vmul.f32 %v5717_v7, %v6389_v22  ;;  %5051 = vmatmul.mubr.msk.bf16.vlgmr.msra.gmra.mxu1 %vm977_vm2, %v1160_v24 }
 0x3a4   :  { %5061 = vmatpush3.bf16.msra.mxu1 %v5518_v12 }
 0x3a5   :  { %v1161_v11 = vpack.c.bf16 %v1153_v10, %v1152_v8  ;;  %5062 = vmatprep.subr.bf16.mxu1 %v5519_v37 }
 0x3a7   :  { %5057 = vmatmul.mubr.msk.bf16.vlgmr.msra.gmra.mxu0 %vm977_vm2, %v1161_v11 }
 0x3a8   :  { %1911 = vmatprep.mubr.bf16.mxu0 %v5926_v0  ;;  %5063 = vmatpush3.bf16.msra.mxu1 %v5519_v37 }
 0x3a9   :  { %5064 = vmatprep.subr.bf16.mxu1 %v5520_v62 }
 0x3ac   :  { %5065 = vmatpush3.bf16.msra.mxu1 %v5520_v62 }
 0x3ad   :  { %5066 = vmatprep.subr.bf16.mxu1 %v5521_v44 }
 0x3b0   :  { %5067 = vmatpush3.bf16.msra.mxu1 %v5521_v44 }
 0x3b1   :  { %5068 = vmatprep.subr.bf16.mxu1 %v5522_v30 }
 0x3b4   :  { %5069 = vmatpush3.bf16.msra.mxu1 %v5522_v30 }
 0x3b5   :  { %5070 = vmatprep.subr.bf16.mxu1 %v5523_v15 }
 0x3b8   :  { %5071 = vmatpush3.bf16.msra.mxu1 %v5523_v15 }
 0x3b9   :  { %5072 = vmatprep.subr.bf16.mxu1 %v5524_v25 }
 0x3bc   :  { %5073 = vmatpush3.bf16.msra.mxu1 %v5524_v25  ;;  %v5844_v25 = vld [vmem:[%s7311_s4] sm:$0xff] }
 0x3bd   :  { %5074 = vmatprep.subr.bf16.mxu1 %v5525_v40 }
 0x3c0   :  { %5075 = vmatpush3.bf16.msra.mxu1 %v5525_v40 }
 0x401   :  { %v6442_v17 = vpop.f32.mrf.mxu1 }
 0x403   :  { %v5016_v13 = vpop.f32.mrf.mxu1 }
 0x405   :  { %v6444_v57 = vpop.f32.mrf.mxu1  ;;  %v6446_v60 = vpop.f32.mrf.mxu0 }
 0x407   :  { %v5017_v16 = vpop.f32.mrf.mxu1  ;;  %v5022_v50 = vpop.f32.mrf.mxu0 }
 0x409   :  { %v6448_v22 = vpop.f32.mrf.mxu0 }
 0x40b   :  { %v5023_v35 = vpop.f32.mrf.mxu0 }
 0x44c   :  { %v1287_v29 = vpop.f32.mrf.mxu1 }
 0x44e   :  { %v5028_v63 = vpop.f32.mrf.mxu1 }
 0x450   :  { %v1290_v2 = vpop.f32.mrf.mxu1 }
 0x451   :  { %v5336_v47 = vpack.i.bf16 %v1290_v2, %v1287_v29 }
 0x452   :  { %v5029_v4 = vpop.f32.mrf.mxu1 }
 0x453   :  { %5337 = vrot.lane.b32.xlu0 %v5336_v47, %s5930_s0 }
 0x455   :  { %v1331_v54 = vpop.f32.mrf.mxu0 }
 0x457   :  { %v5034_v14 = vpop.f32.mrf.mxu0 }
 0x459   :  { %v1334_v43 = vpop.f32.mrf.mxu0 }
 0x45a   :  { %v5341_v51 = vpack.i.bf16 %v1334_v43, %v1331_v54 }
 0x45b   :  { %v1375_v18 = vpop.f32.mrf.mxu1  ;;  %v5035_v21 = vpop.f32.mrf.mxu0 }
 0x45c   :  { %5342 = vrot.lane.b32.xlu1 %v5341_v51, %s5930_s0 }
 0x45d   :  { %v5040_v23 = vpop.f32.mrf.mxu1 }
 0x45f   :  { %v1378_v27 = vpop.f32.mrf.mxu1  ;;  %v1419_v28 = vpop.f32.mrf.mxu0 }
 0x460   :  { %v5346_v38 = vpack.i.bf16 %v1378_v27, %v1375_v18 }
 0x461   :  { %v5041_v39 = vpop.f32.mrf.mxu1  ;;  %v5046_v41 = vpop.f32.mrf.mxu0 }
 0x462   :  { %5347 = vrot.lane.b32.xlu0 %v5346_v38, %s5923_s24  ;;  %v5845_v41 = vld [vmem:[%s7311_s4 + $0x8] sm:$0xff] }
 0x463   :  { %v1422_v32 = vpop.f32.mrf.mxu0  ;;  %v1463_v42 = vpop.f32.mrf.mxu1 }
 0x464   :  { %v5351_v61 = vpack.i.bf16 %v1422_v32, %v1419_v28  ;;  %v5846_v32 = vld [vmem:[%s7311_s4 + $0x10] sm:$0xff] }
 0x465   :  { %v5047_v5 = vpop.f32.mrf.mxu0  ;;  %v5052_v46 = vpop.f32.mrf.mxu1 }
 0x466   :  { %5352 = vrot.lane.b32.xlu1 %v5351_v61, %s5923_s24  ;;  %v5847_v61 = vld [vmem:[%s7311_s4 + $0x18] sm:$0xff] }
 0x467   :  { %v1466_v45 = vpop.f32.mrf.mxu1  ;;  %v1507_v59 = vpop.f32.mrf.mxu0  ;;  %v5526_v46 = vld [vmem:[%s7300_s8 + $0x70] ss:$8 sps:$4 sm:$0xff]  }
 0x468   :  { %v5356_v58 = vpack.i.bf16 %v1466_v45, %v1463_v42  ;;  %v5528_v45 = vld [vmem:[%s7300_s8 + $0x74] ss:$8 sps:$4 sm:$0xff]  }
 0x469   :  { %v5053_v56 = vpop.f32.mrf.mxu1  ;;  %v5058_v48 = vpop.f32.mrf.mxu0  ;;  %1879 = vmatprep.subr.bf16.mxu0 %v5528_v45 }
 0x46a   :  { %5357 = vrot.lane.b32.xlu0 %v5356_v58, %s5929_s30  ;;  %1880 = vmatpush1.bf16.msra.mxu0 %v5526_v46 }
 0x46b   :  { %v1510_v49 = vpop.f32.mrf.mxu0 }
 0x46c   :  { %v5361_v6 = vpack.i.bf16 %v1510_v49, %v1507_v59 }
 0x46d   :  { %v5059_v1 = vpop.f32.mrf.mxu0 }
 0x46e   :  { %5362 = vrot.lane.b32.xlu1 %v5361_v6, %s5929_s30 }
 0x4c5   :  { %v5338_v52 = vpop.permute.xlu0 %5337 }
 0x4c6   :  { %v5340_v53 = vunpack.i.h.bf16 %v5338_v52  ;;  %v5339_v9 = vunpack.i.l.bf16 %v5338_v52 }
 0x4c8   :  { %v1563_v24 = vsel %vm520_vm1, %v6444_v57, %v5340_v53  ;;  %v1562_v8 = vsel %vm520_vm1, %v6442_v17, %v5339_v9 }
 0x4ce   :  { %v5343_v3 = vpop.permute.xlu1 %5342 }
 0x4cf   :  { %v5345_v11 = vunpack.i.h.bf16 %v5343_v3  ;;  %v5344_v12 = vunpack.i.l.bf16 %v5343_v3 }
 0x4d1   :  { %v1565_v17 = vsel %vm520_vm1, %v6448_v22, %v5345_v11  ;;  %v1564_v47 = vsel %vm520_vm1, %v6446_v60, %v5344_v12  ;;  %v4546_v22 = vld [vmem:[%s7297_s5] ss:$0 sm:$0xff]  ;;  %v5534_v11 = vld [vmem:[%s7300_s8 + $0x54] ss:$8 sps:$4 sm:$0xff]   ;;  %v5532_v12 = vld [vmem:[%s7300_s8 + $0x50] ss:$8 sps:$4 sm:$0xff]  }
 0x4d4   :  { %v5348_v19 = vpop.permute.xlu0 %5347 }
 0x4d5   :  { %v5350_v20 = vunpack.i.h.bf16 %v5348_v19  ;;  %v5349_v55 = vunpack.i.l.bf16 %v5348_v19 }
 0x4d7   :  { %v1568_v50 = vsel %vm1566_vm3, %v1563_v24, %v5350_v20  ;;  %v1567_v35 = vsel %vm1566_vm3, %v1562_v8, %v5349_v55  ;;  %v5531_v8 = vld [vmem:[%s7300_s8 + $0x64] ss:$8 sps:$4 sm:$0xff]  }
 0x4d8   :  { %v5353_v7 = vpop.permute.xlu1 %5352  ;;  %1881 = vmatprep.subr.bf16.mxu0 %v5531_v8  ;;  %v5562_v8 = vld [vmem:[%s7302_s10 + $0x48] sm:$0xff]  }
 0x4d9   :  { %v5355_v37 = vunpack.i.h.bf16 %v5353_v7  ;;  %v5354_v62 = vunpack.i.l.bf16 %v5353_v7 }
 0x4db   :  { %v1570_v54 = vsel %vm1566_vm3, %v1565_v17, %v5355_v37  ;;  %v1569_v30 = vsel %vm1566_vm3, %v1564_v47, %v5354_v62  ;;  %v5543_v37 = vld [vmem:[%s7300_s8 + $0x24] ss:$8 sps:$4 sm:$0xff]   ;;  %v5541_v62 = vld [vmem:[%s7300_s8 + $0x20] ss:$8 sps:$4 sm:$0xff]  }
 0x4dc   :  { %v5358_v10 = vpop.permute.xlu0 %5357 }
 0x4dd   :  { %v5360_v13 = vunpack.i.h.bf16 %v5358_v10  ;;  %v5359_v16 = vunpack.i.l.bf16 %v5358_v10  ;;  %v5529_v10 = vld [vmem:[%s7300_s8 + $0x60] ss:$8 sps:$4 sm:$0xff]  }
 0x4de   :  { %1882 = vmatpush1.bf16.msra.mxu0 %v5529_v10  ;;  %v5563_v10 = vld [vmem:[%s7302_s10 + $0x8] sm:$0xff]  }
 0x4df   :  { %v1572_v29 = vsel %vm1571_vm4, %v1567_v35, %v5359_v16  ;;  %v1573_v63 = vsel %vm1571_vm4, %v1568_v50, %v5360_v13  ;;  %1883 = vmatprep.subr.bf16.mxu0 %v5534_v11  ;;  %v5537_v13 = vld [vmem:[%s7300_s8 + $0x44] ss:$8 sps:$4 sm:$0xff]   ;;  %v5535_v16 = vld [vmem:[%s7300_s8 + $0x40] ss:$8 sps:$4 sm:$0xff]   ;;  %v5538_v50 = vld [vmem:[%s7300_s8 + $0x30] ss:$8 sps:$4 sm:$0xff]  }
 0x4e0   :  { %v5363_v57 = vpop.permute.xlu1 %5362  ;;  %v1576_v2 = vpack.c.bf16 %v1573_v63, %v1572_v29  ;;  %v5540_v35 = vld [vmem:[%s7300_s8 + $0x34] ss:$8 sps:$4 sm:$0xff]   ;;  %v5544_v63 = vld [vmem:[%s7300_s8 + $0x10] ss:$8 sps:$4 sm:$0xff]   ;;  %v5564_v11 = vld [vmem:[%s7302_s10 + $0x40] sm:$0xff]  }
 0x4e1   :  { %v5365_v44 = vunpack.i.h.bf16 %v5363_v57  ;;  %v5364_v4 = vunpack.i.l.bf16 %v5363_v57  ;;  %v5546_v29 = vld [vmem:[%s7300_s8 + $0x14] ss:$8 sps:$4 sm:$0xff]   ;;  %v5549_v57 = vld [vmem:[%s7300_s8 + $0x4] ss:$8 sps:$4 sm:$0xff]  }
 0x4e2   :  { %5076 = vmatprep.mubr.bf16.mxu1 %v1576_v2  ;;  %1884 = vmatpush1.bf16.msra.mxu0 %v5532_v12  ;;  %v5547_v2 = vld [vmem:[%s7300_s8] ss:$8 sps:$4 sm:$0xff]  }
 0x4e3   :  { %v1575_v14 = vsel %vm1571_vm4, %v1570_v54, %v5365_v44  ;;  %v1574_v43 = vsel %vm1571_vm4, %v1569_v30, %v5364_v4  ;;  %1885 = vmatprep.subr.bf16.mxu0 %v5537_v13  ;;  %v5565_v12 = vld [vmem:[%s7302_s10] sm:$0xff]  }
 0x4e4   :  { %v1577_v15 = vpack.c.bf16 %v1575_v14, %v1574_v43  ;;  %v1787_v13 = vld [vmem:[%s7301_s9] sm:$0x3] }
 0x4e6   :  { %5077 = vmatmul.mubr.bf16.vlgmr.msra.gmra.mxu1 %v1577_v15  ;;  %1886 = vmatpush1.bf16.msra.mxu0 %v5535_v16  ;;  %v1792_v16 = vrot.slane %v1787_v13, %v6122_v34 }
 0x4e7   :  { %1887 = vmatprep.subr.bf16.mxu0 %v5540_v35 }
 0x4ea   :  { %1888 = vmatpush1.bf16.msra.mxu0 %v5538_v50  ;;  %v1796_v50 = vrot.slane %v1787_v13, %v6130_v36 }
 0x4eb   :  { %1889 = vmatprep.subr.bf16.mxu0 %v5543_v37 }
 0x4ee   :  { %1890 = vmatpush1.bf16.msra.mxu0 %v5541_v62 }
 0x4ef   :  { %1891 = vmatprep.subr.bf16.mxu0 %v5546_v29 }
 0x4f2   :  { %1892 = vmatpush1.bf16.msra.mxu0 %v5544_v63 }
 0x4f3   :  { %1893 = vmatprep.subr.bf16.mxu0 %v5549_v57 }
 0x4f6   :  { %1894 = vmatpush1.bf16.msra.mxu0 %v5547_v2 }
 0x5a6   :  { %v5078_v51 = vpop.f32.mrf.mxu1 }
 0x5a7   :  { %v1692_v23 = vadd.f32 %v5078_v51, %v4546_v22 }
 0x5a8   :  { %v1683_v18 = vpop.f32.mrf.mxu1 }
 0x5a9   :  { %v1684_v60 = vadd.f32 %v4546_v22, %v1683_v18  ;;  %v1700_v42 = vadd.f32 %v5846_v32, %v1692_v23  ;;  %v4555_v23 = vld [vmem:[%s7298_s6] ss:$0 sm:$0xff] }
 0x5aa   :  { %v5079_v21 = vpop.f32.mrf.mxu1 }
 0x5ab   :  { %v1698_v27 = vadd.f32 %v5844_v25, %v1684_v60  ;;  %v1695_v39 = vadd.f32 %v5079_v21, %v4546_v22 }
 0x5ac   :  { %v1686_v28 = vpop.f32.mrf.mxu1 }
 0x5ad   :  { %v1687_v38 = vadd.f32 %v4546_v22, %v1686_v28  ;;  %1704 = vadd.xlane.f32.xlu0 %v1698_v27  ;;  %v1701_v5 = vadd.f32 %v5847_v61, %v1695_v39  ;;  %v4556_v39 = vld [vmem:[%s7299_s7] ss:$0 sm:$0xff] }
 0x5af   :  { %v1699_v40 = vadd.f32 %v5845_v41, %v1687_v38 }
 0x5b1   :  { %1706 = vadd.xlane.f32.xlu1 %v1699_v40  ;;  %1708 = vadd.xlane.f32.xlu0 %v1700_v42 }
 0x5b5   :  { %1710 = vadd.xlane.f32.xlu0 %v1701_v5 }
 0x636   :  { %v1705_v59 = vpop.xlane.xlu0 %1704 }
 0x637   :  { %v1713_v58 = vmul.f32 0.0078125, %v1705_v59 }
 0x639   :  { %v6493_v56 = vsub.f32 %v1698_v27, %v1713_v58 }
 0x63a   :  { %v1707_v48 = vpop.xlane.xlu1 %1706  ;;  %v1709_v49 = vpop.xlane.xlu0 %1708 }
 0x63b   :  { %v1714_v6 = vmul.f32 0.0078125, %v1707_v48  ;;  %v1715_v1 = vmul.f32 0.0078125, %v1709_v49  ;;  %v1721_v52 = vmul.f32 %v6493_v56, %v6493_v56  ;;  %v5550_v49 = vld [vmem:[%s7302_s10 + $0x78] sm:$0xff]  }
 0x63c   :  { %4827 = vmatprep.subr.bf16.mxu1 %v5550_v49 }
 0x63d   :  { %v1718_v3 = vsub.f32 %v1699_v40, %v1714_v6  ;;  %v6497_v19 = vsub.f32 %v1700_v42, %v1715_v1  ;;  %1725 = vadd.xlane.f32.xlu1 %v1721_v52  ;;  %v5551_v6 = vld [vmem:[%s7302_s10 + $0x38] sm:$0xff]   ;;  %v5552_v1 = vld [vmem:[%s7302_s10 + $0x70] sm:$0xff]  }
 0x63e   :  { %v1711_v53 = vpop.xlane.xlu0 %1710  ;;  %4828 = vmatpush3.bf16.msra.mxu1 %v5551_v6  ;;  %v5553_v52 = vld [vmem:[%s7302_s10 + $0x30] sm:$0xff]  }
 0x63f   :  { %v1716_v9 = vmul.f32 0.0078125, %v1711_v53  ;;  %v1722_v20 = vmul.f32 %v1718_v3, %v1718_v3  ;;  %v1723_v55 = vmul.f32 %v6497_v19, %v6497_v19  ;;  %4829 = vmatprep.subr.bf16.mxu1 %v5552_v1  ;;  %v5556_v53 = vld [vmem:[%s7302_s10 + $0x60] sm:$0xff]  }
 0x641   :  { %v1720_v7 = vsub.f32 %v1701_v5, %v1716_v9  ;;  %1727 = vadd.xlane.f32.xlu0 %v1722_v20  ;;  %1729 = vadd.xlane.f32.xlu1 %v1723_v55  ;;  %v5557_v9 = vld [vmem:[%s7302_s10 + $0x20] sm:$0xff]   ;;  %v5558_v20 = vld [vmem:[%s7302_s10 + $0x58] sm:$0xff]  }
 0x642   :  { %4830 = vmatpush3.bf16.msra.mxu1 %v5553_v52  ;;  %v5559_v55 = vld [vmem:[%s7302_s10 + $0x18] sm:$0xff]  }
 0x643   :  { %v1724_v24 = vmul.f32 %v1720_v7, %v1720_v7 }
 0x645   :  { %1731 = vadd.xlane.f32.xlu0 %v1724_v24  ;;  %v5561_v24 = vld [vmem:[%s7302_s10 + $0x10] sm:$0xff]  }
 0x6c6   :  { %v1726_v17 = vpop.xlane.xlu1 %1725 }
 0x6c7   :  { %v1733_v47 = vmul.f32 0.0078125, %v1726_v17 }
 0x6c9   :  { %v1737_v44 = vadd.f32 1e-12, %v1733_v47 }
 0x6ca   :  { %v1730_v4 = vpop.xlane.xlu1 %1729  ;;  %v1728_v54 = vpop.xlane.xlu0 %1727 }
 0x6cb   :  { %5718 = vrsqrt.f32 %v1737_v44  ;;  %v1735_v30 = vmul.f32 0.0078125, %v1730_v4  ;;  %v1734_v14 = vmul.f32 0.0078125, %v1728_v54 }
 0x6cd   :  { %v1738_v43 = vadd.f32 1e-12, %v1734_v14  ;;  %v1739_v15 = vadd.f32 1e-12, %v1735_v30 }
 0x6ce   :  { %v1732_v51 = vpop.xlane.xlu0 %1731 }
 0x6cf   :  { %v1736_v22 = vmul.f32 0.0078125, %v1732_v51  ;;  %5720 = vrsqrt.f32 %v1738_v43 }
 0x6d0   :  { %5722 = vrsqrt.f32 %v1739_v15 }
 0x6d1   :  { %v1740_v18 = vadd.f32 1e-12, %v1736_v22 }
 0x6d3   :  { %5724 = vrsqrt.f32 %v1740_v18 }
 0x6d8   :  { %v5719_v60 = vpop.eup %5718 }
 0x6d9   :  { %v1745_v21 = vmul.f32 %v5719_v60, %v6493_v56 }
 0x6db   :  { %v1755_v28 = vmul.f32 %v4555_v23, %v1745_v21 }
 0x6dc   :  { %v5721_v25 = vpop.eup %5720 }
 0x6dd   :  { %v1746_v27 = vmul.f32 %v5721_v25, %v1718_v3  ;;  %v5723_v38 = vpop.eup %5722  ;;  %v6550_v42 = vadd.f32 %v4556_v39, %v1755_v28  ;;  %v5554_v3 = vld [vmem:[%s7302_s10 + $0x68] sm:$0xff]  }
 0x6de   :  { %v1747_v5 = vmul.f32 %v5723_v38, %v6497_v19  ;;  %v5555_v19 = vld [vmem:[%s7302_s10 + $0x28] sm:$0xff]   ;;  %4831 = vmatprep.subr.bf16.mxu1 %v5554_v3 }
 0x6df   :  { %v1756_v40 = vmul.f32 %v4555_v23, %v1746_v27  ;;  %4832 = vmatpush3.bf16.msra.mxu1 %v5555_v19 }
 0x6e0   :  { %v5725_v41 = vpop.eup %5724  ;;  %v1757_v59 = vmul.f32 %v4555_v23, %v1747_v5  ;;  %4833 = vmatprep.subr.bf16.mxu1 %v5556_v53 }
 0x6e1   :  { %v1748_v32 = vmul.f32 %v5725_v41, %v1720_v7  ;;  %v6552_v61 = vadd.f32 %v4556_v39, %v1756_v40  ;;  %v5560_v7 = vld [vmem:[%s7302_s10 + $0x50] sm:$0xff]  }
 0x6e2   :  { %v6560_v56 = vadd.f32 %v4556_v39, %v1757_v59 }
 0x6e3   :  { %v1769_v46 = vpack.c.bf16 %v6552_v61, %v6550_v42  ;;  %v1758_v45 = vmul.f32 %v4555_v23, %v1748_v32  ;;  %4834 = vmatpush3.bf16.msra.mxu1 %v5557_v9 }
 0x6e4   :  { %4835 = vmatprep.subr.bf16.mxu1 %v5558_v20 }
 0x6e5   :  { %1912 = vmatmul.mubr.bf16.vlgmr.msra.gmra.mxu0 %v1769_v46  ;;  %v6558_v58 = vadd.f32 %v4556_v39, %v1758_v45 }
 0x6e6   :  { %1921 = vmatprep.mubr.bf16.mxu0 %v5926_v0 }
 0x6e7   :  { %v1770_v48 = vpack.c.bf16 %v6558_v58, %v6560_v56  ;;  %4836 = vmatpush3.bf16.msra.mxu1 %v5559_v55 }
 0x6e8   :  { %4837 = vmatprep.subr.bf16.mxu1 %v5560_v7 }
 0x6eb   :  { %4838 = vmatpush3.bf16.msra.mxu1 %v5561_v24 }
 0x6ec   :  { %4839 = vmatprep.subr.bf16.mxu1 %v5562_v8 }
 0x6ed   :  { %1922 = vmatmul.mubr.bf16.gmra.mxu0 %v1770_v48 }
 0x6ee   :  { %2475 = vmatprep.mubr.bf16.mxu0 %v5926_v0 }
 0x6ef   :  { %4840 = vmatpush3.bf16.msra.mxu1 %v5563_v10 }
 0x6f0   :  { %4841 = vmatprep.subr.bf16.mxu1 %v5564_v11 }
 0x6f3   :  { %4842 = vmatpush3.bf16.msra.mxu1 %v5565_v12 }
 0x7a5   :  { %v1913_v35 = vpop.f32.mrf.mxu0 }
 0x7a6   :  { %v6618_v37 = vadd.f32 %v1913_v35, %v1792_v16 }
 0x7a7   :  { %v1915_v62 = vpop.f32.mrf.mxu0 }
 0x7a8   :  { %v1940_v29 = vmul.f32 0.044715, %v6618_v37  ;;  %v6621_v63 = vadd.f32 %v1915_v62, %v1796_v50 }
 0x7a9   :  { %v1917_v57 = vpop.f32.mrf.mxu0 }
 0x7aa   :  { %v1948_v2 = vmul.f32 %v1940_v29, %v6618_v37  ;;  %v1941_v17 = vmul.f32 0.044715, %v6621_v63  ;;  %v1918_v47 = vadd.f32 %v1917_v57, %v1792_v16 }
 0x7ab   :  { %v1919_v44 = vpop.f32.mrf.mxu0 }
 0x7ac   :  { %v1956_v4 = vmul.f32 %v1948_v2, %v6618_v37  ;;  %v1949_v54 = vmul.f32 %v1941_v17, %v6621_v63  ;;  %v1942_v30 = vmul.f32 0.044715, %v1918_v47  ;;  %v1920_v14 = vadd.f32 %v1919_v44, %v1796_v50 }
 0x7ad   :  { %v1923_v43 = vpop.f32.mrf.mxu0 }
 0x7ae   :  { %v1964_v15 = vadd.f32 %v1956_v4, %v6618_v37  ;;  %v1957_v51 = vmul.f32 %v1949_v54, %v6621_v63  ;;  %v1950_v22 = vmul.f32 %v1942_v30, %v1918_v47  ;;  %v1943_v18 = vmul.f32 0.044715, %v1920_v14 }
 0x7af   :  { %v6629_v60 = vadd.f32 %v1923_v43, %v1792_v16  ;;  %v1925_v21 = vpop.f32.mrf.mxu0  ;;  %v1934_v54 = vmul.f32 0.5, %v1918_v47  ;;  %v1933_v43 = vmul.f32 0.5, %v6621_v63 }
 0x7b0   :  { %v1972_v23 = vmul.f32 0.7978846, %v1964_v15  ;;  %v1958_v25 = vmul.f32 %v1950_v22, %v1918_v47  ;;  %v1951_v27 = vmul.f32 %v1943_v18, %v1920_v14  ;;  %v6631_v28 = vadd.f32 %v1925_v21, %v1796_v50 }
 0x7b1   :  { %v1944_v38 = vmul.f32 0.044715, %v6629_v60  ;;  %v1927_v39 = vpop.f32.mrf.mxu0  ;;  %v1965_v41 = vadd.f32 %v1957_v51, %v6621_v63  ;;  %v1935_v15 = vmul.f32 0.5, %v1920_v14  ;;  %v1932_v22 = vmul.f32 0.5, %v6618_v37 }
 0x7b2   :  { %v1966_v40 = vadd.f32 %v1958_v25, %v1918_v47  ;;  %v1959_v32 = vmul.f32 %v1951_v27, %v1920_v14  ;;  %v1945_v5 = vmul.f32 0.044715, %v6631_v28  ;;  %5726 = vtanh.f32 %v1972_v23 }
 0x7b3   :  { %v1952_v46 = vmul.f32 %v1944_v38, %v6629_v60  ;;  %v1928_v45 = vadd.f32 %v1927_v39, %v1792_v16  ;;  %v1929_v59 = vpop.f32.mrf.mxu0  ;;  %v1973_v48 = vmul.f32 0.7978846, %v1965_v41 }
 0x7b4   :  { %v1974_v49 = vmul.f32 0.7978846, %v1966_v40  ;;  %v1953_v6 = vmul.f32 %v1945_v5, %v6631_v28  ;;  %v1930_v1 = vadd.f32 %v1929_v59, %v1796_v50  ;;  %v1967_v52 = vadd.f32 %v1959_v32, %v1920_v14 }
 0x7b5   :  { %v1960_v3 = vmul.f32 %v1952_v46, %v6629_v60  ;;  %v1946_v19 = vmul.f32 0.044715, %v1928_v45  ;;  %5728 = vtanh.f32 %v1973_v48  ;;  %v1938_v47 = vmul.f32 0.5, %v1928_v45 }
 0x7b6   :  { %5730 = vtanh.f32 %v1974_v49  ;;  %v1961_v53 = vmul.f32 %v1953_v6, %v6631_v28  ;;  %v1947_v9 = vmul.f32 0.044715, %v1930_v1  ;;  %v1975_v20 = vmul.f32 0.7978846, %v1967_v52 }
 0x7b7   :  { %v1954_v55 = vmul.f32 %v1946_v19, %v1928_v45  ;;  %v1968_v7 = vadd.f32 %v1960_v3, %v6629_v60  ;;  %v1937_v14 = vmul.f32 0.5, %v6631_v28  ;;  %v1939_v59 = vmul.f32 0.5, %v1930_v1 }
 0x7b8   :  { %v1955_v24 = vmul.f32 %v1947_v9, %v1930_v1  ;;  %5732 = vtanh.f32 %v1975_v20  ;;  %v1969_v8 = vadd.f32 %v1961_v53, %v6631_v28  ;;  %v1936_v48 = vmul.f32 0.5, %v6629_v60 }
 0x7b9   :  { %v1962_v10 = vmul.f32 %v1954_v55, %v1928_v45  ;;  %v1976_v11 = vmul.f32 0.7978846, %v1968_v7 }
 0x7ba   :  { %v1963_v12 = vmul.f32 %v1955_v24, %v1930_v1  ;;  %v1977_v13 = vmul.f32 0.7978846, %v1969_v8 }
 0x7bb   :  { %v1970_v16 = vadd.f32 %v1962_v10, %v1928_v45  ;;  %v4573_v45 = vld [vmem:[%s7303_s11] ss:$0 sm:$0xff] }
 0x7bc   :  { %v1971_v50 = vadd.f32 %v1963_v12, %v1930_v1  ;;  %5734 = vtanh.f32 %v1977_v13 }
 0x7bd   :  { %v1978_v35 = vmul.f32 0.7978846, %v1970_v16  ;;  %5736 = vtanh.f32 %v1976_v11 }
 0x7be   :  { %v1979_v62 = vmul.f32 0.7978846, %v1971_v50 }
 0x7bf   :  { %5738 = vtanh.f32 %v1978_v35  ;;  %v5727_v29 = vpop.eup %5726 }
 0x7c0   :  { %5740 = vtanh.f32 %v1979_v62  ;;  %v1988_v30 = vadd.f32 1.0, %v5727_v29 }
 0x7c2   :  { %v5729_v57 = vpop.eup %5728  ;;  %v1996_v27 = vmul.f32 %v1988_v30, %v1932_v22 }
 0x7c3   :  { %v5731_v2 = vpop.eup %5730  ;;  %v1989_v17 = vadd.f32 1.0, %v5729_v57 }
 0x7c4   :  { %v1990_v44 = vadd.f32 1.0, %v5731_v2 }
 0x7c5   :  { %v5733_v4 = vpop.eup %5732  ;;  %v1997_v21 = vmul.f32 %v1989_v17, %v1933_v43 }
 0x7c6   :  { %v1991_v51 = vadd.f32 1.0, %v5733_v4  ;;  %v1998_v18 = vmul.f32 %v1990_v44, %v1934_v54 }
 0x7c8   :  { %v1999_v23 = vmul.f32 %v1991_v51, %v1935_v15  ;;  %v2004_v41 = vpack.c.bf16 %v1998_v18, %v1996_v27 }
 0x7c9   :  { %v5735_v25 = vpop.eup %5734 }
 0x7ca   :  { %v5737_v38 = vpop.eup %5736  ;;  %v2005_v39 = vpack.c.bf16 %v1999_v23, %v1997_v21  ;;  %v1993_v32 = vadd.f32 1.0, %v5735_v25 }
 0x7cb   :  { %v1992_v46 = vadd.f32 1.0, %v5737_v38  ;;  %v5571_v38 = vld [vmem:[%s7294_s2 + $0x154] ss:$12 sps:$4 sm:$0xff]  }
 0x7cc   :  { %v5739_v40 = vpop.eup %5738  ;;  %2175 = vmatprep.mubr.bf16.mxu1 %v2005_v39  ;;  %v2001_v6 = vmul.f32 %v1993_v32, %v1937_v14  ;;  %v5569_v39 = vld [vmem:[%s7294_s2 + $0x150] ss:$12 sps:$4 sm:$0xff]   ;;  %v5572_v32 = vld [vmem:[%s7294_s2 + $0x138] ss:$12 sps:$4 sm:$0xff]   ;;  %v5583_v14 = vld [vmem:[%s7294_s2 + $0x140] ss:$12 sps:$4 sm:$0xff]  }
 0x7cd   :  { %v5741_v5 = vpop.eup %5740  ;;  %2176 = vmatmul.mubr.bf16.vlgmr.msra.gmra.mxu1 %v2004_v41  ;;  %v1994_v63 = vadd.f32 1.0, %v5739_v40  ;;  %v2000_v3 = vmul.f32 %v1992_v46, %v1936_v48  ;;  %v5574_v41 = vld [vmem:[%s7294_s2 + $0x13c] ss:$12 sps:$4 sm:$0xff]   ;;  %v5576_v46 = vld [vmem:[%s7294_s2 + $0x120] ss:$12 sps:$4 sm:$0xff]  }
 0x7ce   :  { %v1995_v37 = vadd.f32 1.0, %v5741_v5  ;;  %v5575_v40 = vld [vmem:[%s7294_s2 + $0x170] ss:$12 sps:$4 sm:$0xff]   ;;  %v5587_v48 = vld [vmem:[%s7294_s2 + $0x128] ss:$12 sps:$4 sm:$0xff]  }
 0x7cf   :  { %v2002_v49 = vmul.f32 %v1994_v63, %v1938_v47  ;;  %5080 = vmatprep.subr.bf16.mxu1 %v5575_v40  ;;  %v5578_v5 = vld [vmem:[%s7294_s2 + $0x124] ss:$12 sps:$4 sm:$0xff]   ;;  %v5582_v63 = vld [vmem:[%s7294_s2 + $0x10c] ss:$12 sps:$4 sm:$0xff]  }
 0x7d0   :  { %v2003_v52 = vmul.f32 %v1995_v37, %v1939_v59  ;;  %5081 = vmatpush3.bf16.msra.mxu1 %v5575_v40  ;;  %v5579_v47 = vld [vmem:[%s7294_s2 + $0x158] ss:$12 sps:$4 sm:$0xff]   ;;  %v5580_v59 = vld [vmem:[%s7294_s2 + $0x108] ss:$12 sps:$4 sm:$0xff]  }
 0x7d1   :  { %v2006_v53 = vpack.c.bf16 %v2002_v49, %v2000_v3  ;;  %5082 = vmatprep.subr.bf16.mxu1 %v5579_v47  ;;  %v5586_v37 = vld [vmem:[%s7294_s2 + $0xf4] ss:$12 sps:$4 sm:$0xff]   ;;  %v5584_v49 = vld [vmem:[%s7294_s2 + $0xf0] ss:$12 sps:$4 sm:$0xff]   ;;  %v5588_v3 = vld [vmem:[%s7294_s2 + $0xd8] ss:$12 sps:$4 sm:$0xff]  }
 0x7d2   :  { %v2007_v19 = vpack.c.bf16 %v2003_v52, %v2001_v6  ;;  %v5590_v6 = vld [vmem:[%s7294_s2 + $0xdc] ss:$12 sps:$4 sm:$0xff]  }
 0x7d3   :  { %v5591_v52 = vld [vmem:[%s7294_s2 + $0x110] ss:$12 sps:$4 sm:$0xff]  }
 0x7d4   :  { %2183 = vmatprep.mubr.bf16.mxu1 %v2007_v19  ;;  %5083 = vmatpush3.bf16.msra.mxu1 %v5579_v47  ;;  %v5594_v19 = vld [vmem:[%s7294_s2 + $0xc4] ss:$12 sps:$4 sm:$0xff]  }
 0x7d5   :  { %2184 = vmatmul.mubr.bf16.gmra.mxu1 %v2006_v53  ;;  %5084 = vmatprep.subr.bf16.mxu1 %v5583_v14  ;;  %v5595_v53 = vld [vmem:[%s7294_s2 + $0xf8] ss:$12 sps:$4 sm:$0xff]  }
 0x7d8   :  { %5085 = vmatpush3.bf16.msra.mxu1 %v5583_v14 }
 0x7d9   :  { %5086 = vmatprep.subr.bf16.mxu1 %v5587_v48 }
 0x7dc   :  { %5087 = vmatpush3.bf16.msra.mxu1 %v5587_v48 }
 0x7dd   :  { %5088 = vmatprep.subr.bf16.mxu1 %v5591_v52 }
 0x7e0   :  { %5089 = vmatpush3.bf16.msra.mxu1 %v5591_v52 }
 0x7e1   :  { %5090 = vmatprep.subr.bf16.mxu1 %v5595_v53 }
 0x7e4   :  { %5091 = vmatpush3.bf16.msra.mxu1 %v5595_v53 }
 0x88d   :  { %v4843_v9 = vpop.f32.mrf.mxu1 }
 0x88f   :  { %v4844_v20 = vpop.f32.mrf.mxu1 }
 0x890   :  { %v4845_v55 = vadd.f32 %v4844_v20, %v4843_v9  ;;  %v5592_v9 = vld [vmem:[%s7294_s2 + $0xc0] ss:$12 sps:$4 sm:$0xff]   ;;  %v5597_v20 = vld [vmem:[%s7294_s2 + $0xc8] ss:$12 sps:$4 sm:$0xff]  }
 0x891   :  { %v4846_v28 = vpop.f32.mrf.mxu1 }
 0x892   :  { %v2178_v1 = vadd.f32 %v4845_v55, %v4573_v45 }
 0x893   :  { %v4847_v7 = vpop.f32.mrf.mxu1 }
 0x894   :  { %v4848_v24 = vadd.f32 %v4847_v7, %v4846_v28  ;;  %v2192_v60 = vadd.f32 %v2178_v1, %v6550_v42  ;;  %v5566_v42 = vld [vmem:[%s7294_s2 + $0x168] ss:$12 sps:$4 sm:$0xff]  }
 0x895   :  { %v4849_v8 = vpop.f32.mrf.mxu1 }
 0x896   :  { %v2181_v10 = vadd.f32 %v4848_v24, %v4573_v45  ;;  %2198 = vadd.xlane.f32.xlu1 %v2192_v60 }
 0x897   :  { %v4850_v11 = vpop.f32.mrf.mxu1 }
 0x898   :  { %v4851_v12 = vadd.f32 %v4850_v11, %v4849_v8  ;;  %v2193_v13 = vadd.f32 %v2181_v10, %v6552_v61  ;;  %v5568_v61 = vld [vmem:[%s7294_s2 + $0x16c] ss:$12 sps:$4 sm:$0xff]  }
 0x899   :  { %v4852_v16 = vpop.f32.mrf.mxu1  ;;  %2443 = vmatprep.subr.bf16.mxu0 %v5568_v61 }
 0x89a   :  { %v2186_v50 = vadd.f32 %v4851_v12, %v4573_v45  ;;  %2200 = vadd.xlane.f32.xlu0 %v2193_v13  ;;  %2444 = vmatpush1.bf16.msra.mxu0 %v5566_v42  ;;  %v4591_v42 = vld [vmem:[%s7305_s13] ss:$0 sm:$0xff] }
 0x89b   :  { %v4853_v35 = vpop.f32.mrf.mxu1  ;;  %2445 = vmatprep.subr.bf16.mxu0 %v5571_v38 }
 0x89c   :  { %v4854_v62 = vadd.f32 %v4853_v35, %v4852_v16  ;;  %v2194_v29 = vadd.f32 %v2186_v50, %v6560_v56 }
 0x89e   :  { %v2189_v57 = vadd.f32 %v4854_v62, %v4573_v45  ;;  %2202 = vadd.xlane.f32.xlu1 %v2194_v29  ;;  %2446 = vmatpush1.bf16.msra.mxu0 %v5569_v39  ;;  %v5596_v45 = vld [vmem:[%s7294_s2 + $0xe0] ss:$12 sps:$4 sm:$0xff]  }
 0x89f   :  { %2447 = vmatprep.subr.bf16.mxu0 %v5574_v41  ;;  %5092 = vmatprep.subr.bf16.mxu1 %v5596_v45  ;;  %v4590_v62 = vld [vmem:[%s7304_s12] ss:$0 sm:$0xff] }
 0x8a0   :  { %v2195_v2 = vadd.f32 %v2189_v57, %v6558_v58  ;;  %5093 = vmatpush3.bf16.msra.mxu1 %v5596_v45 }
 0x8a1   :  { %5094 = vmatprep.subr.bf16.mxu1 %v5597_v20 }
 0x8a2   :  { %2204 = vadd.xlane.f32.xlu0 %v2195_v2  ;;  %2448 = vmatpush1.bf16.msra.mxu0 %v5572_v32 }
 0x8a3   :  { %2449 = vmatprep.subr.bf16.mxu0 %v5578_v5 }
 0x8a4   :  { %5095 = vmatpush3.bf16.msra.mxu1 %v5597_v20 }
 0x8a5   :  { %5118 = vmatprep.subr.bf16.mxu1 %v5927_v31 }
 0x8a6   :  { %2450 = vmatpush1.bf16.msra.mxu0 %v5576_v46 }
 0x8a7   :  { %2451 = vmatprep.subr.bf16.mxu0 %v5582_v63 }
 0x8aa   :  { %2452 = vmatpush1.bf16.msra.mxu0 %v5580_v59 }
 0x8ab   :  { %2453 = vmatprep.subr.bf16.mxu0 %v5586_v37 }
 0x8ae   :  { %2454 = vmatpush1.bf16.msra.mxu0 %v5584_v49 }
 0x8af   :  { %2455 = vmatprep.subr.bf16.mxu0 %v5590_v6 }
 0x8b2   :  { %2456 = vmatpush1.bf16.msra.mxu0 %v5588_v3 }
 0x8b3   :  { %2457 = vmatprep.subr.bf16.mxu0 %v5594_v19 }
 0x8b6   :  { %2458 = vmatpush1.bf16.msra.mxu0 %v5592_v9 }
 0x8b7   :  { %5100 = vmatprep.subr.bf16.mxu0 %v5927_v31 }
 0x91f   :  { %v2199_v17 = vpop.xlane.xlu1 %2198 }
 0x920   :  { %v2206_v44 = vmul.f32 0.0078125, %v2199_v17 }
 0x922   :  { %v6659_v4 = vsub.f32 %v2192_v60, %v2206_v44 }
 0x923   :  { %v2201_v56 = vpop.xlane.xlu0 %2200 }
 0x924   :  { %v2207_v54 = vmul.f32 0.0078125, %v2201_v56  ;;  %v2214_v58 = vmul.f32 %v6659_v4, %v6659_v4 }
 0x926   :  { %v6663_v30 = vsub.f32 %v2193_v13, %v2207_v54  ;;  %2218 = vadd.xlane.f32.xlu1 %v2214_v58 }
 0x927   :  { %v2203_v43 = vpop.xlane.xlu1 %2202 }
 0x928   :  { %v2208_v15 = vmul.f32 0.0078125, %v2203_v43  ;;  %v2215_v51 = vmul.f32 %v6663_v30, %v6663_v30 }
 0x92a   :  { %v6667_v22 = vsub.f32 %v2194_v29, %v2208_v15  ;;  %2220 = vadd.xlane.f32.xlu0 %v2215_v51 }
 0x92b   :  { %v2205_v18 = vpop.xlane.xlu0 %2204 }
 0x92c   :  { %v2209_v21 = vmul.f32 0.0078125, %v2205_v18  ;;  %v2216_v23 = vmul.f32 %v6667_v22, %v6667_v22 }
 0x92e   :  { %v6671_v25 = vsub.f32 %v2195_v2, %v2209_v21  ;;  %2222 = vadd.xlane.f32.xlu1 %v2216_v23  ;;  %v4624_v23 = vld [vmem:[%s7295_s3 + $0x3] sm:$0x7] }
 0x92f   :  { %v2303_v41 = vrot.slane %v4624_v23, %v6122_v34  ;;  %v2311_v59 = vrot.slane %v4624_v23, %v141_v26 }
 0x930   :  { %v2217_v27 = vmul.f32 %v6671_v25, %v6671_v25 }
 0x932   :  { %2224 = vadd.xlane.f32.xlu0 %v2217_v27  ;;  %v2307_v27 = vrot.slane %v4624_v23, %v6130_v36 }
 0x9af   :  { %v2219_v55 = vpop.xlane.xlu1 %2218 }
 0x9b0   :  { %v2226_v28 = vmul.f32 0.0078125, %v2219_v55 }
 0x9b2   :  { %v2230_v1 = vadd.f32 1e-12, %v2226_v28 }
 0x9b3   :  { %v2221_v7 = vpop.xlane.xlu0 %2220 }
 0x9b4   :  { %5742 = vrsqrt.f32 %v2230_v1  ;;  %v2227_v24 = vmul.f32 0.0078125, %v2221_v7 }
 0x9b6   :  { %v2231_v60 = vadd.f32 1e-12, %v2227_v24 }
 0x9b7   :  { %v2223_v8 = vpop.xlane.xlu1 %2222 }
 0x9b8   :  { %5744 = vrsqrt.f32 %v2231_v60  ;;  %v2228_v10 = vmul.f32 0.0078125, %v2223_v8 }
 0x9ba   :  { %v2232_v11 = vadd.f32 1e-12, %v2228_v10 }
 0x9bb   :  { %v2225_v12 = vpop.xlane.xlu0 %2224 }
 0x9bc   :  { %5746 = vrsqrt.f32 %v2232_v11  ;;  %v2229_v13 = vmul.f32 0.0078125, %v2225_v12 }
 0x9be   :  { %v2233_v16 = vadd.f32 1e-12, %v2229_v13 }
 0x9c0   :  { %5748 = vrsqrt.f32 %v2233_v16 }
 0x9c1   :  { %v5743_v50 = vpop.eup %5742 }
 0x9c2   :  { %v2238_v35 = vmul.f32 %v5743_v50, %v6659_v4 }
 0x9c4   :  { %v2248_v2 = vmul.f32 %v4590_v62, %v2238_v35 }
 0x9c5   :  { %v5745_v29 = vpop.eup %5744 }
 0x9c6   :  { %v2239_v57 = vmul.f32 %v5745_v29, %v6663_v30  ;;  %v6751_v44 = vadd.f32 %v4591_v42, %v2248_v2 }
 0x9c8   :  { %v2249_v61 = vmul.f32 %v4590_v62, %v2239_v57 }
 0x9c9   :  { %v5747_v17 = vpop.eup %5746 }
 0x9ca   :  { %v6753_v56 = vadd.f32 %v4591_v42, %v2249_v61  ;;  %v2240_v4 = vmul.f32 %v5747_v17, %v6667_v22 }
 0x9cc   :  { %v2262_v54 = vpack.c.bf16 %v6753_v56, %v6751_v44  ;;  %v2250_v43 = vmul.f32 %v4590_v62, %v2240_v4 }
 0x9cd   :  { %v5749_v58 = vpop.eup %5748 }
 0x9ce   :  { %2476 = vmatmul.mubr.bf16.vlgmr.msra.gmra.mxu0 %v2262_v54  ;;  %5096 = vmatprep.mubr.bf16.mxu1 %v2262_v54  ;;  %v2241_v30 = vmul.f32 %v5749_v58, %v6671_v25  ;;  %v6760_v51 = vadd.f32 %v4591_v42, %v2250_v43 }
 0x9cf   :  { %2485 = vmatprep.mubr.bf16.mxu0 %v5926_v0 }
 0x9d0   :  { %v2251_v15 = vmul.f32 %v4590_v62, %v2241_v30 }
 0x9d2   :  { %v6762_v18 = vadd.f32 %v4591_v42, %v2251_v15 }
 0x9d4   :  { %v2263_v21 = vpack.c.bf16 %v6762_v18, %v6760_v51 }
 0x9d6   :  { %2486 = vmatmul.mubr.bf16.gmra.mxu0 %v2263_v21  ;;  %5097 = vmatmul.mubr.bf16.vlgmr.msra.gmra.mxu1 %v2263_v21 }
 0x9d7   :  { %5102 = vmatprep.mubr.msk.bf16.mxu0 %vm5928_vm0, %v5927_v31  ;;  %5120 = vmatprep.mubr.msk.bf16.mxu1 %vm5928_vm0, %v5927_v31 }
 0xa8e   :  { %v2477_v22 = vpop.f32.mrf.mxu0 }
 0xa8f   :  { %v2478_v49 = vadd.f32 %v2477_v22, %v2303_v41 }
 0xa90   :  { %v2479_v25 = vpop.f32.mrf.mxu0 }
 0xa91   :  { %v2480_v40 = vadd.f32 %v2479_v25, %v2307_v27 }
 0xa92   :  { %v2481_v38 = vpop.f32.mrf.mxu0 }
 0xa93   :  { %v2482_v46 = vadd.f32 %v2481_v38, %v2303_v41 }
 0xa94   :  { %v2483_v39 = vpop.f32.mrf.mxu0 }
 0xa95   :  { %v2484_v32 = vadd.f32 %v2483_v39, %v2307_v27  ;;  %v5376_v53 = vpack.i.bf16 %v2482_v46, %v2478_v49  ;;  %v2585_v7 = vpack.c.bf16 %v2482_v46, %v2478_v49 }
 0xa96   :  { %v2487_v5 = vpop.f32.mrf.mxu0  ;;  %v5098_v47 = vpop.f32.mrf.mxu1 }
 0xa97   :  { %v5366_v63 = vpack.i.bf16 %v2484_v32, %v2480_v40  ;;  %v2633_v14 = vpack.c.bf16 %v2484_v32, %v2480_v40  ;;  %v6782_v9 = vadd.f32 %v5098_v47, %v2311_v59  ;;  %v2488_v12 = vadd.f32 %v2487_v5, %v2303_v41 }
 0xa98   :  { %v2489_v37 = vpop.f32.mrf.mxu0  ;;  %v2530_v48 = vpop.f32.mrf.mxu1 }
 0xa99   :  { %5367 = vrot.lane.b32.xlu1 %v5366_v63, %s5929_s30  ;;  %v2693_v6 = vsel %vm520_vm1, %v2633_v14, 0  ;;  %v2490_v26 = vadd.f32 %v2489_v37, %v2307_v27  ;;  %v6787_v28 = vadd.f32 %v2530_v48, %v2311_v59 }
 0xa9a   :  { %v2491_v52 = vpop.f32.mrf.mxu0  ;;  %v5099_v3 = vpop.f32.mrf.mxu1  ;;  %5101 = vmatpush3.bf16.xpose.msra.mxu0 %v2693_v6 }
 0xa9b   :  { %v6779_v19 = vadd.f32 %v5099_v3, %v2311_v59  ;;  %5106 = vmatprep.subr.bf16.mxu0 %v5927_v31  ;;  %v2492_v8 = vadd.f32 %v2491_v52, %v2303_v41 }
 0xa9c   :  { %v2493_v45 = vpop.f32.mrf.mxu0  ;;  %v2533_v33 = vpop.f32.mrf.mxu1 }
 0xa9d   :  { %v2494_v20 = vadd.f32 %v2493_v45, %v2307_v27  ;;  %v6784_v55 = vadd.f32 %v2533_v33, %v2311_v59  ;;  %5377 = vrot.lane.b32.xlu1 %v5376_v53, %s5929_s30  ;;  %v6791_v1 = vpack.i.bf16 %v6779_v19, %v6782_v9  ;;  %v5386_v13 = vpack.i.bf16 %v2492_v8, %v2488_v12 }
 0xa9e   :  { %v2586_v16 = vpack.c.bf16 %v2492_v8, %v2488_v12 }
 0xa9f   :  { %v5371_v24 = vpack.i.bf16 %v2494_v20, %v2490_v26  ;;  %v2634_v60 = vpack.c.bf16 %v2494_v20, %v2490_v26  ;;  %v6795_v10 = vpack.i.bf16 %v6784_v55, %v6787_v28 }
 0xaa1   :  { %5382 = vrot.lane.b32.xlu1 %v5366_v63, %s5923_s24  ;;  %5103 = vmatmul.mubr.msk.bf16.vlgmr.msra.gmra.mxu0 %vm520_vm1, %v2585_v7  ;;  %v2740_v11 = vsel %vm520_vm1, %v2634_v60, 0 }
 0xaa2   :  { %5372 = vrot.lane.b32.xlu0 %v5371_v24, %s5929_s30  ;;  %5107 = vmatpush3.bf16.xpose.msra.mxu0 %v2740_v11 }
 0xaa3   :  { %5108 = vmatprep.mubr.msk.bf16.mxu0 %vm5928_vm0, %v5927_v31  ;;  %5112 = vmatprep.subr.bf16.mxu0 %v5927_v31 }
 0xaa5   :  { %5397 = vrot.lane.b32.xlu1 %v5371_v24, %s5923_s24 }
 0xaa6   :  { %5387 = vrot.lane.b32.xlu0 %v5386_v13, %s5929_s30 }
 0xaa9   :  { %5402 = vrot.lane.b32.xlu1 %v5366_v63, %s5930_s0  ;;  %5109 = vmatmul.mubr.msk.bf16.vlgmr.msra.gmra.mxu0 %vm520_vm1, %v2586_v16 }
 0xaaa   :  { %5392 = vrot.lane.b32.xlu0 %v5376_v53, %s5923_s24  ;;  %5114 = vmatprep.mubr.msk.bf16.mxu0 %vm5928_vm0, %v5927_v31 }
 0xaad   :  { %5412 = vrot.lane.b32.xlu1 %v5371_v24, %s5930_s0 }
 0xaae   :  { %5407 = vrot.lane.b32.xlu0 %v5386_v13, %s5923_s24 }
 0xab1   :  { %5422 = vrot.lane.b32.xlu1 %v5386_v13, %s5930_s0 }
 0xab2   :  { %5417 = vrot.lane.b32.xlu0 %v5376_v53, %s5930_s0 }
 0xb0b   :  { %v5368_v50 = vpop.permute.xlu1 %5367 }
 0xb0c   :  { %v5370_v35 = vunpack.i.h.bf16 %v5368_v50  ;;  %v5369_v62 = vunpack.i.l.bf16 %v5368_v50  ;;  %v2681_v50 = vpack.c.bf16 %v6784_v55, %v6787_v28  ;;  %v2682_v28 = vpack.c.bf16 %v6779_v19, %v6782_v9 }
 0xb0e   :  { %v2635_v29 = vpack.c.bf16 %v5370_v35, %v5369_v62 }
 0xb0f   :  { %v5378_v57 = vpop.permute.xlu1 %5377 }
 0xb10   :  { %v2787_v2 = vsel %vm520_vm1, %v2635_v29, 0  ;;  %v5380_v42 = vunpack.i.h.bf16 %v5378_v57  ;;  %v5379_v61 = vunpack.i.l.bf16 %v5378_v57 }
 0xb11   :  { %5113 = vmatpush3.bf16.xpose.msra.mxu0 %v2787_v2 }
 0xb12   :  { %5124 = vmatprep.subr.bf16.mxu0 %v5927_v31  ;;  %v2587_v15 = vpack.c.bf16 %v5380_v42, %v5379_v61  ;;  %v5848_v61 = vld [vmem:[%s7293_s1] ss:$0 sm:$0xff] }
 0xb13   :  { %v5383_v17 = vpop.permute.xlu1 %5382 }
 0xb14   :  { %v5385_v4 = vunpack.i.h.bf16 %v5383_v17  ;;  %v5384_v54 = vunpack.i.l.bf16 %v5383_v17  ;;  %v5373_v58 = vpop.permute.xlu0 %5372 }
 0xb15   :  { %v5375_v30 = vunpack.i.h.bf16 %v5373_v58  ;;  %v5374_v43 = vunpack.i.l.bf16 %v5373_v58 }
 0xb16   :  { %v2637_v21 = vpack.c.bf16 %v5385_v4, %v5384_v54 }
 0xb17   :  { %v2636_v22 = vpack.c.bf16 %v5375_v30, %v5374_v43  ;;  %v5398_v23 = vpop.permute.xlu1 %5397 }
 0xb18   :  { %v5388_v25 = vpop.permute.xlu0 %5387  ;;  %5115 = vmatmul.mubr.msk.bf16.vlgmr.msra.gmra.mxu0 %vm520_vm1, %v2587_v15  ;;  %v2881_v27 = vsel %vm520_vm1, %v2637_v21, 0  ;;  %v5400_v38 = vunpack.i.h.bf16 %v5398_v23  ;;  %v5399_v39 = vunpack.i.l.bf16 %v5398_v23 }
 0xb19   :  { %v2834_v41 = vsel %vm520_vm1, %v2636_v22, 0  ;;  %5125 = vmatpush3.bf16.xpose.msra.mxu0 %v2881_v27  ;;  %5126 = vmatprep.mubr.msk.bf16.mxu0 %vm5928_vm0, %v5927_v31  ;;  %v5390_v40 = vunpack.i.h.bf16 %v5388_v25  ;;  %v5389_v32 = vunpack.i.l.bf16 %v5388_v25  ;;  %v5849_v22 = vld [vmem:[%s7293_s1 + $0x1] ss:$0 sm:$0xff] }
 0xb1a   :  { %5119 = vmatpush3.bf16.xpose.msra.mxu1 %v2834_v41  ;;  %5136 = vmatprep.subr.bf16.mxu0 %v5927_v31  ;;  %v2638_v14 = vpack.c.bf16 %v5400_v38, %v5399_v39 }
 0xb1b   :  { %v5403_v5 = vpop.permute.xlu1 %5402  ;;  %5130 = vmatprep.subr.bf16.mxu1 %v5927_v31  ;;  %v2588_v49 = vpack.c.bf16 %v5390_v40, %v5389_v32 }
 0xb1c   :  { %v5405_v47 = vunpack.i.h.bf16 %v5403_v5  ;;  %v5404_v46 = vunpack.i.l.bf16 %v5403_v5  ;;  %v5393_v63 = vpop.permute.xlu0 %5392  ;;  %v2928_v26 = vsel %vm520_vm1, %v2638_v14, 0 }
 0xb1d   :  { %v5395_v59 = vunpack.i.h.bf16 %v5393_v63  ;;  %v5394_v37 = vunpack.i.l.bf16 %v5393_v63 }
 0xb1e   :  { %v2639_v48 = vpack.c.bf16 %v5405_v47, %v5404_v46  ;;  %v5850_v46 = vld [vmem:[%s7293_s1 + $0x2] ss:$0 sm:$0xff] }
 0xb1f   :  { %v2589_v6 = vpack.c.bf16 %v5395_v59, %v5394_v37  ;;  %v5413_v52 = vpop.permute.xlu1 %5412 }
 0xb20   :  { %v5408_v3 = vpop.permute.xlu0 %5407  ;;  %v2975_v53 = vsel %vm520_vm1, %v2639_v48, 0  ;;  %v5415_v45 = vunpack.i.h.bf16 %v5413_v52  ;;  %v5414_v33 = vunpack.i.l.bf16 %v5413_v52 }
 0xb21   :  { %5121 = vmatmul.mubr.msk.bf16.vlgmr.msra.gmra.mxu1 %vm520_vm1, %v2588_v49  ;;  %5127 = vmatmul.mubr.msk.bf16.vlgmr.msra.gmra.mxu0 %vm520_vm1, %v2589_v6  ;;  %v5410_v20 = vunpack.i.h.bf16 %v5408_v3  ;;  %v5409_v7 = vunpack.i.l.bf16 %v5408_v3 }
 0xb22   :  { %5131 = vmatpush3.bf16.xpose.msra.mxu1 %v2928_v26  ;;  %5137 = vmatpush3.bf16.xpose.msra.mxu0 %v2975_v53  ;;  %v2640_v60 = vpack.c.bf16 %v5415_v45, %v5414_v33 }
 0xb23   :  { %5132 = vmatprep.mubr.msk.bf16.mxu1 %vm5928_vm0, %v5927_v31  ;;  %5138 = vmatprep.mubr.msk.bf16.mxu0 %vm5928_vm0, %v5927_v31  ;;  %v2590_v12 = vpack.c.bf16 %v5410_v20, %v5409_v7  ;;  %v5423_v16 = vpop.permute.xlu1 %5422  ;;  %v5851_v20 = vld [vmem:[%s7293_s1 + $0x3] ss:$0 sm:$0xff] }
 0xb24   :  { %v5418_v24 = vpop.permute.xlu0 %5417  ;;  %5142 = vmatprep.subr.bf16.mxu1 %v5927_v31  ;;  %5148 = vmatprep.subr.bf16.mxu0 %v5927_v31  ;;  %v3022_v35 = vsel %vm520_vm1, %v2640_v60, 0  ;;  %v5425_v62 = vunpack.i.h.bf16 %v5423_v16  ;;  %v5424_v29 = vunpack.i.l.bf16 %v5423_v16 }
 0xb25   :  { %v5420_v8 = vunpack.i.h.bf16 %v5418_v24  ;;  %v5419_v11 = vunpack.i.l.bf16 %v5418_v24 }
 0xb26   :  { %v2592_v55 = vpack.c.bf16 %v5425_v62, %v5424_v29 }
 0xb27   :  { %v2591_v13 = vpack.c.bf16 %v5420_v8, %v5419_v11 }
 0xb29   :  { %5133 = vmatmul.mubr.msk.bf16.vlgmr.msra.gmra.mxu1 %vm520_vm1, %v2590_v12  ;;  %5139 = vmatmul.mubr.msk.bf16.vlgmr.msra.gmra.mxu0 %vm520_vm1, %v2591_v13  ;;  %v5852_v13 = vld [vmem:[%s7293_s1 + $0x4] ss:$0 sm:$0xff] }
 0xb2a   :  { %5143 = vmatpush3.bf16.xpose.msra.mxu1 %v3022_v35  ;;  %5149 = vmatpush3.bf16.msra.mxu0 %v2681_v50 }
 0xb2b   :  { %5144 = vmatprep.mubr.msk.bf16.mxu1 %vm5928_vm0, %v5927_v31  ;;  %5154 = vmatprep.subr.bf16.mxu1 %v5927_v31 }
 0xb2c   :  { %5150 = vmatprep.mubr.msk.bf16.mxu0 %vm5928_vm0, %v5927_v31  ;;  %5160 = vmatprep.subr.bf16.mxu0 %v5927_v31 }
 0xb31   :  { %5145 = vmatmul.mubr.msk.bf16.vlgmr.msra.gmra.mxu1 %vm520_vm1, %v2592_v55 }
 0xb32   :  { %5155 = vmatpush3.bf16.msra.mxu1 %v2682_v28  ;;  %5156 = vmatprep.mubr.msk.bf16.mxu1 %vm5928_vm0, %v5927_v31 }
 0xb33   :  { %5166 = vmatprep.subr.bf16.mxu1 %v5927_v31 }
 0xb61   :  { %v2729_v57 = vpop.f32.mrf.mxu0 }
 0xb62   :  { %v3065_v2 = vmul.f32 0.17677669, %v2729_v57 }
 0xb63   :  { %v5104_v42 = vpop.f32.mrf.mxu0 }
 0xb64   :  { %v6854_v17 = vadd.f32 %v5848_v61, %v3065_v2 }
 0xb65   :  { %v2732_v4 = vpop.f32.mrf.mxu0 }
 0xb66   :  { %v3066_v54 = vmul.f32 0.17677669, %v2732_v4  ;;  %v3097_v19 = vsel %vm977_vm2, %v6854_v17, -inf }
 0xb67   :  { %v5105_v9 = vpop.f32.mrf.mxu0  ;;  %3098 = vmax.xlane.f32.xlu0 %v3097_v19  ;;  %v5853_v19 = vld [vmem:[%s7293_s1 + $0x5] ss:$0 sm:$0xff] }
 0xb68   :  { %v6858_v58 = vadd.f32 %v5848_v61, %v3066_v54 }
 0xb69   :  { %v2776_v30 = vpop.f32.mrf.mxu0 }
 0xb6a   :  { %v3067_v43 = vmul.f32 0.17677669, %v2776_v30  ;;  %v3100_v15 = vsel %vm977_vm2, %v6858_v58, -inf }
 0xb6b   :  { %3101 = vmax.xlane.f32.xlu1 %v3100_v15  ;;  %v5110_v21 = vpop.f32.mrf.mxu0 }
 0xb6c   :  { %v6865_v23 = vadd.f32 %v5849_v22, %v3067_v43 }
 0xb6d   :  { %v2779_v25 = vpop.f32.mrf.mxu0 }
 0xb6e   :  { %v3068_v27 = vmul.f32 0.17677669, %v2779_v25  ;;  %v3103_v38 = vsel %vm977_vm2, %v6865_v23, -inf }
 0xb6f   :  { %3104 = vmax.xlane.f32.xlu0 %v3103_v38  ;;  %v5111_v39 = vpop.f32.mrf.mxu0 }
 0xb70   :  { %v6869_v41 = vadd.f32 %v5849_v22, %v3068_v27  ;;  %v5854_v27 = vld [vmem:[%s7293_s1 + $0x6] ss:$0 sm:$0xff] }
 0xb72   :  { %v3106_v40 = vsel %vm977_vm2, %v6869_v41, -inf }
 0xb73   :  { %3107 = vmax.xlane.f32.xlu0 %v3106_v40 }
 0xbd8   :  { %v2823_v32 = vpop.f32.mrf.mxu0 }
 0xbd9   :  { %v3069_v5 = vmul.f32 0.17677669, %v2823_v32 }
 0xbda   :  { %v5116_v47 = vpop.f32.mrf.mxu0 }
 0xbdb   :  { %v6876_v63 = vadd.f32 %v5850_v46, %v3069_v5 }
 0xbdc   :  { %v2826_v14 = vpop.f32.mrf.mxu0 }
 0xbdd   :  { %v3070_v59 = vmul.f32 0.17677669, %v2826_v14  ;;  %v3109_v37 = vsel %vm977_vm2, %v6876_v63, -inf }
 0xbde   :  { %3110 = vmax.xlane.f32.xlu1 %v3109_v37  ;;  %v5117_v48 = vpop.f32.mrf.mxu0 }
 0xbdf   :  { %v6880_v49 = vadd.f32 %v5850_v46, %v3070_v59  ;;  %v5855_v48 = vld [vmem:[%s7293_s1 + $0x7] ss:$0 sm:$0xff] }
 0xbe1   :  { %v2870_v6 = vpop.f32.mrf.mxu1  ;;  %v2917_v52 = vpop.f32.mrf.mxu0  ;;  %v3112_v3 = vsel %vm977_vm2, %v6880_v49, -inf }
 0xbe2   :  { %v3071_v53 = vmul.f32 0.17677669, %v2870_v6  ;;  %v3073_v45 = vmul.f32 0.17677669, %v2917_v52  ;;  %3113 = vmax.xlane.f32.xlu0 %v3112_v3 }
 0xbe3   :  { %v5122_v33 = vpop.f32.mrf.mxu1  ;;  %v5128_v26 = vpop.f32.mrf.mxu0 }
 0xbe4   :  { %v6887_v7 = vadd.f32 %v5851_v20, %v3071_v53  ;;  %v6894_v16 = vadd.f32 %v5852_v13, %v3073_v45 }
 0xbe5   :  { %v2873_v24 = vpop.f32.mrf.mxu1  ;;  %v2920_v60 = vpop.f32.mrf.mxu0 }
 0xbe6   :  { %v3072_v8 = vmul.f32 0.17677669, %v2873_v24  ;;  %v3074_v11 = vmul.f32 0.17677669, %v2920_v60  ;;  %v3115_v12 = vsel %vm977_vm2, %v6887_v7, -inf  ;;  %v3121_v61 = vsel %vm977_vm2, %v6894_v16, -inf }
 0xbe7   :  { %v5123_v50 = vpop.f32.mrf.mxu1  ;;  %3116 = vmax.xlane.f32.xlu1 %v3115_v12  ;;  %v5129_v35 = vpop.f32.mrf.mxu0 }
 0xbe8   :  { %v6896_v62 = vadd.f32 %v5851_v20, %v3072_v8  ;;  %v6898_v28 = vadd.f32 %v5852_v13, %v3074_v11 }
 0xbe9   :  { %v2964_v29 = vpop.f32.mrf.mxu1  ;;  %v3011_v55 = vpop.f32.mrf.mxu0 }
 0xbea   :  { %v3075_v57 = vmul.f32 0.17677669, %v2964_v29  ;;  %v3077_v2 = vmul.f32 0.17677669, %v3011_v55  ;;  %v3118_v42 = vsel %vm977_vm2, %v6896_v62, -inf  ;;  %v3124_v15 = vsel %vm977_vm2, %v6898_v28, -inf }
 0xbeb   :  { %v5134_v4 = vpop.f32.mrf.mxu1  ;;  %3119 = vmax.xlane.f32.xlu0 %v3118_v42  ;;  %3122 = vmax.xlane.f32.xlu1 %v3121_v61  ;;  %v5140_v54 = vpop.f32.mrf.mxu0 }
 0xbec   :  { %v6907_v9 = vadd.f32 %v5853_v19, %v3075_v57  ;;  %v6916_v38 = vadd.f32 %v5854_v27, %v3077_v2 }
 0xbed   :  { %v2967_v30 = vpop.f32.mrf.mxu1  ;;  %v3014_v43 = vpop.f32.mrf.mxu0 }
 0xbee   :  { %v3076_v21 = vmul.f32 0.17677669, %v2967_v30  ;;  %v3078_v22 = vmul.f32 0.17677669, %v3014_v43  ;;  %v3127_v25 = vsel %vm977_vm2, %v6907_v9, -inf  ;;  %v3133_v59 = vsel %vm977_vm2, %v6916_v38, -inf }
 0xbef   :  { %v5135_v39 = vpop.f32.mrf.mxu1  ;;  %3128 = vmax.xlane.f32.xlu1 %v3127_v25  ;;  %3125 = vmax.xlane.f32.xlu0 %v3124_v15  ;;  %v5141_v40 = vpop.f32.mrf.mxu0 }
 0xbf0   :  { %v6918_v32 = vadd.f32 %v5853_v19, %v3076_v21  ;;  %v6920_v47 = vadd.f32 %v5854_v27, %v3078_v22  ;;  %v3099_v24 = vpop.xlane.xlu0 %3098 }
 0xbf1   :  { %v3058_v5 = vpop.f32.mrf.mxu1  ;;  %v3145_v13 = vsub.f32 %v6854_v17, %v3099_v24 }
 0xbf2   :  { %v3079_v46 = vmul.f32 0.17677669, %v3058_v5  ;;  %v3130_v14 = vsel %vm977_vm2, %v6918_v32, -inf  ;;  %v3136_v45 = vsel %vm977_vm2, %v6920_v47, -inf }
 0xbf3   :  { %v5146_v37 = vpop.f32.mrf.mxu1  ;;  %3131 = vmax.xlane.f32.xlu0 %v3130_v14  ;;  %3134 = vmax.xlane.f32.xlu1 %v3133_v59  ;;  %v3161_v29 = vmul.f32 1.442695, %v3145_v13 }
 0xbf4   :  { %v6929_v6 = vadd.f32 %v5855_v48, %v3079_v46  ;;  %v3102_v8 = vpop.xlane.xlu1 %3101 }
 0xbf5   :  { %v3061_v52 = vpop.f32.mrf.mxu1  ;;  %v3146_v11 = vsub.f32 %v6858_v58, %v3102_v8 }
 0xbf6   :  { %v3080_v3 = vmul.f32 0.17677669, %v3061_v52  ;;  %v3139_v53 = vsel %vm977_vm2, %v6929_v6, -inf }
 0xbf7   :  { %v5147_v33 = vpop.f32.mrf.mxu1  ;;  %3140 = vmax.xlane.f32.xlu1 %v3139_v53  ;;  %3137 = vmax.xlane.f32.xlu0 %v3136_v45  ;;  %v3163_v50 = vmul.f32 1.442695, %v3146_v11 }
 0xbf8   :  { %v6935_v26 = vadd.f32 %v5855_v48, %v3080_v3  ;;  %v3105_v60 = vpop.xlane.xlu0 %3104 }
 0xbf9   :  { %5750 = vpow2.f32 %v3163_v50  ;;  %v3147_v55 = vsub.f32 %v6865_v23, %v3105_v60 }
 0xbfa   :  { %v3142_v20 = vsel %vm977_vm2, %v6935_v26, -inf  ;;  %5752 = vpow2.f32 %v3161_v29 }
 0xbfb   :  { %3143 = vmax.xlane.f32.xlu0 %v3142_v20  ;;  %v3165_v2 = vmul.f32 1.442695, %v3147_v55 }
 0xbfc   :  { %v3108_v12 = vpop.xlane.xlu0 %3107 }
 0xbfd   :  { %v3148_v35 = vsub.f32 %v6869_v41, %v3108_v12 }
 0xbff   :  { %v3167_v57 = vmul.f32 1.442695, %v3148_v35 }
 0xc01   :  { %5754 = vpow2.f32 %v3167_v57 }
 0xc02   :  { %5756 = vpow2.f32 %v3165_v2 }
 0xc06   :  { %v6951_v42 = vpop.eup %5750 }
 0xc07   :  { %v6953_v61 = vpop.eup %5752  ;;  %v3196_v58 = vsel %vm977_vm2, %v6951_v42, 0.0 }
 0xc08   :  { %5427 = vrot.lane.b32.xlu1 %v6795_v10, %s5929_s30  ;;  %v3193_v41 = vsel %vm977_vm2, %v6953_v61, 0.0 }
 0xc0c   :  { %5437 = vrot.lane.b32.xlu1 %v6795_v10, %s5923_s24 }
 0xc0e   :  { %v6957_v17 = vpop.eup %5754 }
 0xc0f   :  { %v3202_v23 = vsel %vm977_vm2, %v6957_v17, 0.0  ;;  %v6963_v4 = vpop.eup %5756 }
 0xc10   :  { %5442 = vrot.lane.b32.xlu1 %v6791_v1, %s5923_s24  ;;  %v3199_v54 = vsel %vm977_vm2, %v6963_v4, 0.0 }
 0xc11   :  { %5432 = vrot.lane.b32.xlu0 %v6791_v1, %s5929_s30 }
 0xc30   :  { %3197 = vadd.xlane.f32.xlu0 %v3196_v58 }
 0xc34   :  { %3194 = vadd.xlane.f32.xlu1 %v3193_v41  ;;  %3203 = vadd.xlane.f32.xlu0 %v3202_v23 }
 0xc38   :  { %3200 = vadd.xlane.f32.xlu1 %v3199_v54 }
 0xc67   :  { %v3111_v19 = vpop.xlane.xlu1 %3110 }
 0xc68   :  { %v3149_v30 = vsub.f32 %v6876_v63, %v3111_v19 }
 0xc6a   :  { %v3169_v43 = vmul.f32 1.442695, %v3149_v30 }
 0xc6b   :  { %v3114_v15 = vpop.xlane.xlu0 %3113 }
 0xc6c   :  { %5758 = vpow2.f32 %v3169_v43  ;;  %v3150_v21 = vsub.f32 %v6880_v49, %v3114_v15 }
 0xc6e   :  { %v3171_v22 = vmul.f32 1.442695, %v3150_v21 }
 0xc70   :  { %5760 = vpow2.f32 %v3171_v22  ;;  %v3117_v25 = vpop.xlane.xlu1 %3116 }
 0xc71   :  { %v3151_v27 = vsub.f32 %v6887_v7, %v3117_v25 }
 0xc73   :  { %v3173_v39 = vmul.f32 1.442695, %v3151_v27 }
 0xc74   :  { %v3120_v40 = vpop.xlane.xlu0 %3119  ;;  %v3123_v5 = vpop.xlane.xlu1 %3122 }
 0xc75   :  { %5762 = vpow2.f32 %v3173_v39  ;;  %v3152_v46 = vsub.f32 %v6896_v62, %v3120_v40  ;;  %v3153_v14 = vsub.f32 %v6894_v16, %v3123_v5 }
 0xc77   :  { %v3175_v59 = vmul.f32 1.442695, %v3152_v46  ;;  %v3177_v63 = vmul.f32 1.442695, %v3153_v14 }
 0xc78   :  { %v3129_v37 = vpop.xlane.xlu1 %3128  ;;  %v3126_v48 = vpop.xlane.xlu0 %3125 }
 0xc79   :  { %v6972_v52 = vpop.eup %5758  ;;  %5764 = vpow2.f32 %v3175_v59  ;;  %v3155_v49 = vsub.f32 %v6907_v9, %v3129_v37  ;;  %v3154_v3 = vsub.f32 %v6898_v28, %v3126_v48 }
 0xc7a   :  { %5766 = vpow2.f32 %v3177_v63  ;;  %v3205_v7 = vsel %vm977_vm2, %v6972_v52, 0.0 }
 0xc7b   :  { %v3181_v53 = vmul.f32 1.442695, %v3155_v49  ;;  %v3179_v45 = vmul.f32 1.442695, %v3154_v3  ;;  %3206 = vadd.xlane.f32.xlu1 %v3205_v7 }
 0xc7c   :  { %v3132_v62 = vpop.xlane.xlu0 %3131  ;;  %v3135_v16 = vpop.xlane.xlu1 %3134 }
 0xc7d   :  { %v6978_v33 = vpop.eup %5760  ;;  %5768 = vpow2.f32 %v3181_v53  ;;  %v3156_v20 = vsub.f32 %v6918_v32, %v3132_v62  ;;  %v3157_v24 = vsub.f32 %v6916_v38, %v3135_v16 }
 0xc7e   :  { %5770 = vpow2.f32 %v3179_v45  ;;  %v3208_v28 = vsel %vm977_vm2, %v6978_v33, 0.0 }
 0xc7f   :  { %v3183_v9 = vmul.f32 1.442695, %v3156_v20  ;;  %v3185_v60 = vmul.f32 1.442695, %v3157_v24  ;;  %3209 = vadd.xlane.f32.xlu0 %v3208_v28 }
 0xc80   :  { %v3141_v8 = vpop.xlane.xlu1 %3140  ;;  %v3138_v11 = vpop.xlane.xlu0 %3137 }
 0xc81   :  { %5772 = vpow2.f32 %v3183_v9  ;;  %v3159_v12 = vsub.f32 %v6929_v6, %v3141_v8  ;;  %v3158_v13 = vsub.f32 %v6920_v47, %v3138_v11 }
 0xc82   :  { %v6986_v50 = vpop.eup %5762  ;;  %5774 = vpow2.f32 %v3185_v60 }
 0xc83   :  { %v3189_v32 = vmul.f32 1.442695, %v3159_v12  ;;  %v3187_v35 = vmul.f32 1.442695, %v3158_v13  ;;  %v3211_v38 = vsel %vm977_vm2, %v6986_v50, 0.0 }
 0xc84   :  { %3212 = vadd.xlane.f32.xlu1 %v3211_v38  ;;  %v3144_v29 = vpop.xlane.xlu0 %3143  ;;  %v5428_v5 = vpop.permute.xlu1 %5427 }
 0xc85   :  { %5776 = vpow2.f32 %v3189_v32  ;;  %v3160_v55 = vsub.f32 %v6935_v26, %v3144_v29  ;;  %v5430_v53 = vunpack.i.h.bf16 %v5428_v5 }
 0xc86   :  { %v6991_v57 = vpop.eup %5764  ;;  %5778 = vpow2.f32 %v3187_v35 }
 0xc87   :  { %v6993_v2 = vpop.eup %5766  ;;  %v3191_v6 = vmul.f32 1.442695, %v3160_v55  ;;  %v3214_v47 = vsel %vm977_vm2, %v6991_v57, 0.0 }
 0xc88   :  { %v3217_v58 = vsel %vm977_vm2, %v6993_v2, 0.0  ;;  %3215 = vadd.xlane.f32.xlu0 %v3214_v47  ;;  %v5438_v46 = vpop.permute.xlu1 %5437  ;;  %v5433_v14 = vpop.permute.xlu0 %5432 }
 0xc89   :  { %5780 = vpow2.f32 %v3191_v6  ;;  %3218 = vadd.xlane.f32.xlu1 %v3217_v58  ;;  %v5435_v28 = vunpack.i.h.bf16 %v5433_v14  ;;  %v5434_v9 = vunpack.i.l.bf16 %v5433_v14  ;;  %v5440_v38 = vunpack.i.h.bf16 %v5438_v46 }
 0xc8a   :  { %v6999_v41 = vpop.eup %5768  ;;  %v5439_v29 = vunpack.i.l.bf16 %v5438_v46 }
 0xc8b   :  { %v7001_v23 = vpop.eup %5770  ;;  %v3223_v26 = vsel %vm977_vm2, %v6999_v41, 0.0 }
 0xc8c   :  { %v3220_v54 = vsel %vm977_vm2, %v7001_v23, 0.0  ;;  %v7031_v59 = vpop.permute.xlu1 %5442 }
 0xc8d   :  { %3224 = vadd.xlane.f32.xlu1 %v3223_v26  ;;  %3221 = vadd.xlane.f32.xlu0 %v3220_v54  ;;  %v2685_v54 = vpack.c.bf16 %v5440_v38, %v5439_v29 }
 0xc8e   :  { %v7007_v19 = vpop.eup %5772 }
 0xc8f   :  { %v7009_v30 = vpop.eup %5774  ;;  %v3226_v43 = vsel %vm977_vm2, %v7007_v19, 0.0 }
 0xc90   :  { %v3229_v15 = vsel %vm977_vm2, %v7009_v30, 0.0 }
 0xc91   :  { %3230 = vadd.xlane.f32.xlu1 %v3229_v15  ;;  %3227 = vadd.xlane.f32.xlu0 %v3226_v43 }
 0xc92   :  { %v7015_v21 = vpop.eup %5776 }
 0xc93   :  { %v7017_v22 = vpop.eup %5778  ;;  %v3235_v25 = vsel %vm977_vm2, %v7015_v21, 0.0 }
 0xc94   :  { %v3232_v27 = vsel %vm977_vm2, %v7017_v22, 0.0 }
 0xc95   :  { %3236 = vadd.xlane.f32.xlu1 %v3235_v25  ;;  %3233 = vadd.xlane.f32.xlu0 %v3232_v27 }
 0xc96   :  { %v7023_v39 = vpop.eup %5780 }
 0xc97   :  { %v3238_v40 = vsel %vm977_vm2, %v7023_v39, 0.0 }
 0xc99   :  { %3239 = vadd.xlane.f32.xlu0 %v3238_v40  ;;  %v5445_v40 = vunpack.i.h.bf16 %v7031_v59 }
 0xca6   :  { %5452 = vrot.lane.b32.xlu1 %v6791_v1, %s5930_s0  ;;  %v5429_v1 = vunpack.i.l.bf16 %v5428_v5  ;;  %v5444_v5 = vunpack.i.l.bf16 %v7031_v59 }
 0xca8   :  { %v2683_v24 = vpack.c.bf16 %v5430_v53, %v5429_v1 }
 0xcaf   :  { %5447 = vrot.lane.b32.xlu0 %v6795_v10, %s5930_s0 }
 0xcb9   :  { %v3198_v63 = vpop.xlane.xlu0 %3197 }
 0xcba   :  { %5782 = vrcp.f32 %v3198_v63 }
 0xcbd   :  { %v3195_v37 = vpop.xlane.xlu1 %3194  ;;  %v3204_v48 = vpop.xlane.xlu0 %3203 }
 0xcbe   :  { %5784 = vrcp.f32 %v3195_v37 }
 0xcbf   :  { %5786 = vrcp.f32 %v3204_v48 }
 0xcc1   :  { %v3201_v49 = vpop.xlane.xlu1 %3200 }
 0xcc2   :  { %5788 = vrcp.f32 %v3201_v49  ;;  %v2686_v49 = vpack.c.bf16 %v5445_v40, %v5444_v5  ;;  %v5603_v40 = vld [vmem:[#allocation2 + $0x50] sm:$0xff]  }
 0xcc7   :  { %v5783_v3 = vpop.eup %5782 }
 0xcc8   :  { %v3258_v10 = vmul.f32 %v5783_v3, %v6951_v42  ;;  %v2684_v42 = vpack.c.bf16 %v5435_v28, %v5434_v9 }
 0xccb   :  { %v5785_v7 = vpop.eup %5784 }
 0xccc   :  { %v3257_v45 = vmul.f32 %v5785_v7, %v6953_v61  ;;  %v5787_v62 = vpop.eup %5786 }
 0xccd   :  { %v3260_v8 = vmul.f32 %v5787_v62, %v6957_v17 }
 0xcce   :  { %v3273_v16 = vpack.c.bf16 %v3258_v10, %v3257_v45 }
 0xccf   :  { %v5789_v20 = vpop.eup %5788 }
 0xcd0   :  { %5151 = vmatmul.mubr.msk.bf16.vlgmr.msra.gmra.mxu0 %vm977_vm2, %v3273_v16  ;;  %v3259_v60 = vmul.f32 %v5789_v20, %v6963_v4 }
 0xcd1   :  { %5161 = vmatpush3.bf16.msra.mxu0 %v2683_v24  ;;  %5162 = vmatprep.mubr.msk.bf16.mxu0 %vm5928_vm0, %v5927_v31 }
 0xcd2   :  { %v3274_v11 = vpack.c.bf16 %v3260_v8, %v3259_v60  ;;  %5172 = vmatprep.subr.bf16.mxu0 %v5927_v31 }
 0xcd4   :  { %5157 = vmatmul.mubr.msk.bf16.vlgmr.msra.gmra.mxu1 %vm977_vm2, %v3274_v11 }
 0xcd5   :  { %5167 = vmatpush3.bf16.msra.mxu1 %v2684_v42  ;;  %5168 = vmatprep.mubr.msk.bf16.mxu1 %vm5928_vm0, %v5927_v31 }
 0xcd6   :  { %5178 = vmatprep.subr.bf16.mxu1 %v5927_v31 }
 0xd04   :  { %v3207_v61 = vpop.xlane.xlu1 %3206 }
 0xd05   :  { %5790 = vrcp.f32 %v3207_v61 }
 0xd08   :  { %v3210_v4 = vpop.xlane.xlu0 %3209 }
 0xd09   :  { %5792 = vrcp.f32 %v3210_v4 }
 0xd0d   :  { %v3213_v17 = vpop.xlane.xlu1 %3212 }
 0xd0e   :  { %5794 = vrcp.f32 %v3213_v17 }
 0xd11   :  { %v3216_v12 = vpop.xlane.xlu0 %3215 }
 0xd12   :  { %v3219_v13 = vpop.xlane.xlu1 %3218  ;;  %5796 = vrcp.f32 %v3216_v12  ;;  %v5791_v32 = vpop.eup %5790 }
 0xd13   :  { %5798 = vrcp.f32 %v3219_v13  ;;  %v3261_v47 = vmul.f32 %v5791_v32, %v6972_v52 }
 0xd16   :  { %v5793_v35 = vpop.eup %5792  ;;  %v3225_v55 = vpop.xlane.xlu1 %3224 }
 0xd17   :  { %v3222_v6 = vpop.xlane.xlu0 %3221  ;;  %v3262_v58 = vmul.f32 %v5793_v35, %v6978_v33 }
 0xd18   :  { %5800 = vrcp.f32 %v3222_v6  ;;  %v5600_v6 = vld [vmem:[#allocation2 + $0x68] sm:$0xff]  }
 0xd19   :  { %v3275_v26 = vpack.c.bf16 %v3262_v58, %v3261_v47  ;;  %5802 = vrcp.f32 %v3225_v55  ;;  %v5599_v55 = vld [vmem:[#allocation2 + $0x70] sm:$0xff]  }
 0xd1a   :  { %v3231_v43 = vpop.xlane.xlu1 %3230 }
 0xd1b   :  { %v3228_v15 = vpop.xlane.xlu0 %3227  ;;  %5163 = vmatmul.mubr.msk.bf16.vlgmr.msra.gmra.mxu0 %vm977_vm2, %v3275_v26  ;;  %v5795_v25 = vpop.eup %5794 }
 0xd1c   :  { %5804 = vrcp.f32 %v3228_v15  ;;  %5173 = vmatpush3.bf16.msra.mxu0 %v2685_v54  ;;  %5174 = vmatprep.mubr.msk.bf16.mxu0 %vm5928_vm0, %v5927_v31  ;;  %v3263_v46 = vmul.f32 %v5795_v25, %v6986_v50 }
 0xd1d   :  { %5184 = vmatprep.subr.bf16.mxu0 %v5927_v31  ;;  %5806 = vrcp.f32 %v3231_v43  ;;  %v5601_v43 = vld [vmem:[#allocation2 + $0x60] sm:$0xff]  }
 0xd1e   :  { %v3237_v52 = vpop.xlane.xlu1 %3236 }
 0xd1f   :  { %v3234_v27 = vpop.xlane.xlu0 %3233  ;;  %v5797_v33 = vpop.eup %5796 }
 0xd20   :  { %5808 = vrcp.f32 %v3234_v27  ;;  %v3264_v14 = vmul.f32 %v5797_v33, %v6991_v57  ;;  %v5799_v48 = vpop.eup %5798 }
 0xd21   :  { %5810 = vrcp.f32 %v3237_v52  ;;  %v3265_v53 = vmul.f32 %v5799_v48, %v6993_v2  ;;  %v5602_v52 = vld [vmem:[#allocation2 + $0x58] sm:$0xff]  }
 0xd22   :  { %v3276_v37 = vpack.c.bf16 %v3264_v14, %v3263_v46  ;;  %v5453_v7 = vpop.permute.xlu1 %5452 }
 0xd23   :  { %v3240_v63 = vpop.xlane.xlu0 %3239  ;;  %v5455_v16 = vunpack.i.h.bf16 %v5453_v7  ;;  %v5454_v20 = vunpack.i.l.bf16 %v5453_v7 }
 0xd24   :  { %5812 = vrcp.f32 %v3240_v63  ;;  %5169 = vmatmul.mubr.msk.bf16.vlgmr.msra.gmra.mxu1 %vm977_vm2, %v3276_v37  ;;  %v5604_v37 = vld [vmem:[#allocation2 + $0x48] sm:$0xff]  }
 0xd25   :  { %v5801_v3 = vpop.eup %5800  ;;  %5179 = vmatpush3.bf16.msra.mxu1 %v2686_v49  ;;  %5180 = vmatprep.mubr.msk.bf16.mxu1 %vm5928_vm0, %v5927_v31  ;;  %v2688_v8 = vpack.c.bf16 %v5455_v16, %v5454_v20 }
 0xd26   :  { %v3266_v50 = vmul.f32 %v5801_v3, %v7001_v23  ;;  %5190 = vmatprep.subr.bf16.mxu1 %v5927_v31  ;;  %v5803_v57 = vpop.eup %5802 }
 0xd27   :  { %v5448_v59 = vpop.permute.xlu0 %5447  ;;  %v3267_v28 = vmul.f32 %v5803_v57, %v6999_v41 }
 0xd28   :  { %v5450_v1 = vunpack.i.h.bf16 %v5448_v59  ;;  %v5449_v45 = vunpack.i.l.bf16 %v5448_v59  ;;  %v3277_v10 = vpack.c.bf16 %v3266_v50, %v3265_v53  ;;  %v5605_v53 = vld [vmem:[#allocation2 + $0x40] sm:$0xff]  }
 0xd29   :  { %v5805_v62 = vpop.eup %5804 }
 0xd2a   :  { %v2687_v24 = vpack.c.bf16 %v5450_v1, %v5449_v45  ;;  %5175 = vmatmul.mubr.msk.bf16.vlgmr.msra.gmra.mxu0 %vm977_vm2, %v3277_v10  ;;  %v3268_v9 = vmul.f32 %v5805_v62, %v7007_v19  ;;  %v5807_v60 = vpop.eup %5806 }
 0xd2b   :  { %5186 = vmatprep.mubr.msk.bf16.mxu0 %vm5928_vm0, %v5927_v31  ;;  %v3269_v42 = vmul.f32 %v5807_v60, %v7009_v30  ;;  %v5598_v30 = vld [vmem:[#allocation2 + $0x78] sm:$0xff]  }
 0xd2c   :  { %5185 = vmatpush3.bf16.msra.mxu0 %v2687_v24  ;;  %v3278_v2 = vpack.c.bf16 %v3268_v9, %v3267_v28 }
 0xd2d   :  { %v5809_v23 = vpop.eup %5808  ;;  %5196 = vmatprep.subr.bf16.mxu0 %v5598_v30 }
 0xd2e   :  { %v5811_v11 = vpop.eup %5810  ;;  %5181 = vmatmul.mubr.msk.bf16.vlgmr.msra.gmra.mxu1 %vm977_vm2, %v3278_v2  ;;  %v3270_v61 = vmul.f32 %v5809_v23, %v7017_v22 }
 0xd2f   :  { %5191 = vmatpush3.bf16.msra.mxu1 %v2688_v8  ;;  %5192 = vmatprep.mubr.msk.bf16.mxu1 %vm5928_vm0, %v5927_v31  ;;  %v3271_v4 = vmul.f32 %v5811_v11, %v7015_v21 }
 0xd30   :  { %v3279_v19 = vpack.c.bf16 %v3270_v61, %v3269_v42 }
 0xd31   :  { %v5813_v41 = vpop.eup %5812 }
 0xd32   :  { %v3272_v17 = vmul.f32 %v5813_v41, %v7023_v39  ;;  %5187 = vmatmul.mubr.msk.bf16.vlgmr.msra.gmra.mxu0 %vm977_vm2, %v3279_v19 }
 0xd33   :  { %5197 = vmatpush3.bf16.msra.mxu0 %v5598_v30 }
 0xd34   :  { %v3280_v12 = vpack.c.bf16 %v3272_v17, %v3271_v4  ;;  %5198 = vmatprep.subr.bf16.mxu0 %v5599_v55 }
 0xd36   :  { %5193 = vmatmul.mubr.msk.bf16.vlgmr.msra.gmra.mxu1 %vm977_vm2, %v3280_v12 }
 0xd37   :  { %4033 = vmatprep.mubr.bf16.mxu1 %v5926_v0  ;;  %5199 = vmatpush3.bf16.msra.mxu0 %v5599_v55 }
 0xd38   :  { %5200 = vmatprep.subr.bf16.mxu0 %v5600_v6 }
 0xd3b   :  { %5201 = vmatpush3.bf16.msra.mxu0 %v5600_v6 }
 0xd3c   :  { %5202 = vmatprep.subr.bf16.mxu0 %v5601_v43 }
 0xd3f   :  { %5203 = vmatpush3.bf16.msra.mxu0 %v5601_v43 }
 0xd40   :  { %5204 = vmatprep.subr.bf16.mxu0 %v5602_v52 }
 0xd43   :  { %5205 = vmatpush3.bf16.msra.mxu0 %v5602_v52 }
 0xd44   :  { %5206 = vmatprep.subr.bf16.mxu0 %v5603_v40 }
 0xd47   :  { %5207 = vmatpush3.bf16.msra.mxu0 %v5603_v40 }
 0xd48   :  { %5208 = vmatprep.subr.bf16.mxu0 %v5604_v37 }
 0xd4b   :  { %5209 = vmatpush3.bf16.msra.mxu0 %v5604_v37 }
 0xd4c   :  { %5210 = vmatprep.subr.bf16.mxu0 %v5605_v53 }
 0xd4f   :  { %5211 = vmatpush3.bf16.msra.mxu0 %v5605_v53 }
 0xd90   :  { %v7076_v22 = vpop.f32.mrf.mxu0 }
 0xd92   :  { %v5152_v13 = vpop.f32.mrf.mxu0 }
 0xd94   :  { %v7078_v32 = vpop.f32.mrf.mxu0  ;;  %v7080_v35 = vpop.f32.mrf.mxu1 }
 0xd96   :  { %v5153_v21 = vpop.f32.mrf.mxu0  ;;  %v5158_v38 = vpop.f32.mrf.mxu1 }
 0xd98   :  { %v7082_v39 = vpop.f32.mrf.mxu1 }
 0xd9a   :  { %v5159_v29 = vpop.f32.mrf.mxu1 }
 0xddb   :  { %v3406_v47 = vpop.f32.mrf.mxu0 }
 0xddd   :  { %v5164_v58 = vpop.f32.mrf.mxu0 }
 0xddf   :  { %v3409_v26 = vpop.f32.mrf.mxu0 }
 0xde0   :  { %v5456_v54 = vpack.i.bf16 %v3409_v26, %v3406_v47 }
 0xde1   :  { %v5165_v15 = vpop.f32.mrf.mxu0 }
 0xde2   :  { %5457 = vrot.lane.b32.xlu0 %v5456_v54, %s5930_s0 }
 0xde4   :  { %v3450_v25 = vpop.f32.mrf.mxu1 }
 0xde6   :  { %v5170_v27 = vpop.f32.mrf.mxu1 }
 0xde8   :  { %v3453_v33 = vpop.f32.mrf.mxu1 }
 0xde9   :  { %v5461_v5 = vpack.i.bf16 %v3453_v33, %v3450_v25 }
 0xdea   :  { %v3494_v46 = vpop.f32.mrf.mxu0  ;;  %v5171_v14 = vpop.f32.mrf.mxu1 }
 0xdeb   :  { %5462 = vrot.lane.b32.xlu1 %v5461_v5, %s5930_s0 }
 0xdec   :  { %v5176_v63 = vpop.f32.mrf.mxu0 }
 0xdee   :  { %v3497_v48 = vpop.f32.mrf.mxu0  ;;  %v3538_v49 = vpop.f32.mrf.mxu1 }
 0xdef   :  { %v5466_v3 = vpack.i.bf16 %v3497_v48, %v3494_v46 }
 0xdf0   :  { %v5177_v7 = vpop.f32.mrf.mxu0  ;;  %v5182_v59 = vpop.f32.mrf.mxu1 }
 0xdf1   :  { %5467 = vrot.lane.b32.xlu0 %v5466_v3, %s5923_s24 }
 0xdf2   :  { %v3541_v50 = vpop.f32.mrf.mxu1  ;;  %v3582_v57 = vpop.f32.mrf.mxu0 }
 0xdf3   :  { %v5471_v1 = vpack.i.bf16 %v3541_v50, %v3538_v49 }
 0xdf4   :  { %v5183_v45 = vpop.f32.mrf.mxu1  ;;  %v5188_v10 = vpop.f32.mrf.mxu0 }
 0xdf5   :  { %5472 = vrot.lane.b32.xlu1 %v5471_v1, %s5923_s24  ;;  %v5606_v1 = vld [vmem:[%s7300_s8 + $0xf0] ss:$8 sps:$4 sm:$0xff]  }
 0xdf6   :  { %v3585_v62 = vpop.f32.mrf.mxu0  ;;  %v3626_v16 = vpop.f32.mrf.mxu1 }
 0xdf7   :  { %v5476_v20 = vpack.i.bf16 %v3585_v62, %v3582_v57 }
 0xdf8   :  { %v5189_v24 = vpop.f32.mrf.mxu0  ;;  %v5194_v28 = vpop.f32.mrf.mxu1 }
 0xdf9   :  { %5477 = vrot.lane.b32.xlu0 %v5476_v20, %s5929_s30 }
 0xdfa   :  { %v3629_v9 = vpop.f32.mrf.mxu1 }
 0xdfb   :  { %v5481_v60 = vpack.i.bf16 %v3629_v9, %v3626_v16 }
 0xdfc   :  { %v5195_v2 = vpop.f32.mrf.mxu1 }
 0xdfd   :  { %5482 = vrot.lane.b32.xlu1 %v5481_v60, %s5929_s30 }
 0xe54   :  { %v5458_v23 = vpop.permute.xlu0 %5457 }
 0xe55   :  { %v5460_v42 = vunpack.i.h.bf16 %v5458_v23  ;;  %v5459_v61 = vunpack.i.l.bf16 %v5458_v23 }
 0xe57   :  { %v3682_v17 = vsel %vm520_vm1, %v7078_v32, %v5460_v42  ;;  %v3681_v12 = vsel %vm520_vm1, %v7076_v22, %v5459_v61  ;;  %v5611_v42 = vld [vmem:[%s7300_s8 + $0xe4] ss:$8 sps:$4 sm:$0xff]   ;;  %v5609_v61 = vld [vmem:[%s7300_s8 + $0xe0] ss:$8 sps:$4 sm:$0xff]  }
 0xe5d   :  { %v5463_v8 = vpop.permute.xlu1 %5462 }
 0xe5e   :  { %v5465_v13 = vunpack.i.h.bf16 %v5463_v8  ;;  %v5464_v21 = vunpack.i.l.bf16 %v5463_v8 }
 0xe60   :  { %v3684_v22 = vsel %vm520_vm1, %v7082_v39, %v5465_v13  ;;  %v3683_v15 = vsel %vm520_vm1, %v7080_v35, %v5464_v21  ;;  %v4666_v39 = vld [vmem:[%s7297_s5 + $0x1] ss:$0 sm:$0xff]  ;;  %v5623_v13 = vld [vmem:[%s7300_s8 + $0xa4] ss:$8 sps:$4 sm:$0xff]  }
 0xe61   :  { %v5621_v21 = vld [vmem:[%s7300_s8 + $0xa0] ss:$8 sps:$4 sm:$0xff]  }
 0xe63   :  { %v5468_v11 = vpop.permute.xlu0 %5467 }
 0xe64   :  { %v5470_v41 = vunpack.i.h.bf16 %v5468_v11  ;;  %v5469_v19 = vunpack.i.l.bf16 %v5468_v11 }
 0xe66   :  { %v3686_v55 = vsel %vm1566_vm3, %v3682_v17, %v5470_v41  ;;  %v3685_v6 = vsel %vm1566_vm3, %v3681_v12, %v5469_v19  ;;  %v5614_v41 = vld [vmem:[%s7300_s8 + $0xd4] ss:$8 sps:$4 sm:$0xff]   ;;  %v5612_v19 = vld [vmem:[%s7300_s8 + $0xd0] ss:$8 sps:$4 sm:$0xff]   ;;  %v5615_v17 = vld [vmem:[%s7300_s8 + $0xc0] ss:$8 sps:$4 sm:$0xff]  }
 0xe67   :  { %v5473_v4 = vpop.permute.xlu1 %5472  ;;  %v5618_v12 = vld [vmem:[%s7300_s8 + $0xb0] ss:$8 sps:$4 sm:$0xff]  }
 0xe68   :  { %v5475_v47 = vunpack.i.h.bf16 %v5473_v4  ;;  %v5474_v58 = vunpack.i.l.bf16 %v5473_v4  ;;  %v5617_v4 = vld [vmem:[%s7300_s8 + $0xc4] ss:$8 sps:$4 sm:$0xff]  }
 0xe6a   :  { %v3688_v27 = vsel %vm1566_vm3, %v3684_v22, %v5475_v47  ;;  %v3687_v33 = vsel %vm1566_vm3, %v3683_v15, %v5474_v58 }
 0xe6b   :  { %v5478_v30 = vpop.permute.xlu0 %5477 }
 0xe6c   :  { %v5480_v38 = vunpack.i.h.bf16 %v5478_v30  ;;  %v5479_v29 = vunpack.i.l.bf16 %v5478_v30  ;;  %v5620_v30 = vld [vmem:[%s7300_s8 + $0xb4] ss:$8 sps:$4 sm:$0xff]  }
 0xe6e   :  { %v3689_v26 = vsel %vm1571_vm4, %v3685_v6, %v5479_v29  ;;  %v3690_v54 = vsel %vm1571_vm4, %v3686_v55, %v5480_v38  ;;  %v5626_v38 = vld [vmem:[%s7300_s8 + $0x94] ss:$8 sps:$4 sm:$0xff]   ;;  %v5624_v29 = vld [vmem:[%s7300_s8 + $0x90] ss:$8 sps:$4 sm:$0xff]   ;;  %v5629_v55 = vld [vmem:[%s7300_s8 + $0x84] ss:$8 sps:$4 sm:$0xff]  }
 0xe6f   :  { %v5483_v43 = vpop.permute.xlu1 %5482  ;;  %v3693_v32 = vpack.c.bf16 %v3690_v54, %v3689_v26  ;;  %v5627_v6 = vld [vmem:[%s7300_s8 + $0x80] ss:$8 sps:$4 sm:$0xff]  }
 0xe70   :  { %v5485_v25 = vunpack.i.h.bf16 %v5483_v43  ;;  %v5484_v52 = vunpack.i.l.bf16 %v5483_v43 }
 0xe71   :  { %5212 = vmatprep.mubr.bf16.mxu0 %v3693_v32 }
 0xe72   :  { %v3692_v40 = vsel %vm1571_vm4, %v3688_v27, %v5485_v25  ;;  %v3691_v5 = vsel %vm1571_vm4, %v3687_v33, %v5484_v52 }
 0xe73   :  { %v3694_v46 = vpack.c.bf16 %v3692_v40, %v3691_v5 }
 0xe75   :  { %5213 = vmatmul.mubr.bf16.vlgmr.msra.gmra.mxu0 %v3694_v46  ;;  %v4677_v46 = vld [vmem:[%s7298_s6 + $0x1] ss:$0 sm:$0xff] }
 0xf35   :  { %v5214_v14 = vpop.f32.mrf.mxu0 }
 0xf36   :  { %v3811_v48 = vadd.f32 %v5214_v14, %v4666_v39 }
 0xf37   :  { %v3802_v63 = vpop.f32.mrf.mxu0 }
 0xf38   :  { %v3803_v35 = vadd.f32 %v4666_v39, %v3802_v63  ;;  %v3819_v59 = vadd.f32 %v3811_v48, %v6760_v51 }
 0xf39   :  { %v5215_v37 = vpop.f32.mrf.mxu0 }
 0xf3a   :  { %v3817_v49 = vadd.f32 %v3803_v35, %v6751_v44  ;;  %v3814_v53 = vadd.f32 %v5215_v37, %v4666_v39  ;;  %v5608_v44 = vld [vmem:[%s7300_s8 + $0xf4] ss:$8 sps:$4 sm:$0xff]   ;;  %v4678_v37 = vld [vmem:[%s7299_s7 + $0x1] ss:$0 sm:$0xff] }
 0xf3b   :  { %v3805_v3 = vpop.f32.mrf.mxu0  ;;  %4001 = vmatprep.subr.bf16.mxu1 %v5608_v44 }
 0xf3c   :  { %v3806_v7 = vadd.f32 %v4666_v39, %v3805_v3  ;;  %3825 = vadd.xlane.f32.xlu0 %v3817_v49  ;;  %v3820_v57 = vadd.f32 %v3814_v53, %v6762_v18  ;;  %4002 = vmatpush1.bf16.msra.mxu1 %v5606_v1 }
 0xf3d   :  { %4003 = vmatprep.subr.bf16.mxu1 %v5611_v42  ;;  %v5645_v42 = vld [vmem:[%s7302_s10 + $0x80] sm:$0xff]  }
 0xf3e   :  { %v3818_v50 = vadd.f32 %v3806_v7, %v6753_v56 }
 0xf40   :  { %3827 = vadd.xlane.f32.xlu1 %v3818_v50  ;;  %3829 = vadd.xlane.f32.xlu0 %v3819_v59 }
 0xf41   :  { %4004 = vmatpush1.bf16.msra.mxu1 %v5609_v61  ;;  %v4695_v61 = vld [vmem:[%s7301_s9 + $0x2] sm:$0x3] }
 0xf42   :  { %4005 = vmatprep.subr.bf16.mxu1 %v5614_v41  ;;  %v3914_v41 = vrot.slane %v4695_v61, %v6122_v34 }
 0xf44   :  { %3831 = vadd.xlane.f32.xlu0 %v3820_v57 }
 0xf45   :  { %4006 = vmatpush1.bf16.msra.mxu1 %v5612_v19  ;;  %v3918_v19 = vrot.slane %v4695_v61, %v6130_v36 }
 0xf46   :  { %4007 = vmatprep.subr.bf16.mxu1 %v5617_v4 }
 0xf49   :  { %4008 = vmatpush1.bf16.msra.mxu1 %v5615_v17 }
 0xf4a   :  { %4009 = vmatprep.subr.bf16.mxu1 %v5620_v30 }
 0xf4d   :  { %4010 = vmatpush1.bf16.msra.mxu1 %v5618_v12 }
 0xf4e   :  { %4011 = vmatprep.subr.bf16.mxu1 %v5623_v13 }
 0xf51   :  { %4012 = vmatpush1.bf16.msra.mxu1 %v5621_v21 }
 0xf52   :  { %4013 = vmatprep.subr.bf16.mxu1 %v5626_v38 }
 0xf55   :  { %4014 = vmatpush1.bf16.msra.mxu1 %v5624_v29 }
 0xf56   :  { %4015 = vmatprep.subr.bf16.mxu1 %v5629_v55 }
 0xf59   :  { %4016 = vmatpush1.bf16.msra.mxu1 %v5627_v6 }
 0xf5a   :  { %5216 = vmatprep.subr.bf16.mxu1 %v5927_v31 }
 0xfc5   :  { %v3826_v45 = vpop.xlane.xlu0 %3825 }
 0xfc6   :  { %v3833_v51 = vmul.f32 0.0078125, %v3826_v45 }
 0xfc8   :  { %v7119_v10 = vsub.f32 %v3817_v49, %v3833_v51 }
 0xfc9   :  { %v3828_v56 = vpop.xlane.xlu1 %3827  ;;  %v3830_v62 = vpop.xlane.xlu0 %3829 }
 0xfca   :  { %v3834_v16 = vmul.f32 0.0078125, %v3828_v56  ;;  %v3835_v20 = vmul.f32 0.0078125, %v3830_v62  ;;  %v3841_v18 = vmul.f32 %v7119_v10, %v7119_v10  ;;  %v5631_v56 = vld [vmem:[%s7302_s10 + $0xb8] sm:$0xff]   ;;  %v5633_v62 = vld [vmem:[%s7302_s10 + $0xb0] sm:$0xff]  }
 0xfcc   :  { %v3838_v24 = vsub.f32 %v3818_v50, %v3834_v16  ;;  %v7123_v28 = vsub.f32 %v3819_v59, %v3835_v20  ;;  %3845 = vadd.xlane.f32.xlu1 %v3841_v18  ;;  %v5634_v16 = vld [vmem:[%s7302_s10 + $0xe8] sm:$0xff]   ;;  %v5636_v18 = vld [vmem:[%s7302_s10 + $0xe0] sm:$0xff]  }
 0xfcd   :  { %v3832_v9 = vpop.xlane.xlu0 %3831  ;;  %v5635_v20 = vld [vmem:[%s7302_s10 + $0xa8] sm:$0xff]  }
 0xfce   :  { %v3836_v60 = vmul.f32 0.0078125, %v3832_v9  ;;  %v3842_v2 = vmul.f32 %v3838_v24, %v3838_v24  ;;  %v3843_v23 = vmul.f32 %v7123_v28, %v7123_v28  ;;  %v5639_v9 = vld [vmem:[%s7302_s10 + $0x98] sm:$0xff]  }
 0xfd0   :  { %v3840_v8 = vsub.f32 %v3820_v57, %v3836_v60  ;;  %3847 = vadd.xlane.f32.xlu0 %v3842_v2  ;;  %3849 = vadd.xlane.f32.xlu1 %v3843_v23  ;;  %v5640_v60 = vld [vmem:[%s7302_s10 + $0xd0] sm:$0xff]   ;;  %v5642_v23 = vld [vmem:[%s7302_s10 + $0xc8] sm:$0xff]  }
 0xfd1   :  { %v5641_v2 = vld [vmem:[%s7302_s10 + $0x90] sm:$0xff]  }
 0xfd2   :  { %v3844_v11 = vmul.f32 %v3840_v8, %v3840_v8 }
 0xfd4   :  { %3851 = vadd.xlane.f32.xlu0 %v3844_v11  ;;  %v5644_v11 = vld [vmem:[%s7302_s10 + $0xc0] sm:$0xff]  }
0x1055   :  { %v3846_v47 = vpop.xlane.xlu1 %3845 }
0x1056   :  { %v3853_v58 = vmul.f32 0.0078125, %v3846_v47 }
0x1058   :  { %v3857_v26 = vadd.f32 1e-12, %v3853_v58 }
0x1059   :  { %v3850_v54 = vpop.xlane.xlu1 %3849  ;;  %v3848_v43 = vpop.xlane.xlu0 %3847 }
0x105a   :  { %5814 = vrsqrt.f32 %v3857_v26  ;;  %v3855_v32 = vmul.f32 0.0078125, %v3850_v54  ;;  %v3854_v22 = vmul.f32 0.0078125, %v3848_v43 }
0x105c   :  { %v3858_v15 = vadd.f32 1e-12, %v3854_v22  ;;  %v3859_v25 = vadd.f32 1e-12, %v3855_v32 }
0x105d   :  { %v3852_v52 = vpop.xlane.xlu0 %3851 }
0x105e   :  { %v3856_v27 = vmul.f32 0.0078125, %v3852_v52  ;;  %5816 = vrsqrt.f32 %v3858_v15 }
0x105f   :  { %5818 = vrsqrt.f32 %v3859_v25 }
0x1060   :  { %v3860_v33 = vadd.f32 1e-12, %v3856_v27 }
0x1062   :  { %5820 = vrsqrt.f32 %v3860_v33 }
0x1067   :  { %v5815_v40 = vpop.eup %5814 }
0x1068   :  { %v3865_v5 = vmul.f32 %v5815_v40, %v7119_v10  ;;  %v5630_v10 = vld [vmem:[%s7302_s10 + $0xf8] sm:$0xff]  }
0x1069   :  { %4907 = vmatprep.subr.bf16.mxu0 %v5630_v10 }
0x106a   :  { %v3875_v63 = vmul.f32 %v4677_v46, %v3865_v5  ;;  %4908 = vmatpush3.bf16.msra.mxu0 %v5631_v56 }
0x106b   :  { %v5817_v14 = vpop.eup %5816 }
0x106c   :  { %v3866_v39 = vmul.f32 %v5817_v14, %v3838_v24  ;;  %v5819_v35 = vpop.eup %5818  ;;  %v7177_v7 = vadd.f32 %v4678_v37, %v3875_v63  ;;  %v5637_v24 = vld [vmem:[%s7302_s10 + $0xa0] sm:$0xff]  }
0x106d   :  { %v3867_v53 = vmul.f32 %v5819_v35, %v7123_v28  ;;  %v5638_v28 = vld [vmem:[%s7302_s10 + $0xd8] sm:$0xff]  }
0x106e   :  { %v3876_v49 = vmul.f32 %v4677_v46, %v3866_v39 }
0x106f   :  { %v5821_v48 = vpop.eup %5820  ;;  %v3877_v1 = vmul.f32 %v4677_v46, %v3867_v53 }
0x1070   :  { %v3868_v3 = vmul.f32 %v5821_v48, %v3840_v8  ;;  %v3886_v59 = vadd.f32 %v4678_v37, %v3876_v49  ;;  %v5643_v8 = vld [vmem:[%s7302_s10 + $0x88] sm:$0xff]  }
0x1071   :  { %v7182_v45 = vadd.f32 %v4678_v37, %v3877_v1 }
0x1072   :  { %v3889_v50 = vpack.c.bf16 %v3886_v59, %v7177_v7  ;;  %v3878_v57 = vmul.f32 %v4677_v46, %v3868_v3 }
0x1074   :  { %4034 = vmatmul.mubr.bf16.vlgmr.msra.gmra.mxu1 %v3889_v50  ;;  %v3888_v44 = vadd.f32 %v4678_v37, %v3878_v57 }
0x1075   :  { %4043 = vmatprep.mubr.bf16.mxu1 %v5926_v0  ;;  %v5632_v0 = vld [vmem:[%s7302_s10 + $0xf0] sm:$0xff]  }
0x1076   :  { %v3890_v51 = vpack.c.bf16 %v3888_v44, %v7182_v45  ;;  %4909 = vmatprep.subr.bf16.mxu0 %v5632_v0 }
0x1077   :  { %4910 = vmatpush3.bf16.msra.mxu0 %v5633_v62 }
0x1078   :  { %4911 = vmatprep.subr.bf16.mxu0 %v5634_v16 }
0x107b   :  { %4912 = vmatpush3.bf16.msra.mxu0 %v5635_v20 }
0x107c   :  { %4044 = vmatmul.mubr.bf16.gmra.mxu1 %v3890_v51  ;;  %4913 = vmatprep.subr.bf16.mxu0 %v5636_v18 }
0x107d   :  { %5232 = vmatprep.mubr.msk.bf16.mxu1 %vm5928_vm0, %v5927_v31 }
0x107f   :  { %4914 = vmatpush3.bf16.msra.mxu0 %v5637_v24 }
0x1080   :  { %4915 = vmatprep.subr.bf16.mxu0 %v5638_v28 }
0x1083   :  { %4916 = vmatpush3.bf16.msra.mxu0 %v5639_v9 }
0x1084   :  { %4917 = vmatprep.subr.bf16.mxu0 %v5640_v60 }
0x1087   :  { %4918 = vmatpush3.bf16.msra.mxu0 %v5641_v2 }
0x1088   :  { %4919 = vmatprep.subr.bf16.mxu0 %v5642_v23 }
0x108b   :  { %4920 = vmatpush3.bf16.msra.mxu0 %v5643_v8 }
0x108c   :  { %4921 = vmatprep.subr.bf16.mxu0 %v5644_v11 }
0x108f   :  { %4922 = vmatpush3.bf16.msra.mxu0 %v5645_v42 }
0x1134   :  { %v4035_v4 = vpop.f32.mrf.mxu1 }
0x1135   :  { %v7240_v17 = vadd.f32 %v4035_v4, %v3914_v41 }
0x1136   :  { %v4037_v12 = vpop.f32.mrf.mxu1 }
0x1137   :  { %v4062_v30 = vmul.f32 0.044715, %v7240_v17  ;;  %v7243_v13 = vadd.f32 %v4037_v12, %v3918_v19 }
0x1138   :  { %v4039_v21 = vpop.f32.mrf.mxu1 }
0x1139   :  { %v4070_v38 = vmul.f32 %v4062_v30, %v7240_v17  ;;  %v4063_v29 = vmul.f32 0.044715, %v7243_v13  ;;  %v4040_v55 = vadd.f32 %v4039_v21, %v3914_v41  ;;  %v4055_v21 = vmul.f32 0.5, %v7243_v13 }
0x113a   :  { %v4041_v6 = vpop.f32.mrf.mxu1 }
0x113b   :  { %v4078_v47 = vmul.f32 %v4070_v38, %v7240_v17  ;;  %v4071_v34 = vmul.f32 %v4063_v29, %v7243_v13  ;;  %v4064_v36 = vmul.f32 0.044715, %v4040_v55  ;;  %v4042_v58 = vadd.f32 %v4041_v6, %v3918_v19 }
0x113c   :  { %v4045_v26 = vpop.f32.mrf.mxu1  ;;  %v4056_v12 = vmul.f32 0.5, %v4040_v55  ;;  %v4054_v6 = vmul.f32 0.5, %v7240_v17 }
0x113d   :  { %v4086_v54 = vadd.f32 %v4078_v47, %v7240_v17  ;;  %v4079_v43 = vmul.f32 %v4071_v34, %v7243_v13  ;;  %v4072_v32 = vmul.f32 %v4064_v36, %v4040_v55  ;;  %v4065_v22 = vmul.f32 0.044715, %v4042_v58 }
0x113e   :  { %v7251_v15 = vadd.f32 %v4045_v26, %v3914_v41  ;;  %v4047_v25 = vpop.f32.mrf.mxu1  ;;  %v4057_v38 = vmul.f32 0.5, %v4042_v58 }
0x113f   :  { %v4094_v52 = vmul.f32 0.7978846, %v4086_v54  ;;  %v4080_v27 = vmul.f32 %v4072_v32, %v4040_v55  ;;  %v4073_v33 = vmul.f32 %v4065_v22, %v4042_v58  ;;  %v7253_v40 = vadd.f32 %v4047_v25, %v3918_v19 }
0x1140   :  { %v4066_v5 = vmul.f32 0.044715, %v7251_v15  ;;  %v4049_v46 = vpop.f32.mrf.mxu1  ;;  %v4087_v14 = vadd.f32 %v4079_v43, %v7243_v13 }
0x1141   :  { %v4088_v39 = vadd.f32 %v4080_v27, %v4040_v55  ;;  %v4081_v63 = vmul.f32 %v4073_v33, %v4042_v58  ;;  %v4067_v35 = vmul.f32 0.044715, %v7253_v40  ;;  %5822 = vtanh.f32 %v4094_v52 }
0x1142   :  { %v4074_v37 = vmul.f32 %v4066_v5, %v7251_v15  ;;  %v4050_v48 = vadd.f32 %v4049_v46, %v3914_v41  ;;  %v4051_v49 = vpop.f32.mrf.mxu1  ;;  %v4095_v3 = vmul.f32 0.7978846, %v4087_v14  ;;  %v4058_v46 = vmul.f32 0.5, %v7251_v15 }
0x1143   :  { %v4096_v59 = vmul.f32 0.7978846, %v4088_v39  ;;  %v4075_v53 = vmul.f32 %v4067_v35, %v7253_v40  ;;  %v4052_v50 = vadd.f32 %v4051_v49, %v3918_v19  ;;  %v4089_v57 = vadd.f32 %v4081_v63, %v4042_v58 }
0x1144   :  { %v4082_v1 = vmul.f32 %v4074_v37, %v7251_v15  ;;  %v4068_v44 = vmul.f32 0.044715, %v4050_v48  ;;  %5824 = vtanh.f32 %v4095_v3  ;;  %v4060_v55 = vmul.f32 0.5, %v4050_v48 }
0x1145   :  { %5826 = vtanh.f32 %v4096_v59  ;;  %v4083_v51 = vmul.f32 %v4075_v53, %v7253_v40  ;;  %v4069_v10 = vmul.f32 0.044715, %v4052_v50  ;;  %v4097_v56 = vmul.f32 0.7978846, %v4089_v57 }
0x1146   :  { %v4076_v0 = vmul.f32 %v4068_v44, %v4050_v48  ;;  %v4090_v62 = vadd.f32 %v4082_v1, %v7251_v15  ;;  %v4059_v58 = vmul.f32 0.5, %v7253_v40  ;;  %v4061_v5 = vmul.f32 0.5, %v4052_v50 }
0x1147   :  { %v4077_v16 = vmul.f32 %v4069_v10, %v4052_v50  ;;  %5828 = vtanh.f32 %v4097_v56  ;;  %v4091_v20 = vadd.f32 %v4083_v51, %v7253_v40 }
0x1148   :  { %v4084_v18 = vmul.f32 %v4076_v0, %v4050_v48  ;;  %v4098_v24 = vmul.f32 0.7978846, %v4090_v62 }
0x1149   :  { %v4085_v28 = vmul.f32 %v4077_v16, %v4052_v50  ;;  %v4099_v9 = vmul.f32 0.7978846, %v4091_v20 }
0x114a   :  { %v4092_v60 = vadd.f32 %v4084_v18, %v4050_v48  ;;  %v4745_v48 = vld [vmem:[%s7303_s11 + $0x1] ss:$0 sm:$0xff] }
0x114b   :  { %v4093_v2 = vadd.f32 %v4085_v28, %v4052_v50  ;;  %5830 = vtanh.f32 %v4099_v9 }
0x114c   :  { %v4100_v23 = vmul.f32 0.7978846, %v4092_v60  ;;  %5832 = vtanh.f32 %v4098_v24 }
0x114d   :  { %v4101_v8 = vmul.f32 0.7978846, %v4093_v2 }
0x114e   :  { %5834 = vtanh.f32 %v4100_v23  ;;  %v5823_v11 = vpop.eup %5822  ;;  %v5647_v23 = vld [vmem:[#allocation5 + $0x30] sm:$0xff]  }
0x114f   :  { %5836 = vtanh.f32 %v4101_v8  ;;  %v4110_v30 = vadd.f32 1.0, %v5823_v11  ;;  %v5649_v8 = vld [vmem:[#allocation5 + $0x20] sm:$0xff]   ;;  %v5650_v11 = vld [vmem:[#allocation5 + $0x18] sm:$0xff]  }
0x1151   :  { %v5825_v42 = vpop.eup %5824  ;;  %v4118_v54 = vmul.f32 %v4110_v30, %v4054_v6 }
0x1152   :  { %v5827_v61 = vpop.eup %5826  ;;  %v4111_v41 = vadd.f32 1.0, %v5825_v42  ;;  %v5651_v42 = vld [vmem:[#allocation5 + $0x10] sm:$0xff]  }
0x1153   :  { %v4112_v19 = vadd.f32 1.0, %v5827_v61  ;;  %v5652_v61 = vld [vmem:[#allocation5 + $0x8] sm:$0xff]  }
0x1154   :  { %v5829_v4 = vpop.eup %5828  ;;  %v4119_v34 = vmul.f32 %v4111_v41, %v4055_v21  ;;  %v5653_v41 = vld [vmem:[#allocation5] sm:$0xff]  }
0x1155   :  { %v4113_v29 = vadd.f32 1.0, %v5829_v4  ;;  %v4120_v47 = vmul.f32 %v4112_v19, %v4056_v12 }
0x1157   :  { %v4121_v36 = vmul.f32 %v4113_v29, %v4057_v38  ;;  %v4126_v22 = vpack.c.bf16 %v4120_v47, %v4118_v54  ;;  %v4764_v47 = vld [vmem:[%s7304_s12 + $0x1] ss:$0 sm:$0xff] }
0x1158   :  { %v5831_v26 = vpop.eup %5830 }
0x1159   :  { %v5833_v43 = vpop.eup %5832  ;;  %v4127_v32 = vpack.c.bf16 %v4121_v36, %v4119_v34  ;;  %v4115_v52 = vadd.f32 1.0, %v5831_v26 }
0x115a   :  { %v4114_v33 = vadd.f32 1.0, %v5833_v43 }
0x115b   :  { %v5835_v25 = vpop.eup %5834  ;;  %4299 = vmatprep.mubr.bf16.mxu0 %v4127_v32  ;;  %v4123_v39 = vmul.f32 %v4115_v52, %v4059_v58  ;;  %v4766_v58 = vld [vmem:[%s7307_s15] ss:$0 sm:$0xff] }
0x115c   :  { %v5837_v27 = vpop.eup %5836  ;;  %4300 = vmatmul.mubr.bf16.vlgmr.msra.gmra.mxu0 %v4126_v22  ;;  %v4116_v13 = vadd.f32 1.0, %v5835_v25  ;;  %v4122_v35 = vmul.f32 %v4114_v33, %v4058_v46 }
0x115d   :  { %v4117_v17 = vadd.f32 1.0, %v5837_v27 }
0x115e   :  { %v4124_v14 = vmul.f32 %v4116_v13, %v4060_v55 }
0x115f   :  { %v4125_v63 = vmul.f32 %v4117_v17, %v4061_v5 }
0x1160   :  { %v4128_v49 = vpack.c.bf16 %v4124_v14, %v4122_v35 }
0x1161   :  { %v4129_v37 = vpack.c.bf16 %v4125_v63, %v4123_v39 }
0x1163   :  { %4306 = vmatprep.mubr.bf16.mxu0 %v4129_v37 }
0x1164   :  { %4307 = vmatmul.mubr.bf16.gmra.mxu0 %v4128_v49 }
0x121c   :  { %v4923_v3 = vpop.f32.mrf.mxu0 }
0x121e   :  { %v4924_v59 = vpop.f32.mrf.mxu0 }
0x121f   :  { %v4925_v53 = vadd.f32 %v4924_v59, %v4923_v3 }
0x1220   :  { %v4926_v40 = vpop.f32.mrf.mxu0 }
0x1221   :  { %v4302_v50 = vadd.f32 %v4925_v53, %v4745_v48 }
0x1222   :  { %v4927_v57 = vpop.f32.mrf.mxu0 }
0x1223   :  { %v4314_v15 = vadd.f32 %v4302_v50, %v7177_v7  ;;  %v5646_v7 = vld [vmem:[#allocation5 + $0x38] sm:$0xff]  }
0x1224   :  { %v4929_v1 = vpop.f32.mrf.mxu0  ;;  %5217 = vmatpush3.bf16.msra.mxu1 %v5646_v7 }
0x1225   :  { %4320 = vadd.xlane.f32.xlu0 %v4314_v15  ;;  %5218 = vmatprep.subr.bf16.mxu1 %v5927_v31 }
0x1226   :  { %v4930_v44 = vpop.f32.mrf.mxu0 }
0x1227   :  { %v4931_v51 = vadd.f32 %v4930_v44, %v4929_v1 }
0x1228   :  { %v4932_v10 = vpop.f32.mrf.mxu0  ;;  %5219 = vmatpush3.bf16.msra.mxu1 %v5647_v23 }
0x1229   :  { %v4309_v56 = vadd.f32 %v4931_v51, %v4745_v48  ;;  %5220 = vmatprep.subr.bf16.mxu1 %v5927_v31 }
0x122a   :  { %v4933_v0 = vpop.f32.mrf.mxu0 }
0x122b   :  { %v4315_v62 = vadd.f32 %v4309_v56, %v7182_v45  ;;  %v5648_v45 = vld [vmem:[#allocation5 + $0x28] sm:$0xff]  }
0x122c   :  { %5221 = vmatpush3.bf16.msra.mxu1 %v5648_v45 }
0x122d   :  { %4322 = vadd.xlane.f32.xlu1 %v4315_v62  ;;  %5222 = vmatprep.subr.bf16.mxu1 %v5927_v31 }
0x1230   :  { %5223 = vmatpush3.bf16.msra.mxu1 %v5649_v8 }
0x1231   :  { %5224 = vmatprep.subr.bf16.mxu1 %v5927_v31 }
0x1234   :  { %5225 = vmatpush3.bf16.msra.mxu1 %v5650_v11 }
0x1235   :  { %5226 = vmatprep.subr.bf16.mxu1 %v5927_v31 }
0x1238   :  { %5227 = vmatpush3.bf16.msra.mxu1 %v5651_v42 }
0x1239   :  { %5228 = vmatprep.subr.bf16.mxu1 %v5927_v31 }
0x123c   :  { %5229 = vmatpush3.bf16.msra.mxu1 %v5652_v61 }
0x123d   :  { %5230 = vmatprep.subr.bf16.mxu1 %v5927_v31  ;;  %v4765_v31 = vld [vmem:[%s7305_s13 + $0x1] ss:$0 sm:$0xff]  ;;  %s5931_s13 = smov [#allocation7]  }
0x123e   :  { %s4488_s17 = sshll.u32 %s5931_s13, 4  ;;  %s4489_s17 = int_to_ptr.vmem [resolvable:$true] %s4488_s17 }
0x123f   :  { %s5896_s18 = scalar_lea.vmem %s4489_s17, 32  ;;  %p5901_p11 = scmp.lt.s32.totalorder %s4489_s17, %s4489_s17 }
0x1240   :  { %5231 = vmatpush3.bf16.msra.mxu1 %v5653_v41  ;;  %p5897_p10 = scmp.ne.s32.totalorder %s4489_s17, %s5896_s18  ;;  %p5902_p12 = scmp.lt.s32.totalorder %s5896_s18, %s5896_s18 }
0x1242   :  { %p5903_p13 = por %p5902_p12, %p5901_p11 }
0x1244   :  { %p5904_p0 = pnand %p5903_p13, %p5897_p10 }
0x12ae   :  { %v4321_v16 = vpop.xlane.xlu0 %4320 }
0x12af   :  { %v4324_v20 = vmul.f32 0.0078125, %v4321_v16 }
0x12b1   :  { %v4326_v18 = vsub.f32 %v4314_v15, %v4324_v20 }
0x12b3   :  { %v4328_v24 = vmul.f32 %v4326_v18, %v4326_v18 }
0x12b5   :  { %4330 = vadd.xlane.f32.xlu0 %v4328_v24 }
0x12b6   :  { %v4323_v28 = vpop.xlane.xlu1 %4322 }
0x12b7   :  { %v4325_v9 = vmul.f32 0.0078125, %v4323_v28 }
0x12b9   :  { %v4327_v60 = vsub.f32 %v4315_v62, %v4325_v9 }
0x12bb   :  { %v4329_v2 = vmul.f32 %v4327_v60, %v4327_v60 }
0x12bd   :  { %4332 = vadd.xlane.f32.xlu1 %v4329_v2 }
0x133e   :  { %v4331_v19 = vpop.xlane.xlu0 %4330 }
0x133f   :  { %v4334_v4 = vmul.f32 0.0078125, %v4331_v19 }
0x1341   :  { %v4336_v12 = vadd.f32 1e-12, %v4334_v4 }
0x1343   :  { %5838 = vrsqrt.f32 %v4336_v12 }
0x1346   :  { %v4333_v30 = vpop.xlane.xlu1 %4332 }
0x1347   :  { %v4335_v21 = vmul.f32 0.0078125, %v4333_v30 }
0x1349   :  { %v4337_v38 = vadd.f32 1e-12, %v4335_v21 }
0x134b   :  { %5840 = vrsqrt.f32 %v4337_v38 }
0x1350   :  { %v5839_v29 = vpop.eup %5838 }
0x1351   :  { %v4340_v6 = vmul.f32 %v5839_v29, %v4326_v18 }
0x1353   :  { %v4348_v34 = vmul.f32 %v4764_v47, %v4340_v6 }
0x1355   :  { %v4356_v43 = vadd.f32 %v4765_v31, %v4348_v34 }
0x1357   :  { %v4358_v22 = vpack.c.bf16 %v4356_v43, %v4356_v43 }
0x1358   :  { %v5841_v36 = vpop.eup %5840 }
0x1359   :  { %v4341_v26 = vmul.f32 %v5841_v36, %v4327_v60  ;;  %v4385_v27 = vunpack.c.l.b16 %v4358_v22 }
0x135b   :  { %v4349_v54 = vmul.f32 %v4764_v47, %v4341_v26 }
0x135d   :  { %v4357_v32 = vadd.f32 %v4765_v31, %v4349_v54 }
0x135f   :  { %v4359_v25 = vpack.c.bf16 %v4357_v32, %v4357_v32 }
0x1361   :  { %v4386_v52 = vunpack.c.l.b16 %v4359_v25 }
0x1363   :  { %v4387_v55 = vrot.slane %v4386_v52, 7 }
0x1365   :  { %v4389_v33 = vsel %vm4388_vm5, %v4387_v55, %v4385_v27 }
0x1366   :  { %v4390_v13 = vpack.c.b16 %v4389_v33, %v4389_v33 }
0x1368   :  { %5233 = vmatmul.mubr.bf16.vlgmr.msra.gmra.mxu1 %v4390_v13 }
0x1428   :  { %v4474_v5 = vpop.f32.mrf.mxu1 }
0x1429   :  { %v4475_v17 = vadd.f32 %v4766_v58, %v4474_v5 }
0x142a   :  { %v5234_v46 = vpop.f32.mrf.mxu1 }
0x142b   :  { %5842 = vtanh.f32 %v4475_v17 }
0x142c   :  { %v4477_v14 = vpop.f32.mrf.mxu1 }
0x142e   :  { %v5235_v39 = vpop.f32.mrf.mxu1 }
0x1438   :  { %v5843_v63 = vpop.eup %5842 }
0x1439   :  { %4481 = vst [vmem:[#allocation7] sm:$0x3] %v5843_v63 }
0x143a   :  { %5907 = shalt.err (!%p5904_p0)
}
0x143b   :  { %4491 = dma.vmem_to_hbm [thread:$0]  %s4489_s17, 32, %s7308_s16, [#allocation4]  }
0x143c   :  { %5920 = dma.done.wait [#allocation4], 32  }
0x143d   :  { %5921 = vsyncadd [#allocation4], 4294967264 }
0x143e   :  { %4495 = vsyncpa [#allocation3], 1 }
0x143f   :  { %4496 = vsyncpa [#allocation6], 1 }
0x1440   :  { %4497 = vsyncpa [#allocation4], 1 }

</bundles_post_ra>
